<compile_context>
chip_gen: v5e
topology: v5e:2x2
jax: 0.10.0
libtpu: 0.0.40
codegen_flags: <defaults>
</compile_context>

<pallas_src>
import functools

import numpy as np

import jax
import jax.numpy as jnp
from jax.experimental import pallas as pl
from jax.experimental.pallas import tpu as pltpu

_HALF = 128  # per-width-parity lane padding of every conv output


# ---------------------------------------------------------------------------
# Fused Pallas kernel: conv1 -> pool1 -> conv2 -> pool2 -> fc1 -> fc2 -> fc3
# ---------------------------------------------------------------------------
def _lenet_kernel(x_ref, t1_ref, b1_ref, t2_ref, b2_ref,
                  w1_ref, fb1_ref, w2_ref, fb2_ref, w3_ref, fb3_ref,
                  out_ref):
    B = x_ref.shape[0]

    def bmm(lhs, rhs):
        # lhs: (B, M, K), rhs: (K, N) -> (B, M, N), f32 accumulation on MXU.
        rhs_b = jnp.broadcast_to(rhs, (B,) + rhs.shape)
        return jnp.einsum("bmk,bkn->bmn", lhs, rhs_b,
                          preferred_element_type=jnp.float32)

    x = x_ref[...]            # (B, 4, 8, 96): [b, row%4, row//4, w*3+c]
    b1 = b1_ref[...]          # (1, 256)
    b2 = b2_ref[...]          # (1, 256)

    # ---- conv1 (5x5, 3->6) + ReLU.  Group s holds conv rows 4q+s, q=0..6. --
    def conv1_rows(s):
        acc = None
        for kh in range(5):
            r, off = (s + kh) % 4, (s + kh) // 4
            t = bmm(x[:, r, off:off + 7, :], t1_ref[kh])      # (B, 7, 256)
            acc = t if acc is None else acc + t
        return jnp.maximum(acc + b1, 0.0)

    a0, a1, a2, a3 = (conv1_rows(0), conv1_rows(1),
                      conv1_rows(2), conv1_rows(3))
    # 2x2 max pool: height pairs are (a0,a1)/(a2,a3); width pairs sit in the
    # two 128-lane halves of the Toeplitz output.
    m_e, m_o = jnp.maximum(a0, a1), jnp.maximum(a2, a3)
    p_e = jnp.maximum(m_e[:, :, :_HALF], m_e[:, :, _HALF:])   # pool rows 0,2,..
    p_o = jnp.maximum(m_o[:, :, :_HALF], m_o[:, :, _HALF:])   # pool rows 1,3,..

    # ---- conv2 (5x5, 6->16) + ReLU.  Parity group holds conv rows 2m+par. --
    def conv2_rows(parity):
        acc = None
        for kh in range(5):
            par, off = (kh + parity) % 2, (kh + parity) // 2
            src = p_e if par == 0 else p_o
            t = bmm(src[:, off:off + 5, :], t2_ref[kh])        # (B, 5, 256)
            acc = t if acc is None else acc + t
        return jnp.maximum(acc + b2, 0.0)

    c_e, c_o = conv2_rows(0), conv2_rows(1)
    m2 = jnp.maximum(c_e, c_o)
    pool2 = jnp.maximum(m2[:, :, :_HALF], m2[:, :, _HALF:])    # (B, 5, 128)

    # ---- fc1 (400->120) as 5 row-matmuls against the permuted weight, then
    # fc2 / fc3, all still in VMEM. ----------------------------------------
    acc = None
    for h in range(5):
        t = bmm(pool2[:, h:h + 1, :], w1_ref[h])               # (B, 1, 120)
        acc = t if acc is None else acc + t
    h1 = jnp.maximum(acc + fb1_ref[...], 0.0)
    h2 = jnp.maximum(bmm(h1, w2_ref[...]) + fb2_ref[...], 0.0)  # (B, 1, 84)
    y = bmm(h2, w3_ref[...]) + fb3_ref[...]                     # (B, 1, 10)
    out_ref[...] = y.astype(out_ref.dtype)


# ---------------------------------------------------------------------------
# One-time weight preprocessing (hoisted out of the forward path)
# ---------------------------------------------------------------------------
def _conv_toeplitz(w_oihw, w_in, half):
    """(KH, w_in*C, 2*half); column n = (ow%2)*half + (ow//2)*O + o."""
    O, C, KH, KW = w_oihw.shape
    ow = w_in - KW + 1
    wt = jnp.transpose(w_oihw, (2, 3, 1, 0))                   # (KH, KW, C, O)
    kw = np.arange(w_in)[:, None] - np.arange(ow)[None, :]     # (w_in, ow)
    valid = jnp.asarray((kw >= 0) & (kw < KW), wt.dtype)
    kw_c = np.clip(kw, 0, KW - 1)
    t = wt[:, kw_c, :, :] * valid[None, :, :, None, None]      # (KH,w_in,ow,C,O)
    t = jnp.transpose(t, (0, 1, 3, 2, 4))                      # (KH,w_in,C,ow,O)
    t = t.reshape(KH, w_in, C, ow // 2, 2, O)
    t = jnp.transpose(t, (0, 1, 2, 4, 3, 5))                   # parity before j
    t = t.reshape(KH, w_in * C, 2, (ow // 2) * O)
    t = jnp.pad(t, ((0, 0), (0, 0), (0, 0), (0, half - (ow // 2) * O)))
    return t.reshape(KH, w_in * C, 2 * half)


def _conv_bias_row(b, ow, half):
    row = jnp.pad(jnp.tile(b, ow // 2), (0, half - (ow // 2) * b.shape[0]))
    return jnp.tile(row, 2).reshape(1, 2 * half)


def prepare_params(p):
    f32 = jnp.float32
    t1 = _conv_toeplitz(p["conv1_w"].astype(f32), 32, _HALF)    # (5, 96, 256)
    t2 = _conv_toeplitz(p["conv2_w"].astype(f32), 14, _HALF)    # (5, 84, 256)
    t2 = jnp.pad(t2, ((0, 0), (0, _HALF - t2.shape[1]), (0, 0)))  # K -> 128
    # fc1 weight: fold the PyTorch NCHW flatten order into a (h, w*16+c) -> n
    # weight so no data permutation is needed in the kernel.
    w1 = jnp.transpose(p["fc1_w"].astype(f32).reshape(120, 16, 5, 5),
                       (2, 3, 1, 0)).reshape(5, 80, 120)
    w1 = jnp.pad(w1, ((0, 0), (0, _HALF - 80), (0, 0)))          # K -> 128
    return {
        "t1": t1, "b1": _conv_bias_row(p["conv1_b"].astype(f32), 28, _HALF),
        "t2": t2, "b2": _conv_bias_row(p["conv2_b"].astype(f32), 10, _HALF),
        "w1": w1, "fb1": p["fc1_b"].astype(f32).reshape(1, 120),
        "w2": p["fc2_w"].astype(f32).T, "fb2": p["fc2_b"].astype(f32).reshape(1, 84),
        "w3": p["fc3_w"].astype(f32).T, "fb3": p["fc3_b"].astype(f32).reshape(1, 10),
    }


# ---------------------------------------------------------------------------
# Forward wrapper: one small input relayout + a single pallas_call
# ---------------------------------------------------------------------------
@jax.jit
def net_forward(x_nchw, kp):
    B = x_nchw.shape[0]
    x = jnp.transpose(x_nchw.astype(jnp.float32), (0, 2, 3, 1))  # NHWC
    x = x.reshape(B, 32, 32 * 3)                                  # (B, H, W*C)
    x = x.reshape(B, 8, 4, 96).transpose(0, 2, 1, 3)              # (B, 4, 8, 96)

    args = (x, kp["t1"], kp["b1"], kp["t2"], kp["b2"],
            kp["w1"], kp["fb1"], kp["w2"], kp["fb2"], kp["w3"], kp["fb3"])

    def full(a):
        return pl.BlockSpec(a.shape, lambda i, n=a.ndim: (0,) * n)

    out = pl.pallas_call(
        _lenet_kernel,
        out_shape=jax.ShapeDtypeStruct((B, 1, 10), jnp.float32),
        grid=(1,),
        in_specs=[full(a) for a in args],
        out_specs=pl.BlockSpec((B, 1, 10), lambda i: (0, 0, 0)),
        compiler_params=pltpu.CompilerParams(
            dimension_semantics=("arbitrary",)),
    )(*args)
    return out.reshape(B, 10)


# ---------------------------------------------------------------------------
# Pure-JAX reference (for in-script correctness check)
# ---------------------------------------------------------------------------
def ref_forward(x, p):
    def conv(x, w, b):
        y = jax.lax.conv_general_dilated(
            x, w, (1, 1), "VALID", dimension_numbers=("NCHW", "OIHW", "NCHW"))
        return jax.nn.relu(y + b[None, :, None, None])

    def pool(x):
        return jax.lax.reduce_window(
            x, -jnp.inf, jax.lax.max, (1, 1, 2, 2), (1, 1, 2, 2), "VALID")

    x = pool(conv(x, p["conv1_w"], p["conv1_b"]))
    x = pool(conv(x, p["conv2_w"], p["conv2_b"]))
    x = x.reshape(x.shape[0], -1)
    x = jax.nn.relu(x @ p["fc1_w"].T + p["fc1_b"])
    x = jax.nn.relu(x @ p["fc2_w"].T + p["fc2_b"])
    return x @ p["fc3_w"].T + p["fc3_b"]


# ---------------------------------------------------------------------------
# Deterministic parameter init (shapes from Net.__init__; synthetic weights)
# ---------------------------------------------------------------------------
def init_params(key):
    def uniform(key, shape, fan_in):
        bound = 1.0 / jnp.sqrt(jnp.float32(fan_in))
        return jax.random.uniform(key, shape, jnp.float32, -bound, bound)

    ks = jax.random.split(key, 10)
    return {
        "conv1_w": uniform(ks[0], (6, 3, 5, 5), 3 * 5 * 5),
        "conv1_b": uniform(ks[1], (6,), 3 * 5 * 5),
        "conv2_w": uniform(ks[2], (16, 6, 5, 5), 6 * 5 * 5),
        "conv2_b": uniform(ks[3], (16,), 6 * 5 * 5),
        "fc1_w": uniform(ks[4], (120, 400), 400),
        "fc1_b": uniform(ks[5], (120,), 400),
        "fc2_w": uniform(ks[6], (84, 120), 120),
        "fc2_b": uniform(ks[7], (84,), 120),
        "fc3_w": uniform(ks[8], (10, 84), 84),
        "fc3_b": uniform(ks[9], (10,), 84),
    }


if __name__ == "__main__":
    root = jax.random.PRNGKey(0)
    k_x, k_p = jax.random.split(root)
    # Module implies 32x32 spatial (16*5*5 flatten); keep batch small.
    x = jax.random.normal(k_x, (2, 3, 32, 32), jnp.float32)
    params = init_params(k_p)
    kparams = jax.tree_util.tree_map(jax.block_until_ready,
                                     prepare_params(params))  # one-time prep

    out = jax.block_until_ready(net_forward(x, kparams))
    ref = jax.block_until_ready(ref_forward(x, params))

    assert out.shape == (2, 10), out.shape
    assert jnp.allclose(out, ref, rtol=1e-3, atol=1e-3), (
        float(jnp.max(jnp.abs(out - ref))))
    print("KERNEL_OK")
</pallas_src>

<mosaic_0001>
module attributes {stable_mosaic.version = 11 : i64} {
  func.func @_lenet_kernel(%arg0: i32, %arg1: memref<2x4x8x96xf32, #tpu.memory_space<vmem>>, %arg2: memref<5x96x256xf32, #tpu.memory_space<vmem>>, %arg3: memref<1x256xf32, #tpu.memory_space<vmem>>, %arg4: memref<5x128x256xf32, #tpu.memory_space<vmem>>, %arg5: memref<1x256xf32, #tpu.memory_space<vmem>>, %arg6: memref<5x128x120xf32, #tpu.memory_space<vmem>>, %arg7: memref<1x120xf32, #tpu.memory_space<vmem>>, %arg8: memref<120x84xf32, #tpu.memory_space<vmem>>, %arg9: memref<1x84xf32, #tpu.memory_space<vmem>>, %arg10: memref<84x10xf32, #tpu.memory_space<vmem>>, %arg11: memref<1x10xf32, #tpu.memory_space<vmem>>, %arg12: memref<2x1x10xf32, #tpu.memory_space<vmem>>) attributes {dimension_semantics = [#tpu.dimension_semantics<arbitrary>], iteration_bounds = array<i64: 1>, scalar_prefetch = 0 : i64, scratch_operands = 0 : i64, tpu.core_type = #tpu.core_type<tc>, window_params = [{pipeline_mode = #tpu.pipeline_mode<synchronous>, transform_indices = @transform_0, window_bounds = array<i64: 2, 4, 8, 96>}, {pipeline_mode = #tpu.pipeline_mode<synchronous>, transform_indices = @transform_1, window_bounds = array<i64: 5, 96, 256>}, {pipeline_mode = #tpu.pipeline_mode<synchronous>, transform_indices = @transform_2, window_bounds = array<i64: 1, 256>}, {pipeline_mode = #tpu.pipeline_mode<synchronous>, transform_indices = @transform_3, window_bounds = array<i64: 5, 128, 256>}, {pipeline_mode = #tpu.pipeline_mode<synchronous>, transform_indices = @transform_4, window_bounds = array<i64: 1, 256>}, {pipeline_mode = #tpu.pipeline_mode<synchronous>, transform_indices = @transform_5, window_bounds = array<i64: 5, 128, 120>}, {pipeline_mode = #tpu.pipeline_mode<synchronous>, transform_indices = @transform_6, window_bounds = array<i64: 1, 120>}, {pipeline_mode = #tpu.pipeline_mode<synchronous>, transform_indices = @transform_7, window_bounds = array<i64: 120, 84>}, {pipeline_mode = #tpu.pipeline_mode<synchronous>, transform_indices = @transform_8, window_bounds = array<i64: 1, 84>}, {pipeline_mode = #tpu.pipeline_mode<synchronous>, transform_indices = @transform_9, window_bounds = array<i64: 84, 10>}, {pipeline_mode = #tpu.pipeline_mode<synchronous>, transform_indices = @transform_10, window_bounds = array<i64: 1, 10>}, {pipeline_mode = #tpu.pipeline_mode<synchronous>, transform_indices = @transform_11, window_bounds = array<i64: 2, 1, 10>}]} {
    %c0 = arith.constant 0 : index
    %c0_0 = arith.constant 0 : index
    %c0_1 = arith.constant 0 : index
    %c0_2 = arith.constant 0 : index
    %0 = vector.load %arg1[%c0, %c0_0, %c0_1, %c0_2] : memref<2x4x8x96xf32, #tpu.memory_space<vmem>>, vector<2x4x8x96xf32>
    %c0_3 = arith.constant 0 : index
    %c0_4 = arith.constant 0 : index
    %1 = vector.load %arg3[%c0_3, %c0_4] : memref<1x256xf32, #tpu.memory_space<vmem>>, vector<1x256xf32>
    %c0_5 = arith.constant 0 : index
    %c0_6 = arith.constant 0 : index
    %2 = vector.load %arg5[%c0_5, %c0_6] : memref<1x256xf32, #tpu.memory_space<vmem>>, vector<1x256xf32>
    %3 = vector.extract_strided_slice %0 {offsets = [0, 0, 0, 0], sizes = [2, 1, 7, 96], strides = [1, 1, 1, 1]} : vector<2x4x8x96xf32> to vector<2x1x7x96xf32>
    %4 = vector.shape_cast %3 : vector<2x1x7x96xf32> to vector<2x7x96xf32>
    %c0_7 = arith.constant 0 : index
    %c0_8 = arith.constant 0 : index
    %c0_9 = arith.constant 0 : index
    %5 = vector.load %arg2[%c0_7, %c0_8, %c0_9] : memref<5x96x256xf32, #tpu.memory_space<vmem>>, vector<1x96x256xf32>
    %6 = vector.shape_cast %5 : vector<1x96x256xf32> to vector<96x256xf32>
    %7 = vector.shape_cast %6 : vector<96x256xf32> to vector<1x96x256xf32>
    %8 = vector.broadcast %7 : vector<1x96x256xf32> to vector<2x96x256xf32>
    "tpu.trace_start"() <{level = 10 : i32, message = "bmk,bkn->bmn"}> : () -> ()
    %cst = arith.constant dense<0.000000e+00> : vector<2x7x256xf32>
    %9 = tpu.matmul %4, %8, %cst {dimension_numbers = #tpu.dot_dimension_numbers<[2], [1], [1], [2], [0, 0, 0, 1, 1, 2], [0], [0]>} : vector<2x7x96xf32>, vector<2x96x256xf32>, vector<2x7x256xf32> -> vector<2x7x256xf32>
    "tpu.trace_stop"() : () -> ()
    %10 = vector.extract_strided_slice %0 {offsets = [0, 1, 0, 0], sizes = [2, 1, 7, 96], strides = [1, 1, 1, 1]} : vector<2x4x8x96xf32> to vector<2x1x7x96xf32>
    %11 = vector.shape_cast %10 : vector<2x1x7x96xf32> to vector<2x7x96xf32>
    %c1 = arith.constant 1 : index
    %c0_10 = arith.constant 0 : index
    %c0_11 = arith.constant 0 : index
    %12 = vector.load %arg2[%c1, %c0_10, %c0_11] : memref<5x96x256xf32, #tpu.memory_space<vmem>>, vector<1x96x256xf32>
    %13 = vector.shape_cast %12 : vector<1x96x256xf32> to vector<96x256xf32>
    %14 = vector.shape_cast %13 : vector<96x256xf32> to vector<1x96x256xf32>
    %15 = vector.broadcast %14 : vector<1x96x256xf32> to vector<2x96x256xf32>
    "tpu.trace_start"() <{level = 10 : i32, message = "bmk,bkn->bmn"}> : () -> ()
    %cst_12 = arith.constant dense<0.000000e+00> : vector<2x7x256xf32>
    %16 = tpu.matmul %11, %15, %cst_12 {dimension_numbers = #tpu.dot_dimension_numbers<[2], [1], [1], [2], [0, 0, 0, 1, 1, 2], [0], [0]>} : vector<2x7x96xf32>, vector<2x96x256xf32>, vector<2x7x256xf32> -> vector<2x7x256xf32>
    "tpu.trace_stop"() : () -> ()
    %17 = arith.addf %9, %16 : vector<2x7x256xf32>
    %18 = vector.extract_strided_slice %0 {offsets = [0, 2, 0, 0], sizes = [2, 1, 7, 96], strides = [1, 1, 1, 1]} : vector<2x4x8x96xf32> to vector<2x1x7x96xf32>
    %19 = vector.shape_cast %18 : vector<2x1x7x96xf32> to vector<2x7x96xf32>
    %c2 = arith.constant 2 : index
    %c0_13 = arith.constant 0 : index
    %c0_14 = arith.constant 0 : index
    %20 = vector.load %arg2[%c2, %c0_13, %c0_14] : memref<5x96x256xf32, #tpu.memory_space<vmem>>, vector<1x96x256xf32>
    %21 = vector.shape_cast %20 : vector<1x96x256xf32> to vector<96x256xf32>
    %22 = vector.shape_cast %21 : vector<96x256xf32> to vector<1x96x256xf32>
    %23 = vector.broadcast %22 : vector<1x96x256xf32> to vector<2x96x256xf32>
    "tpu.trace_start"() <{level = 10 : i32, message = "bmk,bkn->bmn"}> : () -> ()
    %cst_15 = arith.constant dense<0.000000e+00> : vector<2x7x256xf32>
    %24 = tpu.matmul %19, %23, %cst_15 {dimension_numbers = #tpu.dot_dimension_numbers<[2], [1], [1], [2], [0, 0, 0, 1, 1, 2], [0], [0]>} : vector<2x7x96xf32>, vector<2x96x256xf32>, vector<2x7x256xf32> -> vector<2x7x256xf32>
    "tpu.trace_stop"() : () -> ()
    %25 = arith.addf %17, %24 : vector<2x7x256xf32>
    %26 = vector.extract_strided_slice %0 {offsets = [0, 3, 0, 0], sizes = [2, 1, 7, 96], strides = [1, 1, 1, 1]} : vector<2x4x8x96xf32> to vector<2x1x7x96xf32>
    %27 = vector.shape_cast %26 : vector<2x1x7x96xf32> to vector<2x7x96xf32>
    %c3 = arith.constant 3 : index
    %c0_16 = arith.constant 0 : index
    %c0_17 = arith.constant 0 : index
    %28 = vector.load %arg2[%c3, %c0_16, %c0_17] : memref<5x96x256xf32, #tpu.memory_space<vmem>>, vector<1x96x256xf32>
    %29 = vector.shape_cast %28 : vector<1x96x256xf32> to vector<96x256xf32>
    %30 = vector.shape_cast %29 : vector<96x256xf32> to vector<1x96x256xf32>
    %31 = vector.broadcast %30 : vector<1x96x256xf32> to vector<2x96x256xf32>
    "tpu.trace_start"() <{level = 10 : i32, message = "bmk,bkn->bmn"}> : () -> ()
    %cst_18 = arith.constant dense<0.000000e+00> : vector<2x7x256xf32>
    %32 = tpu.matmul %27, %31, %cst_18 {dimension_numbers = #tpu.dot_dimension_numbers<[2], [1], [1], [2], [0, 0, 0, 1, 1, 2], [0], [0]>} : vector<2x7x96xf32>, vector<2x96x256xf32>, vector<2x7x256xf32> -> vector<2x7x256xf32>
    "tpu.trace_stop"() : () -> ()
    %33 = arith.addf %25, %32 : vector<2x7x256xf32>
    %34 = vector.extract_strided_slice %0 {offsets = [0, 0, 1, 0], sizes = [2, 1, 7, 96], strides = [1, 1, 1, 1]} : vector<2x4x8x96xf32> to vector<2x1x7x96xf32>
    %35 = vector.shape_cast %34 : vector<2x1x7x96xf32> to vector<2x7x96xf32>
    %c4 = arith.constant 4 : index
    %c0_19 = arith.constant 0 : index
    %c0_20 = arith.constant 0 : index
    %36 = vector.load %arg2[%c4, %c0_19, %c0_20] : memref<5x96x256xf32, #tpu.memory_space<vmem>>, vector<1x96x256xf32>
    %37 = vector.shape_cast %36 : vector<1x96x256xf32> to vector<96x256xf32>
    %38 = vector.shape_cast %37 : vector<96x256xf32> to vector<1x96x256xf32>
    %39 = vector.broadcast %38 : vector<1x96x256xf32> to vector<2x96x256xf32>
    "tpu.trace_start"() <{level = 10 : i32, message = "bmk,bkn->bmn"}> : () -> ()
    %cst_21 = arith.constant dense<0.000000e+00> : vector<2x7x256xf32>
    %40 = tpu.matmul %35, %39, %cst_21 {dimension_numbers = #tpu.dot_dimension_numbers<[2], [1], [1], [2], [0, 0, 0, 1, 1, 2], [0], [0]>} : vector<2x7x96xf32>, vector<2x96x256xf32>, vector<2x7x256xf32> -> vector<2x7x256xf32>
    "tpu.trace_stop"() : () -> ()
    %41 = arith.addf %33, %40 : vector<2x7x256xf32>
    %42 = vector.shape_cast %1 : vector<1x256xf32> to vector<1x1x256xf32>
    %43 = vector.broadcast %42 : vector<1x1x256xf32> to vector<2x7x256xf32>
    %44 = arith.addf %41, %43 : vector<2x7x256xf32>
    %cst_22 = arith.constant 0.000000e+00 : f32
    %45 = vector.broadcast %cst_22 : f32 to vector<2x7x256xf32>
    %46 = arith.maximumf %44, %45 : vector<2x7x256xf32>
    %47 = vector.extract_strided_slice %0 {offsets = [0, 1, 0, 0], sizes = [2, 1, 7, 96], strides = [1, 1, 1, 1]} : vector<2x4x8x96xf32> to vector<2x1x7x96xf32>
    %48 = vector.shape_cast %47 : vector<2x1x7x96xf32> to vector<2x7x96xf32>
    %c0_23 = arith.constant 0 : index
    %c0_24 = arith.constant 0 : index
    %c0_25 = arith.constant 0 : index
    %49 = vector.load %arg2[%c0_23, %c0_24, %c0_25] : memref<5x96x256xf32, #tpu.memory_space<vmem>>, vector<1x96x256xf32>
    %50 = vector.shape_cast %49 : vector<1x96x256xf32> to vector<96x256xf32>
    %51 = vector.shape_cast %50 : vector<96x256xf32> to vector<1x96x256xf32>
    %52 = vector.broadcast %51 : vector<1x96x256xf32> to vector<2x96x256xf32>
    "tpu.trace_start"() <{level = 10 : i32, message = "bmk,bkn->bmn"}> : () -> ()
    %cst_26 = arith.constant dense<0.000000e+00> : vector<2x7x256xf32>
    %53 = tpu.matmul %48, %52, %cst_26 {dimension_numbers = #tpu.dot_dimension_numbers<[2], [1], [1], [2], [0, 0, 0, 1, 1, 2], [0], [0]>} : vector<2x7x96xf32>, vector<2x96x256xf32>, vector<2x7x256xf32> -> vector<2x7x256xf32>
    "tpu.trace_stop"() : () -> ()
    %54 = vector.extract_strided_slice %0 {offsets = [0, 2, 0, 0], sizes = [2, 1, 7, 96], strides = [1, 1, 1, 1]} : vector<2x4x8x96xf32> to vector<2x1x7x96xf32>
    %55 = vector.shape_cast %54 : vector<2x1x7x96xf32> to vector<2x7x96xf32>
    %c1_27 = arith.constant 1 : index
    %c0_28 = arith.constant 0 : index
    %c0_29 = arith.constant 0 : index
    %56 = vector.load %arg2[%c1_27, %c0_28, %c0_29] : memref<5x96x256xf32, #tpu.memory_space<vmem>>, vector<1x96x256xf32>
    %57 = vector.shape_cast %56 : vector<1x96x256xf32> to vector<96x256xf32>
    %58 = vector.shape_cast %57 : vector<96x256xf32> to vector<1x96x256xf32>
    %59 = vector.broadcast %58 : vector<1x96x256xf32> to vector<2x96x256xf32>
    "tpu.trace_start"() <{level = 10 : i32, message = "bmk,bkn->bmn"}> : () -> ()
    %cst_30 = arith.constant dense<0.000000e+00> : vector<2x7x256xf32>
    %60 = tpu.matmul %55, %59, %cst_30 {dimension_numbers = #tpu.dot_dimension_numbers<[2], [1], [1], [2], [0, 0, 0, 1, 1, 2], [0], [0]>} : vector<2x7x96xf32>, vector<2x96x256xf32>, vector<2x7x256xf32> -> vector<2x7x256xf32>
    "tpu.trace_stop"() : () -> ()
    %61 = arith.addf %53, %60 : vector<2x7x256xf32>
    %62 = vector.extract_strided_slice %0 {offsets = [0, 3, 0, 0], sizes = [2, 1, 7, 96], strides = [1, 1, 1, 1]} : vector<2x4x8x96xf32> to vector<2x1x7x96xf32>
    %63 = vector.shape_cast %62 : vector<2x1x7x96xf32> to vector<2x7x96xf32>
    %c2_31 = arith.constant 2 : index
    %c0_32 = arith.constant 0 : index
    %c0_33 = arith.constant 0 : index
    %64 = vector.load %arg2[%c2_31, %c0_32, %c0_33] : memref<5x96x256xf32, #tpu.memory_space<vmem>>, vector<1x96x256xf32>
    %65 = vector.shape_cast %64 : vector<1x96x256xf32> to vector<96x256xf32>
    %66 = vector.shape_cast %65 : vector<96x256xf32> to vector<1x96x256xf32>
    %67 = vector.broadcast %66 : vector<1x96x256xf32> to vector<2x96x256xf32>
    "tpu.trace_start"() <{level = 10 : i32, message = "bmk,bkn->bmn"}> : () -> ()
    %cst_34 = arith.constant dense<0.000000e+00> : vector<2x7x256xf32>
    %68 = tpu.matmul %63, %67, %cst_34 {dimension_numbers = #tpu.dot_dimension_numbers<[2], [1], [1], [2], [0, 0, 0, 1, 1, 2], [0], [0]>} : vector<2x7x96xf32>, vector<2x96x256xf32>, vector<2x7x256xf32> -> vector<2x7x256xf32>
    "tpu.trace_stop"() : () -> ()
    %69 = arith.addf %61, %68 : vector<2x7x256xf32>
    %70 = vector.extract_strided_slice %0 {offsets = [0, 0, 1, 0], sizes = [2, 1, 7, 96], strides = [1, 1, 1, 1]} : vector<2x4x8x96xf32> to vector<2x1x7x96xf32>
    %71 = vector.shape_cast %70 : vector<2x1x7x96xf32> to vector<2x7x96xf32>
    %c3_35 = arith.constant 3 : index
    %c0_36 = arith.constant 0 : index
    %c0_37 = arith.constant 0 : index
    %72 = vector.load %arg2[%c3_35, %c0_36, %c0_37] : memref<5x96x256xf32, #tpu.memory_space<vmem>>, vector<1x96x256xf32>
    %73 = vector.shape_cast %72 : vector<1x96x256xf32> to vector<96x256xf32>
    %74 = vector.shape_cast %73 : vector<96x256xf32> to vector<1x96x256xf32>
    %75 = vector.broadcast %74 : vector<1x96x256xf32> to vector<2x96x256xf32>
    "tpu.trace_start"() <{level = 10 : i32, message = "bmk,bkn->bmn"}> : () -> ()
    %cst_38 = arith.constant dense<0.000000e+00> : vector<2x7x256xf32>
    %76 = tpu.matmul %71, %75, %cst_38 {dimension_numbers = #tpu.dot_dimension_numbers<[2], [1], [1], [2], [0, 0, 0, 1, 1, 2], [0], [0]>} : vector<2x7x96xf32>, vector<2x96x256xf32>, vector<2x7x256xf32> -> vector<2x7x256xf32>
    "tpu.trace_stop"() : () -> ()
    %77 = arith.addf %69, %76 : vector<2x7x256xf32>
    %78 = vector.extract_strided_slice %0 {offsets = [0, 1, 1, 0], sizes = [2, 1, 7, 96], strides = [1, 1, 1, 1]} : vector<2x4x8x96xf32> to vector<2x1x7x96xf32>
    %79 = vector.shape_cast %78 : vector<2x1x7x96xf32> to vector<2x7x96xf32>
    %c4_39 = arith.constant 4 : index
    %c0_40 = arith.constant 0 : index
    %c0_41 = arith.constant 0 : index
    %80 = vector.load %arg2[%c4_39, %c0_40, %c0_41] : memref<5x96x256xf32, #tpu.memory_space<vmem>>, vector<1x96x256xf32>
    %81 = vector.shape_cast %80 : vector<1x96x256xf32> to vector<96x256xf32>
    %82 = vector.shape_cast %81 : vector<96x256xf32> to vector<1x96x256xf32>
    %83 = vector.broadcast %82 : vector<1x96x256xf32> to vector<2x96x256xf32>
    "tpu.trace_start"() <{level = 10 : i32, message = "bmk,bkn->bmn"}> : () -> ()
    %cst_42 = arith.constant dense<0.000000e+00> : vector<2x7x256xf32>
    %84 = tpu.matmul %79, %83, %cst_42 {dimension_numbers = #tpu.dot_dimension_numbers<[2], [1], [1], [2], [0, 0, 0, 1, 1, 2], [0], [0]>} : vector<2x7x96xf32>, vector<2x96x256xf32>, vector<2x7x256xf32> -> vector<2x7x256xf32>
    "tpu.trace_stop"() : () -> ()
    %85 = arith.addf %77, %84 : vector<2x7x256xf32>
    %86 = vector.shape_cast %1 : vector<1x256xf32> to vector<1x1x256xf32>
    %87 = vector.broadcast %86 : vector<1x1x256xf32> to vector<2x7x256xf32>
    %88 = arith.addf %85, %87 : vector<2x7x256xf32>
    %cst_43 = arith.constant 0.000000e+00 : f32
    %89 = vector.broadcast %cst_43 : f32 to vector<2x7x256xf32>
    %90 = arith.maximumf %88, %89 : vector<2x7x256xf32>
    %91 = vector.extract_strided_slice %0 {offsets = [0, 2, 0, 0], sizes = [2, 1, 7, 96], strides = [1, 1, 1, 1]} : vector<2x4x8x96xf32> to vector<2x1x7x96xf32>
    %92 = vector.shape_cast %91 : vector<2x1x7x96xf32> to vector<2x7x96xf32>
    %c0_44 = arith.constant 0 : index
    %c0_45 = arith.constant 0 : index
    %c0_46 = arith.constant 0 : index
    %93 = vector.load %arg2[%c0_44, %c0_45, %c0_46] : memref<5x96x256xf32, #tpu.memory_space<vmem>>, vector<1x96x256xf32>
    %94 = vector.shape_cast %93 : vector<1x96x256xf32> to vector<96x256xf32>
    %95 = vector.shape_cast %94 : vector<96x256xf32> to vector<1x96x256xf32>
    %96 = vector.broadcast %95 : vector<1x96x256xf32> to vector<2x96x256xf32>
    "tpu.trace_start"() <{level = 10 : i32, message = "bmk,bkn->bmn"}> : () -> ()
    %cst_47 = arith.constant dense<0.000000e+00> : vector<2x7x256xf32>
    %97 = tpu.matmul %92, %96, %cst_47 {dimension_numbers = #tpu.dot_dimension_numbers<[2], [1], [1], [2], [0, 0, 0, 1, 1, 2], [0], [0]>} : vector<2x7x96xf32>, vector<2x96x256xf32>, vector<2x7x256xf32> -> vector<2x7x256xf32>
    "tpu.trace_stop"() : () -> ()
    %98 = vector.extract_strided_slice %0 {offsets = [0, 3, 0, 0], sizes = [2, 1, 7, 96], strides = [1, 1, 1, 1]} : vector<2x4x8x96xf32> to vector<2x1x7x96xf32>
    %99 = vector.shape_cast %98 : vector<2x1x7x96xf32> to vector<2x7x96xf32>
    %c1_48 = arith.constant 1 : index
    %c0_49 = arith.constant 0 : index
    %c0_50 = arith.constant 0 : index
    %100 = vector.load %arg2[%c1_48, %c0_49, %c0_50] : memref<5x96x256xf32, #tpu.memory_space<vmem>>, vector<1x96x256xf32>
    %101 = vector.shape_cast %100 : vector<1x96x256xf32> to vector<96x256xf32>
    %102 = vector.shape_cast %101 : vector<96x256xf32> to vector<1x96x256xf32>
    %103 = vector.broadcast %102 : vector<1x96x256xf32> to vector<2x96x256xf32>
    "tpu.trace_start"() <{level = 10 : i32, message = "bmk,bkn->bmn"}> : () -> ()
    %cst_51 = arith.constant dense<0.000000e+00> : vector<2x7x256xf32>
    %104 = tpu.matmul %99, %103, %cst_51 {dimension_numbers = #tpu.dot_dimension_numbers<[2], [1], [1], [2], [0, 0, 0, 1, 1, 2], [0], [0]>} : vector<2x7x96xf32>, vector<2x96x256xf32>, vector<2x7x256xf32> -> vector<2x7x256xf32>
    "tpu.trace_stop"() : () -> ()
    %105 = arith.addf %97, %104 : vector<2x7x256xf32>
    %106 = vector.extract_strided_slice %0 {offsets = [0, 0, 1, 0], sizes = [2, 1, 7, 96], strides = [1, 1, 1, 1]} : vector<2x4x8x96xf32> to vector<2x1x7x96xf32>
    %107 = vector.shape_cast %106 : vector<2x1x7x96xf32> to vector<2x7x96xf32>
    %c2_52 = arith.constant 2 : index
    %c0_53 = arith.constant 0 : index
    %c0_54 = arith.constant 0 : index
    %108 = vector.load %arg2[%c2_52, %c0_53, %c0_54] : memref<5x96x256xf32, #tpu.memory_space<vmem>>, vector<1x96x256xf32>
    %109 = vector.shape_cast %108 : vector<1x96x256xf32> to vector<96x256xf32>
    %110 = vector.shape_cast %109 : vector<96x256xf32> to vector<1x96x256xf32>
    %111 = vector.broadcast %110 : vector<1x96x256xf32> to vector<2x96x256xf32>
    "tpu.trace_start"() <{level = 10 : i32, message = "bmk,bkn->bmn"}> : () -> ()
    %cst_55 = arith.constant dense<0.000000e+00> : vector<2x7x256xf32>
    %112 = tpu.matmul %107, %111, %cst_55 {dimension_numbers = #tpu.dot_dimension_numbers<[2], [1], [1], [2], [0, 0, 0, 1, 1, 2], [0], [0]>} : vector<2x7x96xf32>, vector<2x96x256xf32>, vector<2x7x256xf32> -> vector<2x7x256xf32>
    "tpu.trace_stop"() : () -> ()
    %113 = arith.addf %105, %112 : vector<2x7x256xf32>
    %114 = vector.extract_strided_slice %0 {offsets = [0, 1, 1, 0], sizes = [2, 1, 7, 96], strides = [1, 1, 1, 1]} : vector<2x4x8x96xf32> to vector<2x1x7x96xf32>
    %115 = vector.shape_cast %114 : vector<2x1x7x96xf32> to vector<2x7x96xf32>
    %c3_56 = arith.constant 3 : index
    %c0_57 = arith.constant 0 : index
    %c0_58 = arith.constant 0 : index
    %116 = vector.load %arg2[%c3_56, %c0_57, %c0_58] : memref<5x96x256xf32, #tpu.memory_space<vmem>>, vector<1x96x256xf32>
    %117 = vector.shape_cast %116 : vector<1x96x256xf32> to vector<96x256xf32>
    %118 = vector.shape_cast %117 : vector<96x256xf32> to vector<1x96x256xf32>
    %119 = vector.broadcast %118 : vector<1x96x256xf32> to vector<2x96x256xf32>
    "tpu.trace_start"() <{level = 10 : i32, message = "bmk,bkn->bmn"}> : () -> ()
    %cst_59 = arith.constant dense<0.000000e+00> : vector<2x7x256xf32>
    %120 = tpu.matmul %115, %119, %cst_59 {dimension_numbers = #tpu.dot_dimension_numbers<[2], [1], [1], [2], [0, 0, 0, 1, 1, 2], [0], [0]>} : vector<2x7x96xf32>, vector<2x96x256xf32>, vector<2x7x256xf32> -> vector<2x7x256xf32>
    "tpu.trace_stop"() : () -> ()
    %121 = arith.addf %113, %120 : vector<2x7x256xf32>
    %122 = vector.extract_strided_slice %0 {offsets = [0, 2, 1, 0], sizes = [2, 1, 7, 96], strides = [1, 1, 1, 1]} : vector<2x4x8x96xf32> to vector<2x1x7x96xf32>
    %123 = vector.shape_cast %122 : vector<2x1x7x96xf32> to vector<2x7x96xf32>
    %c4_60 = arith.constant 4 : index
    %c0_61 = arith.constant 0 : index
    %c0_62 = arith.constant 0 : index
    %124 = vector.load %arg2[%c4_60, %c0_61, %c0_62] : memref<5x96x256xf32, #tpu.memory_space<vmem>>, vector<1x96x256xf32>
    %125 = vector.shape_cast %124 : vector<1x96x256xf32> to vector<96x256xf32>
    %126 = vector.shape_cast %125 : vector<96x256xf32> to vector<1x96x256xf32>
    %127 = vector.broadcast %126 : vector<1x96x256xf32> to vector<2x96x256xf32>
    "tpu.trace_start"() <{level = 10 : i32, message = "bmk,bkn->bmn"}> : () -> ()
    %cst_63 = arith.constant dense<0.000000e+00> : vector<2x7x256xf32>
    %128 = tpu.matmul %123, %127, %cst_63 {dimension_numbers = #tpu.dot_dimension_numbers<[2], [1], [1], [2], [0, 0, 0, 1, 1, 2], [0], [0]>} : vector<2x7x96xf32>, vector<2x96x256xf32>, vector<2x7x256xf32> -> vector<2x7x256xf32>
    "tpu.trace_stop"() : () -> ()
    %129 = arith.addf %121, %128 : vector<2x7x256xf32>
    %130 = vector.shape_cast %1 : vector<1x256xf32> to vector<1x1x256xf32>
    %131 = vector.broadcast %130 : vector<1x1x256xf32> to vector<2x7x256xf32>
    %132 = arith.addf %129, %131 : vector<2x7x256xf32>
    %cst_64 = arith.constant 0.000000e+00 : f32
    %133 = vector.broadcast %cst_64 : f32 to vector<2x7x256xf32>
    %134 = arith.maximumf %132, %133 : vector<2x7x256xf32>
    %135 = vector.extract_strided_slice %0 {offsets = [0, 3, 0, 0], sizes = [2, 1, 7, 96], strides = [1, 1, 1, 1]} : vector<2x4x8x96xf32> to vector<2x1x7x96xf32>
    %136 = vector.shape_cast %135 : vector<2x1x7x96xf32> to vector<2x7x96xf32>
    %c0_65 = arith.constant 0 : index
    %c0_66 = arith.constant 0 : index
    %c0_67 = arith.constant 0 : index
    %137 = vector.load %arg2[%c0_65, %c0_66, %c0_67] : memref<5x96x256xf32, #tpu.memory_space<vmem>>, vector<1x96x256xf32>
    %138 = vector.shape_cast %137 : vector<1x96x256xf32> to vector<96x256xf32>
    %139 = vector.shape_cast %138 : vector<96x256xf32> to vector<1x96x256xf32>
    %140 = vector.broadcast %139 : vector<1x96x256xf32> to vector<2x96x256xf32>
    "tpu.trace_start"() <{level = 10 : i32, message = "bmk,bkn->bmn"}> : () -> ()
    %cst_68 = arith.constant dense<0.000000e+00> : vector<2x7x256xf32>
    %141 = tpu.matmul %136, %140, %cst_68 {dimension_numbers = #tpu.dot_dimension_numbers<[2], [1], [1], [2], [0, 0, 0, 1, 1, 2], [0], [0]>} : vector<2x7x96xf32>, vector<2x96x256xf32>, vector<2x7x256xf32> -> vector<2x7x256xf32>
    "tpu.trace_stop"() : () -> ()
    %142 = vector.extract_strided_slice %0 {offsets = [0, 0, 1, 0], sizes = [2, 1, 7, 96], strides = [1, 1, 1, 1]} : vector<2x4x8x96xf32> to vector<2x1x7x96xf32>
    %143 = vector.shape_cast %142 : vector<2x1x7x96xf32> to vector<2x7x96xf32>
    %c1_69 = arith.constant 1 : index
    %c0_70 = arith.constant 0 : index
    %c0_71 = arith.constant 0 : index
    %144 = vector.load %arg2[%c1_69, %c0_70, %c0_71] : memref<5x96x256xf32, #tpu.memory_space<vmem>>, vector<1x96x256xf32>
    %145 = vector.shape_cast %144 : vector<1x96x256xf32> to vector<96x256xf32>
    %146 = vector.shape_cast %145 : vector<96x256xf32> to vector<1x96x256xf32>
    %147 = vector.broadcast %146 : vector<1x96x256xf32> to vector<2x96x256xf32>
    "tpu.trace_start"() <{level = 10 : i32, message = "bmk,bkn->bmn"}> : () -> ()
    %cst_72 = arith.constant dense<0.000000e+00> : vector<2x7x256xf32>
    %148 = tpu.matmul %143, %147, %cst_72 {dimension_numbers = #tpu.dot_dimension_numbers<[2], [1], [1], [2], [0, 0, 0, 1, 1, 2], [0], [0]>} : vector<2x7x96xf32>, vector<2x96x256xf32>, vector<2x7x256xf32> -> vector<2x7x256xf32>
    "tpu.trace_stop"() : () -> ()
    %149 = arith.addf %141, %148 : vector<2x7x256xf32>
    %150 = vector.extract_strided_slice %0 {offsets = [0, 1, 1, 0], sizes = [2, 1, 7, 96], strides = [1, 1, 1, 1]} : vector<2x4x8x96xf32> to vector<2x1x7x96xf32>
    %151 = vector.shape_cast %150 : vector<2x1x7x96xf32> to vector<2x7x96xf32>
    %c2_73 = arith.constant 2 : index
    %c0_74 = arith.constant 0 : index
    %c0_75 = arith.constant 0 : index
    %152 = vector.load %arg2[%c2_73, %c0_74, %c0_75] : memref<5x96x256xf32, #tpu.memory_space<vmem>>, vector<1x96x256xf32>
    %153 = vector.shape_cast %152 : vector<1x96x256xf32> to vector<96x256xf32>
    %154 = vector.shape_cast %153 : vector<96x256xf32> to vector<1x96x256xf32>
    %155 = vector.broadcast %154 : vector<1x96x256xf32> to vector<2x96x256xf32>
    "tpu.trace_start"() <{level = 10 : i32, message = "bmk,bkn->bmn"}> : () -> ()
    %cst_76 = arith.constant dense<0.000000e+00> : vector<2x7x256xf32>
    %156 = tpu.matmul %151, %155, %cst_76 {dimension_numbers = #tpu.dot_dimension_numbers<[2], [1], [1], [2], [0, 0, 0, 1, 1, 2], [0], [0]>} : vector<2x7x96xf32>, vector<2x96x256xf32>, vector<2x7x256xf32> -> vector<2x7x256xf32>
    "tpu.trace_stop"() : () -> ()
    %157 = arith.addf %149, %156 : vector<2x7x256xf32>
    %158 = vector.extract_strided_slice %0 {offsets = [0, 2, 1, 0], sizes = [2, 1, 7, 96], strides = [1, 1, 1, 1]} : vector<2x4x8x96xf32> to vector<2x1x7x96xf32>
    %159 = vector.shape_cast %158 : vector<2x1x7x96xf32> to vector<2x7x96xf32>
    %c3_77 = arith.constant 3 : index
    %c0_78 = arith.constant 0 : index
    %c0_79 = arith.constant 0 : index
    %160 = vector.load %arg2[%c3_77, %c0_78, %c0_79] : memref<5x96x256xf32, #tpu.memory_space<vmem>>, vector<1x96x256xf32>
    %161 = vector.shape_cast %160 : vector<1x96x256xf32> to vector<96x256xf32>
    %162 = vector.shape_cast %161 : vector<96x256xf32> to vector<1x96x256xf32>
    %163 = vector.broadcast %162 : vector<1x96x256xf32> to vector<2x96x256xf32>
    "tpu.trace_start"() <{level = 10 : i32, message = "bmk,bkn->bmn"}> : () -> ()
    %cst_80 = arith.constant dense<0.000000e+00> : vector<2x7x256xf32>
    %164 = tpu.matmul %159, %163, %cst_80 {dimension_numbers = #tpu.dot_dimension_numbers<[2], [1], [1], [2], [0, 0, 0, 1, 1, 2], [0], [0]>} : vector<2x7x96xf32>, vector<2x96x256xf32>, vector<2x7x256xf32> -> vector<2x7x256xf32>
    "tpu.trace_stop"() : () -> ()
    %165 = arith.addf %157, %164 : vector<2x7x256xf32>
    %166 = vector.extract_strided_slice %0 {offsets = [0, 3, 1, 0], sizes = [2, 1, 7, 96], strides = [1, 1, 1, 1]} : vector<2x4x8x96xf32> to vector<2x1x7x96xf32>
    %167 = vector.shape_cast %166 : vector<2x1x7x96xf32> to vector<2x7x96xf32>
    %c4_81 = arith.constant 4 : index
    %c0_82 = arith.constant 0 : index
    %c0_83 = arith.constant 0 : index
    %168 = vector.load %arg2[%c4_81, %c0_82, %c0_83] : memref<5x96x256xf32, #tpu.memory_space<vmem>>, vector<1x96x256xf32>
    %169 = vector.shape_cast %168 : vector<1x96x256xf32> to vector<96x256xf32>
    %170 = vector.shape_cast %169 : vector<96x256xf32> to vector<1x96x256xf32>
    %171 = vector.broadcast %170 : vector<1x96x256xf32> to vector<2x96x256xf32>
    "tpu.trace_start"() <{level = 10 : i32, message = "bmk,bkn->bmn"}> : () -> ()
    %cst_84 = arith.constant dense<0.000000e+00> : vector<2x7x256xf32>
    %172 = tpu.matmul %167, %171, %cst_84 {dimension_numbers = #tpu.dot_dimension_numbers<[2], [1], [1], [2], [0, 0, 0, 1, 1, 2], [0], [0]>} : vector<2x7x96xf32>, vector<2x96x256xf32>, vector<2x7x256xf32> -> vector<2x7x256xf32>
    "tpu.trace_stop"() : () -> ()
    %173 = arith.addf %165, %172 : vector<2x7x256xf32>
    %174 = vector.shape_cast %1 : vector<1x256xf32> to vector<1x1x256xf32>
    %175 = vector.broadcast %174 : vector<1x1x256xf32> to vector<2x7x256xf32>
    %176 = arith.addf %173, %175 : vector<2x7x256xf32>
    %cst_85 = arith.constant 0.000000e+00 : f32
    %177 = vector.broadcast %cst_85 : f32 to vector<2x7x256xf32>
    %178 = arith.maximumf %176, %177 : vector<2x7x256xf32>
    %179 = arith.maximumf %46, %90 : vector<2x7x256xf32>
    %180 = arith.maximumf %134, %178 : vector<2x7x256xf32>
    %181 = vector.extract_strided_slice %179 {offsets = [0, 0, 0], sizes = [2, 7, 128], strides = [1, 1, 1]} : vector<2x7x256xf32> to vector<2x7x128xf32>
    %182 = vector.extract_strided_slice %179 {offsets = [0, 0, 128], sizes = [2, 7, 128], strides = [1, 1, 1]} : vector<2x7x256xf32> to vector<2x7x128xf32>
    %183 = arith.maximumf %181, %182 : vector<2x7x128xf32>
    %184 = vector.extract_strided_slice %180 {offsets = [0, 0, 0], sizes = [2, 7, 128], strides = [1, 1, 1]} : vector<2x7x256xf32> to vector<2x7x128xf32>
    %185 = vector.extract_strided_slice %180 {offsets = [0, 0, 128], sizes = [2, 7, 128], strides = [1, 1, 1]} : vector<2x7x256xf32> to vector<2x7x128xf32>
    %186 = arith.maximumf %184, %185 : vector<2x7x128xf32>
    %187 = vector.extract_strided_slice %183 {offsets = [0, 0, 0], sizes = [2, 5, 128], strides = [1, 1, 1]} : vector<2x7x128xf32> to vector<2x5x128xf32>
    %c0_86 = arith.constant 0 : index
    %c0_87 = arith.constant 0 : index
    %c0_88 = arith.constant 0 : index
    %188 = vector.load %arg4[%c0_86, %c0_87, %c0_88] : memref<5x128x256xf32, #tpu.memory_space<vmem>>, vector<1x128x256xf32>
    %189 = vector.shape_cast %188 : vector<1x128x256xf32> to vector<128x256xf32>
    %190 = vector.shape_cast %189 : vector<128x256xf32> to vector<1x128x256xf32>
    %191 = vector.broadcast %190 : vector<1x128x256xf32> to vector<2x128x256xf32>
    "tpu.trace_start"() <{level = 10 : i32, message = "bmk,bkn->bmn"}> : () -> ()
    %cst_89 = arith.constant dense<0.000000e+00> : vector<2x5x256xf32>
    %192 = tpu.matmul %187, %191, %cst_89 {dimension_numbers = #tpu.dot_dimension_numbers<[2], [1], [1], [2], [0, 0, 0, 1, 1, 2], [0], [0]>} : vector<2x5x128xf32>, vector<2x128x256xf32>, vector<2x5x256xf32> -> vector<2x5x256xf32>
    "tpu.trace_stop"() : () -> ()
    %193 = vector.extract_strided_slice %186 {offsets = [0, 0, 0], sizes = [2, 5, 128], strides = [1, 1, 1]} : vector<2x7x128xf32> to vector<2x5x128xf32>
    %c1_90 = arith.constant 1 : index
    %c0_91 = arith.constant 0 : index
    %c0_92 = arith.constant 0 : index
    %194 = vector.load %arg4[%c1_90, %c0_91, %c0_92] : memref<5x128x256xf32, #tpu.memory_space<vmem>>, vector<1x128x256xf32>
    %195 = vector.shape_cast %194 : vector<1x128x256xf32> to vector<128x256xf32>
    %196 = vector.shape_cast %195 : vector<128x256xf32> to vector<1x128x256xf32>
    %197 = vector.broadcast %196 : vector<1x128x256xf32> to vector<2x128x256xf32>
    "tpu.trace_start"() <{level = 10 : i32, message = "bmk,bkn->bmn"}> : () -> ()
    %cst_93 = arith.constant dense<0.000000e+00> : vector<2x5x256xf32>
    %198 = tpu.matmul %193, %197, %cst_93 {dimension_numbers = #tpu.dot_dimension_numbers<[2], [1], [1], [2], [0, 0, 0, 1, 1, 2], [0], [0]>} : vector<2x5x128xf32>, vector<2x128x256xf32>, vector<2x5x256xf32> -> vector<2x5x256xf32>
    "tpu.trace_stop"() : () -> ()
    %199 = arith.addf %192, %198 : vector<2x5x256xf32>
    %200 = vector.extract_strided_slice %183 {offsets = [0, 1, 0], sizes = [2, 5, 128], strides = [1, 1, 1]} : vector<2x7x128xf32> to vector<2x5x128xf32>
    %c2_94 = arith.constant 2 : index
    %c0_95 = arith.constant 0 : index
    %c0_96 = arith.constant 0 : index
    %201 = vector.load %arg4[%c2_94, %c0_95, %c0_96] : memref<5x128x256xf32, #tpu.memory_space<vmem>>, vector<1x128x256xf32>
    %202 = vector.shape_cast %201 : vector<1x128x256xf32> to vector<128x256xf32>
    %203 = vector.shape_cast %202 : vector<128x256xf32> to vector<1x128x256xf32>
    %204 = vector.broadcast %203 : vector<1x128x256xf32> to vector<2x128x256xf32>
    "tpu.trace_start"() <{level = 10 : i32, message = "bmk,bkn->bmn"}> : () -> ()
    %cst_97 = arith.constant dense<0.000000e+00> : vector<2x5x256xf32>
    %205 = tpu.matmul %200, %204, %cst_97 {dimension_numbers = #tpu.dot_dimension_numbers<[2], [1], [1], [2], [0, 0, 0, 1, 1, 2], [0], [0]>} : vector<2x5x128xf32>, vector<2x128x256xf32>, vector<2x5x256xf32> -> vector<2x5x256xf32>
    "tpu.trace_stop"() : () -> ()
    %206 = arith.addf %199, %205 : vector<2x5x256xf32>
    %207 = vector.extract_strided_slice %186 {offsets = [0, 1, 0], sizes = [2, 5, 128], strides = [1, 1, 1]} : vector<2x7x128xf32> to vector<2x5x128xf32>
    %c3_98 = arith.constant 3 : index
    %c0_99 = arith.constant 0 : index
    %c0_100 = arith.constant 0 : index
    %208 = vector.load %arg4[%c3_98, %c0_99, %c0_100] : memref<5x128x256xf32, #tpu.memory_space<vmem>>, vector<1x128x256xf32>
    %209 = vector.shape_cast %208 : vector<1x128x256xf32> to vector<128x256xf32>
    %210 = vector.shape_cast %209 : vector<128x256xf32> to vector<1x128x256xf32>
    %211 = vector.broadcast %210 : vector<1x128x256xf32> to vector<2x128x256xf32>
    "tpu.trace_start"() <{level = 10 : i32, message = "bmk,bkn->bmn"}> : () -> ()
    %cst_101 = arith.constant dense<0.000000e+00> : vector<2x5x256xf32>
    %212 = tpu.matmul %207, %211, %cst_101 {dimension_numbers = #tpu.dot_dimension_numbers<[2], [1], [1], [2], [0, 0, 0, 1, 1, 2], [0], [0]>} : vector<2x5x128xf32>, vector<2x128x256xf32>, vector<2x5x256xf32> -> vector<2x5x256xf32>
    "tpu.trace_stop"() : () -> ()
    %213 = arith.addf %206, %212 : vector<2x5x256xf32>
    %214 = vector.extract_strided_slice %183 {offsets = [0, 2, 0], sizes = [2, 5, 128], strides = [1, 1, 1]} : vector<2x7x128xf32> to vector<2x5x128xf32>
    %c4_102 = arith.constant 4 : index
    %c0_103 = arith.constant 0 : index
    %c0_104 = arith.constant 0 : index
    %215 = vector.load %arg4[%c4_102, %c0_103, %c0_104] : memref<5x128x256xf32, #tpu.memory_space<vmem>>, vector<1x128x256xf32>
    %216 = vector.shape_cast %215 : vector<1x128x256xf32> to vector<128x256xf32>
    %217 = vector.shape_cast %216 : vector<128x256xf32> to vector<1x128x256xf32>
    %218 = vector.broadcast %217 : vector<1x128x256xf32> to vector<2x128x256xf32>
    "tpu.trace_start"() <{level = 10 : i32, message = "bmk,bkn->bmn"}> : () -> ()
    %cst_105 = arith.constant dense<0.000000e+00> : vector<2x5x256xf32>
    %219 = tpu.matmul %214, %218, %cst_105 {dimension_numbers = #tpu.dot_dimension_numbers<[2], [1], [1], [2], [0, 0, 0, 1, 1, 2], [0], [0]>} : vector<2x5x128xf32>, vector<2x128x256xf32>, vector<2x5x256xf32> -> vector<2x5x256xf32>
    "tpu.trace_stop"() : () -> ()
    %220 = arith.addf %213, %219 : vector<2x5x256xf32>
    %221 = vector.shape_cast %2 : vector<1x256xf32> to vector<1x1x256xf32>
    %222 = vector.broadcast %221 : vector<1x1x256xf32> to vector<2x5x256xf32>
    %223 = arith.addf %220, %222 : vector<2x5x256xf32>
    %cst_106 = arith.constant 0.000000e+00 : f32
    %224 = vector.broadcast %cst_106 : f32 to vector<2x5x256xf32>
    %225 = arith.maximumf %223, %224 : vector<2x5x256xf32>
    %226 = vector.extract_strided_slice %186 {offsets = [0, 0, 0], sizes = [2, 5, 128], strides = [1, 1, 1]} : vector<2x7x128xf32> to vector<2x5x128xf32>
    %c0_107 = arith.constant 0 : index
    %c0_108 = arith.constant 0 : index
    %c0_109 = arith.constant 0 : index
    %227 = vector.load %arg4[%c0_107, %c0_108, %c0_109] : memref<5x128x256xf32, #tpu.memory_space<vmem>>, vector<1x128x256xf32>
    %228 = vector.shape_cast %227 : vector<1x128x256xf32> to vector<128x256xf32>
    %229 = vector.shape_cast %228 : vector<128x256xf32> to vector<1x128x256xf32>
    %230 = vector.broadcast %229 : vector<1x128x256xf32> to vector<2x128x256xf32>
    "tpu.trace_start"() <{level = 10 : i32, message = "bmk,bkn->bmn"}> : () -> ()
    %cst_110 = arith.constant dense<0.000000e+00> : vector<2x5x256xf32>
    %231 = tpu.matmul %226, %230, %cst_110 {dimension_numbers = #tpu.dot_dimension_numbers<[2], [1], [1], [2], [0, 0, 0, 1, 1, 2], [0], [0]>} : vector<2x5x128xf32>, vector<2x128x256xf32>, vector<2x5x256xf32> -> vector<2x5x256xf32>
    "tpu.trace_stop"() : () -> ()
    %232 = vector.extract_strided_slice %183 {offsets = [0, 1, 0], sizes = [2, 5, 128], strides = [1, 1, 1]} : vector<2x7x128xf32> to vector<2x5x128xf32>
    %c1_111 = arith.constant 1 : index
    %c0_112 = arith.constant 0 : index
    %c0_113 = arith.constant 0 : index
    %233 = vector.load %arg4[%c1_111, %c0_112, %c0_113] : memref<5x128x256xf32, #tpu.memory_space<vmem>>, vector<1x128x256xf32>
    %234 = vector.shape_cast %233 : vector<1x128x256xf32> to vector<128x256xf32>
    %235 = vector.shape_cast %234 : vector<128x256xf32> to vector<1x128x256xf32>
    %236 = vector.broadcast %235 : vector<1x128x256xf32> to vector<2x128x256xf32>
    "tpu.trace_start"() <{level = 10 : i32, message = "bmk,bkn->bmn"}> : () -> ()
    %cst_114 = arith.constant dense<0.000000e+00> : vector<2x5x256xf32>
    %237 = tpu.matmul %232, %236, %cst_114 {dimension_numbers = #tpu.dot_dimension_numbers<[2], [1], [1], [2], [0, 0, 0, 1, 1, 2], [0], [0]>} : vector<2x5x128xf32>, vector<2x128x256xf32>, vector<2x5x256xf32> -> vector<2x5x256xf32>
    "tpu.trace_stop"() : () -> ()
    %238 = arith.addf %231, %237 : vector<2x5x256xf32>
    %239 = vector.extract_strided_slice %186 {offsets = [0, 1, 0], sizes = [2, 5, 128], strides = [1, 1, 1]} : vector<2x7x128xf32> to vector<2x5x128xf32>
    %c2_115 = arith.constant 2 : index
    %c0_116 = arith.constant 0 : index
    %c0_117 = arith.constant 0 : index
    %240 = vector.load %arg4[%c2_115, %c0_116, %c0_117] : memref<5x128x256xf32, #tpu.memory_space<vmem>>, vector<1x128x256xf32>
    %241 = vector.shape_cast %240 : vector<1x128x256xf32> to vector<128x256xf32>
    %242 = vector.shape_cast %241 : vector<128x256xf32> to vector<1x128x256xf32>
    %243 = vector.broadcast %242 : vector<1x128x256xf32> to vector<2x128x256xf32>
    "tpu.trace_start"() <{level = 10 : i32, message = "bmk,bkn->bmn"}> : () -> ()
    %cst_118 = arith.constant dense<0.000000e+00> : vector<2x5x256xf32>
    %244 = tpu.matmul %239, %243, %cst_118 {dimension_numbers = #tpu.dot_dimension_numbers<[2], [1], [1], [2], [0, 0, 0, 1, 1, 2], [0], [0]>} : vector<2x5x128xf32>, vector<2x128x256xf32>, vector<2x5x256xf32> -> vector<2x5x256xf32>
    "tpu.trace_stop"() : () -> ()
    %245 = arith.addf %238, %244 : vector<2x5x256xf32>
    %246 = vector.extract_strided_slice %183 {offsets = [0, 2, 0], sizes = [2, 5, 128], strides = [1, 1, 1]} : vector<2x7x128xf32> to vector<2x5x128xf32>
    %c3_119 = arith.constant 3 : index
    %c0_120 = arith.constant 0 : index
    %c0_121 = arith.constant 0 : index
    %247 = vector.load %arg4[%c3_119, %c0_120, %c0_121] : memref<5x128x256xf32, #tpu.memory_space<vmem>>, vector<1x128x256xf32>
    %248 = vector.shape_cast %247 : vector<1x128x256xf32> to vector<128x256xf32>
    %249 = vector.shape_cast %248 : vector<128x256xf32> to vector<1x128x256xf32>
    %250 = vector.broadcast %249 : vector<1x128x256xf32> to vector<2x128x256xf32>
    "tpu.trace_start"() <{level = 10 : i32, message = "bmk,bkn->bmn"}> : () -> ()
    %cst_122 = arith.constant dense<0.000000e+00> : vector<2x5x256xf32>
    %251 = tpu.matmul %246, %250, %cst_122 {dimension_numbers = #tpu.dot_dimension_numbers<[2], [1], [1], [2], [0, 0, 0, 1, 1, 2], [0], [0]>} : vector<2x5x128xf32>, vector<2x128x256xf32>, vector<2x5x256xf32> -> vector<2x5x256xf32>
    "tpu.trace_stop"() : () -> ()
    %252 = arith.addf %245, %251 : vector<2x5x256xf32>
    %253 = vector.extract_strided_slice %186 {offsets = [0, 2, 0], sizes = [2, 5, 128], strides = [1, 1, 1]} : vector<2x7x128xf32> to vector<2x5x128xf32>
    %c4_123 = arith.constant 4 : index
    %c0_124 = arith.constant 0 : index
    %c0_125 = arith.constant 0 : index
    %254 = vector.load %arg4[%c4_123, %c0_124, %c0_125] : memref<5x128x256xf32, #tpu.memory_space<vmem>>, vector<1x128x256xf32>
    %255 = vector.shape_cast %254 : vector<1x128x256xf32> to vector<128x256xf32>
    %256 = vector.shape_cast %255 : vector<128x256xf32> to vector<1x128x256xf32>
    %257 = vector.broadcast %256 : vector<1x128x256xf32> to vector<2x128x256xf32>
    "tpu.trace_start"() <{level = 10 : i32, message = "bmk,bkn->bmn"}> : () -> ()
    %cst_126 = arith.constant dense<0.000000e+00> : vector<2x5x256xf32>
    %258 = tpu.matmul %253, %257, %cst_126 {dimension_numbers = #tpu.dot_dimension_numbers<[2], [1], [1], [2], [0, 0, 0, 1, 1, 2], [0], [0]>} : vector<2x5x128xf32>, vector<2x128x256xf32>, vector<2x5x256xf32> -> vector<2x5x256xf32>
    "tpu.trace_stop"() : () -> ()
    %259 = arith.addf %252, %258 : vector<2x5x256xf32>
    %260 = vector.shape_cast %2 : vector<1x256xf32> to vector<1x1x256xf32>
    %261 = vector.broadcast %260 : vector<1x1x256xf32> to vector<2x5x256xf32>
    %262 = arith.addf %259, %261 : vector<2x5x256xf32>
    %cst_127 = arith.constant 0.000000e+00 : f32
    %263 = vector.broadcast %cst_127 : f32 to vector<2x5x256xf32>
    %264 = arith.maximumf %262, %263 : vector<2x5x256xf32>
    %265 = arith.maximumf %225, %264 : vector<2x5x256xf32>
    %266 = vector.extract_strided_slice %265 {offsets = [0, 0, 0], sizes = [2, 5, 128], strides = [1, 1, 1]} : vector<2x5x256xf32> to vector<2x5x128xf32>
    %267 = vector.extract_strided_slice %265 {offsets = [0, 0, 128], sizes = [2, 5, 128], strides = [1, 1, 1]} : vector<2x5x256xf32> to vector<2x5x128xf32>
    %268 = arith.maximumf %266, %267 : vector<2x5x128xf32>
    %269 = vector.extract_strided_slice %268 {offsets = [0, 0, 0], sizes = [2, 1, 128], strides = [1, 1, 1]} : vector<2x5x128xf32> to vector<2x1x128xf32>
    %c0_128 = arith.constant 0 : index
    %c0_129 = arith.constant 0 : index
    %c0_130 = arith.constant 0 : index
    %270 = vector.load %arg6[%c0_128, %c0_129, %c0_130] : memref<5x128x120xf32, #tpu.memory_space<vmem>>, vector<1x128x120xf32>
    %271 = vector.shape_cast %270 : vector<1x128x120xf32> to vector<128x120xf32>
    %272 = vector.shape_cast %271 : vector<128x120xf32> to vector<1x128x120xf32>
    %273 = vector.broadcast %272 : vector<1x128x120xf32> to vector<2x128x120xf32>
    "tpu.trace_start"() <{level = 10 : i32, message = "bmk,bkn->bmn"}> : () -> ()
    %cst_131 = arith.constant dense<0.000000e+00> : vector<2x1x120xf32>
    %274 = tpu.matmul %269, %273, %cst_131 {dimension_numbers = #tpu.dot_dimension_numbers<[2], [1], [1], [2], [0, 0, 0, 1, 1, 2], [0], [0]>} : vector<2x1x128xf32>, vector<2x128x120xf32>, vector<2x1x120xf32> -> vector<2x1x120xf32>
    "tpu.trace_stop"() : () -> ()
    %275 = vector.extract_strided_slice %268 {offsets = [0, 1, 0], sizes = [2, 1, 128], strides = [1, 1, 1]} : vector<2x5x128xf32> to vector<2x1x128xf32>
    %c1_132 = arith.constant 1 : index
    %c0_133 = arith.constant 0 : index
    %c0_134 = arith.constant 0 : index
    %276 = vector.load %arg6[%c1_132, %c0_133, %c0_134] : memref<5x128x120xf32, #tpu.memory_space<vmem>>, vector<1x128x120xf32>
    %277 = vector.shape_cast %276 : vector<1x128x120xf32> to vector<128x120xf32>
    %278 = vector.shape_cast %277 : vector<128x120xf32> to vector<1x128x120xf32>
    %279 = vector.broadcast %278 : vector<1x128x120xf32> to vector<2x128x120xf32>
    "tpu.trace_start"() <{level = 10 : i32, message = "bmk,bkn->bmn"}> : () -> ()
    %cst_135 = arith.constant dense<0.000000e+00> : vector<2x1x120xf32>
    %280 = tpu.matmul %275, %279, %cst_135 {dimension_numbers = #tpu.dot_dimension_numbers<[2], [1], [1], [2], [0, 0, 0, 1, 1, 2], [0], [0]>} : vector<2x1x128xf32>, vector<2x128x120xf32>, vector<2x1x120xf32> -> vector<2x1x120xf32>
    "tpu.trace_stop"() : () -> ()
    %281 = arith.addf %274, %280 : vector<2x1x120xf32>
    %282 = vector.extract_strided_slice %268 {offsets = [0, 2, 0], sizes = [2, 1, 128], strides = [1, 1, 1]} : vector<2x5x128xf32> to vector<2x1x128xf32>
    %c2_136 = arith.constant 2 : index
    %c0_137 = arith.constant 0 : index
    %c0_138 = arith.constant 0 : index
    %283 = vector.load %arg6[%c2_136, %c0_137, %c0_138] : memref<5x128x120xf32, #tpu.memory_space<vmem>>, vector<1x128x120xf32>
    %284 = vector.shape_cast %283 : vector<1x128x120xf32> to vector<128x120xf32>
    %285 = vector.shape_cast %284 : vector<128x120xf32> to vector<1x128x120xf32>
    %286 = vector.broadcast %285 : vector<1x128x120xf32> to vector<2x128x120xf32>
    "tpu.trace_start"() <{level = 10 : i32, message = "bmk,bkn->bmn"}> : () -> ()
    %cst_139 = arith.constant dense<0.000000e+00> : vector<2x1x120xf32>
    %287 = tpu.matmul %282, %286, %cst_139 {dimension_numbers = #tpu.dot_dimension_numbers<[2], [1], [1], [2], [0, 0, 0, 1, 1, 2], [0], [0]>} : vector<2x1x128xf32>, vector<2x128x120xf32>, vector<2x1x120xf32> -> vector<2x1x120xf32>
    "tpu.trace_stop"() : () -> ()
    %288 = arith.addf %281, %287 : vector<2x1x120xf32>
    %289 = vector.extract_strided_slice %268 {offsets = [0, 3, 0], sizes = [2, 1, 128], strides = [1, 1, 1]} : vector<2x5x128xf32> to vector<2x1x128xf32>
    %c3_140 = arith.constant 3 : index
    %c0_141 = arith.constant 0 : index
    %c0_142 = arith.constant 0 : index
    %290 = vector.load %arg6[%c3_140, %c0_141, %c0_142] : memref<5x128x120xf32, #tpu.memory_space<vmem>>, vector<1x128x120xf32>
    %291 = vector.shape_cast %290 : vector<1x128x120xf32> to vector<128x120xf32>
    %292 = vector.shape_cast %291 : vector<128x120xf32> to vector<1x128x120xf32>
    %293 = vector.broadcast %292 : vector<1x128x120xf32> to vector<2x128x120xf32>
    "tpu.trace_start"() <{level = 10 : i32, message = "bmk,bkn->bmn"}> : () -> ()
    %cst_143 = arith.constant dense<0.000000e+00> : vector<2x1x120xf32>
    %294 = tpu.matmul %289, %293, %cst_143 {dimension_numbers = #tpu.dot_dimension_numbers<[2], [1], [1], [2], [0, 0, 0, 1, 1, 2], [0], [0]>} : vector<2x1x128xf32>, vector<2x128x120xf32>, vector<2x1x120xf32> -> vector<2x1x120xf32>
    "tpu.trace_stop"() : () -> ()
    %295 = arith.addf %288, %294 : vector<2x1x120xf32>
    %296 = vector.extract_strided_slice %268 {offsets = [0, 4, 0], sizes = [2, 1, 128], strides = [1, 1, 1]} : vector<2x5x128xf32> to vector<2x1x128xf32>
    %c4_144 = arith.constant 4 : index
    %c0_145 = arith.constant 0 : index
    %c0_146 = arith.constant 0 : index
    %297 = vector.load %arg6[%c4_144, %c0_145, %c0_146] : memref<5x128x120xf32, #tpu.memory_space<vmem>>, vector<1x128x120xf32>
    %298 = vector.shape_cast %297 : vector<1x128x120xf32> to vector<128x120xf32>
    %299 = vector.shape_cast %298 : vector<128x120xf32> to vector<1x128x120xf32>
    %300 = vector.broadcast %299 : vector<1x128x120xf32> to vector<2x128x120xf32>
    "tpu.trace_start"() <{level = 10 : i32, message = "bmk,bkn->bmn"}> : () -> ()
    %cst_147 = arith.constant dense<0.000000e+00> : vector<2x1x120xf32>
    %301 = tpu.matmul %296, %300, %cst_147 {dimension_numbers = #tpu.dot_dimension_numbers<[2], [1], [1], [2], [0, 0, 0, 1, 1, 2], [0], [0]>} : vector<2x1x128xf32>, vector<2x128x120xf32>, vector<2x1x120xf32> -> vector<2x1x120xf32>
    "tpu.trace_stop"() : () -> ()
    %302 = arith.addf %295, %301 : vector<2x1x120xf32>
    %c0_148 = arith.constant 0 : index
    %c0_149 = arith.constant 0 : index
    %303 = vector.load %arg7[%c0_148, %c0_149] : memref<1x120xf32, #tpu.memory_space<vmem>>, vector<1x120xf32>
    %304 = vector.shape_cast %303 : vector<1x120xf32> to vector<1x1x120xf32>
    %305 = vector.broadcast %304 : vector<1x1x120xf32> to vector<2x1x120xf32>
    %306 = arith.addf %302, %305 : vector<2x1x120xf32>
    %cst_150 = arith.constant 0.000000e+00 : f32
    %307 = vector.broadcast %cst_150 : f32 to vector<2x1x120xf32>
    %308 = arith.maximumf %306, %307 : vector<2x1x120xf32>
    %c0_151 = arith.constant 0 : index
    %c0_152 = arith.constant 0 : index
    %309 = vector.load %arg8[%c0_151, %c0_152] : memref<120x84xf32, #tpu.memory_space<vmem>>, vector<120x84xf32>
    %310 = vector.shape_cast %309 : vector<120x84xf32> to vector<1x120x84xf32>
    %311 = vector.broadcast %310 : vector<1x120x84xf32> to vector<2x120x84xf32>
    "tpu.trace_start"() <{level = 10 : i32, message = "bmk,bkn->bmn"}> : () -> ()
    %cst_153 = arith.constant dense<0.000000e+00> : vector<2x1x84xf32>
    %312 = tpu.matmul %308, %311, %cst_153 {dimension_numbers = #tpu.dot_dimension_numbers<[2], [1], [1], [2], [0, 0, 0, 1, 1, 2], [0], [0]>} : vector<2x1x120xf32>, vector<2x120x84xf32>, vector<2x1x84xf32> -> vector<2x1x84xf32>
    "tpu.trace_stop"() : () -> ()
    %c0_154 = arith.constant 0 : index
    %c0_155 = arith.constant 0 : index
    %313 = vector.load %arg9[%c0_154, %c0_155] : memref<1x84xf32, #tpu.memory_space<vmem>>, vector<1x84xf32>
    %314 = vector.shape_cast %313 : vector<1x84xf32> to vector<1x1x84xf32>
    %315 = vector.broadcast %314 : vector<1x1x84xf32> to vector<2x1x84xf32>
    %316 = arith.addf %312, %315 : vector<2x1x84xf32>
    %cst_156 = arith.constant 0.000000e+00 : f32
    %317 = vector.broadcast %cst_156 : f32 to vector<2x1x84xf32>
    %318 = arith.maximumf %316, %317 : vector<2x1x84xf32>
    %c0_157 = arith.constant 0 : index
    %c0_158 = arith.constant 0 : index
    %319 = vector.load %arg10[%c0_157, %c0_158] : memref<84x10xf32, #tpu.memory_space<vmem>>, vector<84x10xf32>
    %320 = vector.shape_cast %319 : vector<84x10xf32> to vector<1x84x10xf32>
    %321 = vector.broadcast %320 : vector<1x84x10xf32> to vector<2x84x10xf32>
    "tpu.trace_start"() <{level = 10 : i32, message = "bmk,bkn->bmn"}> : () -> ()
    %cst_159 = arith.constant dense<0.000000e+00> : vector<2x1x10xf32>
    %322 = tpu.matmul %318, %321, %cst_159 {dimension_numbers = #tpu.dot_dimension_numbers<[2], [1], [1], [2], [0, 0, 0, 1, 1, 2], [0], [0]>} : vector<2x1x84xf32>, vector<2x84x10xf32>, vector<2x1x10xf32> -> vector<2x1x10xf32>
    "tpu.trace_stop"() : () -> ()
    %c0_160 = arith.constant 0 : index
    %c0_161 = arith.constant 0 : index
    %323 = vector.load %arg11[%c0_160, %c0_161] : memref<1x10xf32, #tpu.memory_space<vmem>>, vector<1x10xf32>
    %324 = vector.shape_cast %323 : vector<1x10xf32> to vector<1x1x10xf32>
    %325 = vector.broadcast %324 : vector<1x1x10xf32> to vector<2x1x10xf32>
    %326 = arith.addf %322, %325 : vector<2x1x10xf32>
    %c0_162 = arith.constant 0 : index
    %c0_163 = arith.constant 0 : index
    %c0_164 = arith.constant 0 : index
    %327 = vector.load %arg12[%c0_162, %c0_163, %c0_164] : memref<2x1x10xf32, #tpu.memory_space<vmem>>, vector<2x1x10xf32>
    tpu.vector_store %arg12[%c0_162, %c0_163, %c0_164], %326 {strides = array<i32>} : memref<2x1x10xf32, #tpu.memory_space<vmem>>, vector<2x1x10xf32>,
    return
  }
  func.func @transform_0(%arg0: i32) -> (i32, i32, i32, i32) {
    %c0_i32 = arith.constant 0 : i32
    %c0_i32_0 = arith.constant 0 : i32
    %c0_i32_1 = arith.constant 0 : i32
    %c0_i32_2 = arith.constant 0 : i32
    %c0_i32_3 = arith.constant 0 : i32
    return %c0_i32, %c0_i32_0, %c0_i32_1, %c0_i32_2 : i32, i32, i32, i32
  }
  func.func @transform_1(%arg0: i32) -> (i32, i32, i32) {
    %c0_i32 = arith.constant 0 : i32
    %c0_i32_0 = arith.constant 0 : i32
    %c0_i32_1 = arith.constant 0 : i32
    %c0_i32_2 = arith.constant 0 : i32
    return %c0_i32, %c0_i32_0, %c0_i32_1 : i32, i32, i32
  }
  func.func @transform_2(%arg0: i32) -> (i32, i32) {
    %c0_i32 = arith.constant 0 : i32
    %c0_i32_0 = arith.constant 0 : i32
    %c0_i32_1 = arith.constant 0 : i32
    return %c0_i32, %c0_i32_0 : i32, i32
  }
  func.func @transform_3(%arg0: i32) -> (i32, i32, i32) {
    %c0_i32 = arith.constant 0 : i32
    %c0_i32_0 = arith.constant 0 : i32
    %c0_i32_1 = arith.constant 0 : i32
    %c0_i32_2 = arith.constant 0 : i32
    return %c0_i32, %c0_i32_0, %c0_i32_1 : i32, i32, i32
  }
  func.func @transform_4(%arg0: i32) -> (i32, i32) {
    %c0_i32 = arith.constant 0 : i32
    %c0_i32_0 = arith.constant 0 : i32
    %c0_i32_1 = arith.constant 0 : i32
    return %c0_i32, %c0_i32_0 : i32, i32
  }
  func.func @transform_5(%arg0: i32) -> (i32, i32, i32) {
    %c0_i32 = arith.constant 0 : i32
    %c0_i32_0 = arith.constant 0 : i32
    %c0_i32_1 = arith.constant 0 : i32
    %c0_i32_2 = arith.constant 0 : i32
    return %c0_i32, %c0_i32_0, %c0_i32_1 : i32, i32, i32
  }
  func.func @transform_6(%arg0: i32) -> (i32, i32) {
    %c0_i32 = arith.constant 0 : i32
    %c0_i32_0 = arith.constant 0 : i32
    %c0_i32_1 = arith.constant 0 : i32
    return %c0_i32, %c0_i32_0 : i32, i32
  }
  func.func @transform_7(%arg0: i32) -> (i32, i32) {
    %c0_i32 = arith.constant 0 : i32
    %c0_i32_0 = arith.constant 0 : i32
    %c0_i32_1 = arith.constant 0 : i32
    return %c0_i32, %c0_i32_0 : i32, i32
  }
  func.func @transform_8(%arg0: i32) -> (i32, i32) {
    %c0_i32 = arith.constant 0 : i32
    %c0_i32_0 = arith.constant 0 : i32
    %c0_i32_1 = arith.constant 0 : i32
    return %c0_i32, %c0_i32_0 : i32, i32
  }
  func.func @transform_9(%arg0: i32) -> (i32, i32) {
    %c0_i32 = arith.constant 0 : i32
    %c0_i32_0 = arith.constant 0 : i32
    %c0_i32_1 = arith.constant 0 : i32
    return %c0_i32, %c0_i32_0 : i32, i32
  }
  func.func @transform_10(%arg0: i32) -> (i32, i32) {
    %c0_i32 = arith.constant 0 : i32
    %c0_i32_0 = arith.constant 0 : i32
    %c0_i32_1 = arith.constant 0 : i32
    return %c0_i32, %c0_i32_0 : i32, i32
  }
  func.func @transform_11(%arg0: i32) -> (i32, i32, i32) {
    %c0_i32 = arith.constant 0 : i32
    %c0_i32_0 = arith.constant 0 : i32
    %c0_i32_1 = arith.constant 0 : i32
    %c0_i32_2 = arith.constant 0 : i32
    return %c0_i32, %c0_i32_0, %c0_i32_1 : i32, i32, i32
  }
}

</mosaic_0001>

<bundles_post_ra>
// kernel: net_forward.1
= control target key start
LH: loop header
LB: loop body
LE: loop exit
PB: predicated region body
PF: predicated region fallthrough
CT: control target
= control target key end

     0   :  { %s8842_s0 = inlined_call_operand.vmem [shape: f32[2,4,8,96], index: 0, kind: input, shape index: {}]   ;;  %s8843_s1 = inlined_call_operand.vmem [shape: f32[5,96,256], index: 1, kind: input, shape index: {}]   ;;  %s8844_s2 = inlined_call_operand.vmem [shape: f32[1,256], index: 2, kind: input, shape index: {}]   ;;  %s8845_s3 = inlined_call_operand.vmem [shape: f32[5,128,256], index: 3, kind: input, shape index: {}]   ;;  %s8846_s4 = inlined_call_operand.vmem [shape: f32[1,256], index: 4, kind: input, shape index: {}]   ;;  %s8847_s5 = inlined_call_operand.vmem [shape: f32[5,128,120], index: 5, kind: input, shape index: {}]   ;;  %s8848_s6 = inlined_call_operand.vmem [shape: f32[1,120], index: 6, kind: input, shape index: {}]   ;;  %s8849_s7 = inlined_call_operand.vmem [shape: f32[120,84], index: 7, kind: input, shape index: {}]   ;;  %s8850_s8 = inlined_call_operand.vmem [shape: f32[1,84], index: 8, kind: input, shape index: {}]   ;;  %s8851_s9 = inlined_call_operand.vmem [shape: f32[84,10], index: 9, kind: input, shape index: {}]   ;;  %s8852_s10 = inlined_call_operand.vmem [shape: f32[1,10], index: 10, kind: input, shape index: {}]   ;;  %s8853_s11 = inlined_call_operand.hbm [shape: f32[2,1,10], index: 11, kind: output, shape index: {}]  }
   0x1   :  { %v4826_v0 = vld [vmem:[%s8843_s1 + $0x170] sm:$0xff]  ;;  %v4831_v1 = vld [vmem:[%s8843_s1 + $0x178] sm:$0xff]  ;;  %v4836_v2 = vld [vmem:[%s8843_s1 + $0x160] sm:$0xff] }
   0x2   :  { %106 = vmatpush.msra.mxu0 %v4826_v0  ;;  %126 = vmatpush.msra.mxu1 %v4831_v1  ;;  %v4843_v3 = vld [vmem:[%s8843_s1 + $0x168] sm:$0xff]  ;;  %v4850_v4 = vld [vmem:[%s8843_s1 + $0x150] sm:$0xff]  ;;  %v4855_v5 = vld [vmem:[%s8843_s1 + $0x158] sm:$0xff] }
   0x3   :  { %149 = vmatpush.msra.mxu2 %v4826_v0  ;;  %169 = vmatpush.msra.mxu3 %v4831_v1  ;;  %v4864_v6 = vld [vmem:[%s8843_s1 + $0x140] sm:$0xff]  ;;  %v4869_v7 = vld [vmem:[%s8843_s1 + $0x148] sm:$0xff]  ;;  %v4878_v8 = vld [vmem:[%s8843_s1 + $0x130] sm:$0xff] }
   0x4   :  { %107 = vmatpush.msra.mxu0 %v4836_v2  ;;  %127 = vmatpush.msra.mxu1 %v4843_v3  ;;  %v4883_v9 = vld [vmem:[%s8843_s1 + $0x138] sm:$0xff]  ;;  %v4892_v10 = vld [vmem:[%s8843_s1 + $0x120] sm:$0xff]  ;;  %v4897_v11 = vld [vmem:[%s8843_s1 + $0x128] sm:$0xff] }
   0x5   :  { %150 = vmatpush.msra.mxu2 %v4836_v2  ;;  %170 = vmatpush.msra.mxu3 %v4843_v3  ;;  %v4906_v12 = vld [vmem:[%s8843_s1 + $0x110] sm:$0xff]  ;;  %v4911_v13 = vld [vmem:[%s8843_s1 + $0x118] sm:$0xff]  ;;  %v4920_v14 = vld [vmem:[%s8843_s1 + $0x100] sm:$0xff] }
   0x6   :  { %108 = vmatpush.msra.mxu0 %v4850_v4  ;;  %128 = vmatpush.msra.mxu1 %v4855_v5  ;;  %v4925_v15 = vld [vmem:[%s8843_s1 + $0x108] sm:$0xff]  ;;  %v4934_v16 = vld [vmem:[%s8843_s1 + $0xf0] sm:$0xff]  ;;  %v4939_v17 = vld [vmem:[%s8843_s1 + $0xf8] sm:$0xff] }
   0x7   :  { %151 = vmatpush.msra.mxu2 %v4850_v4  ;;  %171 = vmatpush.msra.mxu3 %v4855_v5  ;;  %v4948_v18 = vld [vmem:[%s8843_s1 + $0xe0] sm:$0xff]  ;;  %v4953_v19 = vld [vmem:[%s8843_s1 + $0xe8] sm:$0xff] }
   0x8   :  { %109 = vmatpush.msra.mxu0 %v4864_v6  ;;  %129 = vmatpush.msra.mxu1 %v4869_v7 }
   0x9   :  { %152 = vmatpush.msra.mxu2 %v4864_v6  ;;  %172 = vmatpush.msra.mxu3 %v4869_v7 }
   0xa   :  { %110 = vmatpush.msra.mxu0 %v4878_v8  ;;  %130 = vmatpush.msra.mxu1 %v4883_v9 }
   0xb   :  { %153 = vmatpush.msra.mxu2 %v4878_v8  ;;  %173 = vmatpush.msra.mxu3 %v4883_v9 }
   0xc   :  { %111 = vmatpush.msra.mxu0 %v4892_v10  ;;  %131 = vmatpush.msra.mxu1 %v4897_v11 }
   0xd   :  { %154 = vmatpush.msra.mxu2 %v4892_v10  ;;  %174 = vmatpush.msra.mxu3 %v4897_v11 }
   0xe   :  { %112 = vmatpush.msra.mxu0 %v4906_v12  ;;  %132 = vmatpush.msra.mxu1 %v4911_v13 }
   0xf   :  { %155 = vmatpush.msra.mxu2 %v4906_v12  ;;  %175 = vmatpush.msra.mxu3 %v4911_v13 }
  0x10   :  { %113 = vmatpush.msra.mxu0 %v4920_v14  ;;  %133 = vmatpush.msra.mxu1 %v4925_v15 }
  0x11   :  { %156 = vmatpush.msra.mxu2 %v4920_v14  ;;  %176 = vmatpush.msra.mxu3 %v4925_v15 }
  0x12   :  { %16 = vsyncpa [#allocation3], 0  ;;  %114 = vmatpush.msra.mxu0 %v4934_v16  ;;  %134 = vmatpush.msra.mxu1 %v4939_v17  ;;  %v4962_v20 = vld [vmem:[%s8843_s1 + $0xd0] sm:$0xff]  ;;  %v4967_v21 = vld [vmem:[%s8843_s1 + $0xd8] sm:$0xff]  ;;  %vm98_vm0 = vcmask 785408   ;;  %vm3868_vm1 = vcmask 1043456  }
  0x13   :  { %157 = vmatpush.msra.mxu2 %v4934_v16  ;;  %177 = vmatpush.msra.mxu3 %v4939_v17  ;;  %v4976_v22 = vld [vmem:[%s8843_s1 + $0xc0] sm:$0xff]  ;;  %v4981_v23 = vld [vmem:[%s8843_s1 + $0xc8] sm:$0xff]  ;;  %v4990_v24 = vld [vmem:[%s8843_s1 + $0xb0] sm:$0xff]  ;;  %vm3803_vm2 = vcmask 982016   ;;  %vm3864_vm3 = vcmask 687104   ;;  %vm3915_vm4 = vcmask 73728  }
  0x14   :  { %115 = vmatpush.msra.mxu0 %v4948_v18  ;;  %135 = vmatpush.msra.mxu1 %v4953_v19  ;;  %v4995_v25 = vld [vmem:[%s8843_s1 + $0xb8] sm:$0xff]  ;;  %v5004_v26 = vld [vmem:[%s8843_s1 + $0xa0] sm:$0xff]  ;;  %v5009_v27 = vld [vmem:[%s8843_s1 + $0xa8] sm:$0xff]  ;;  %s3924_s15 = sshll.u32 %s8853_s11, 4  ;;  %s4761_s16 = smov 16   ;;  %s3925_s15 = int_to_ptr.hbm [resolvable:$true] %s3924_s15 }
  0x15   :  { %158 = vmatpush.msra.mxu2 %v4948_v18  ;;  %178 = vmatpush.msra.mxu3 %v4953_v19  ;;  %v5018_v28 = vld [vmem:[%s8843_s1 + $0x90] sm:$0xff]  ;;  %v5023_v29 = vld [vmem:[%s8843_s1 + $0x98] sm:$0xff]  ;;  %v5032_v30 = vld [vmem:[%s8843_s1 + $0x80] sm:$0xff]  ;;  %s4762_s17 = smov 1  }
  0x16   :  { %116 = vmatpush.msra.mxu0 %v4962_v20  ;;  %136 = vmatpush.msra.mxu1 %v4967_v21  ;;  %v5037_v31 = vld [vmem:[%s8843_s1 + $0x88] sm:$0xff]  ;;  %v5046_v32 = vld [vmem:[%s8843_s1 + $0x70] sm:$0xff]  ;;  %v5051_v33 = vld [vmem:[%s8843_s1 + $0x78] sm:$0xff] }
  0x17   :  { %159 = vmatpush.msra.mxu2 %v4962_v20  ;;  %179 = vmatpush.msra.mxu3 %v4967_v21  ;;  %v5060_v34 = vld [vmem:[%s8843_s1 + $0x60] sm:$0xff]  ;;  %v5065_v35 = vld [vmem:[%s8843_s1 + $0x68] sm:$0xff]  ;;  %v5074_v36 = vld [vmem:[%s8843_s1 + $0x50] sm:$0xff] }
  0x18   :  { %117 = vmatpush.msra.mxu0 %v4976_v22  ;;  %137 = vmatpush.msra.mxu1 %v4981_v23  ;;  %v5079_v37 = vld [vmem:[%s8843_s1 + $0x58] sm:$0xff]  ;;  %v5088_v38 = vld [vmem:[%s8843_s1 + $0x40] sm:$0xff]  ;;  %v5093_v39 = vld [vmem:[%s8843_s1 + $0x48] sm:$0xff] }
  0x19   :  { %160 = vmatpush.msra.mxu2 %v4976_v22  ;;  %180 = vmatpush.msra.mxu3 %v4981_v23  ;;  %v5102_v40 = vld [vmem:[%s8842_s0 + $0x28] sm:$0xff]  ;;  %v5109_v41 = vld [vmem:[%s8843_s1 + $0x30] sm:$0xff]  ;;  %v5114_v42 = vld [vmem:[%s8843_s1 + $0x38] sm:$0xff] }
  0x1a   :  { %192 = vmatpush.msrb.mxu0 %v4990_v24  ;;  %212 = vmatpush.msrb.mxu1 %v4995_v25  ;;  %v5125_v43 = vld [vmem:[%s8843_s1 + $0x20] sm:$0xff]  ;;  %v5130_v44 = vld [vmem:[%s8843_s1 + $0x28] sm:$0xff]  ;;  %v5139_v45 = vld [vmem:[%s8843_s1 + $0x10] sm:$0xff] }
  0x1b   :  { %235 = vmatpush.msrb.mxu2 %v4990_v24  ;;  %255 = vmatpush.msrb.mxu3 %v4995_v25  ;;  %v5144_v46 = vld [vmem:[%s8843_s1 + $0x18] sm:$0xff]  ;;  %v5153_v47 = vld [vmem:[%s8843_s1] sm:$0xff]  ;;  %v5158_v48 = vld [vmem:[%s8843_s1 + $0x8] sm:$0xff] }
  0x1c   :  { %193 = vmatpush.msrb.mxu0 %v5004_v26  ;;  %213 = vmatpush.msrb.mxu1 %v5009_v27  ;;  %v5167_v49 = vld [vmem:[%s8842_s0 + $0x8] sm:$0xff]  ;;  %v5174_v50 = vld [vmem:[%s8842_s0 + $0x20] sm:$0xff]  ;;  %v5181_v51 = vld [vmem:[%s8843_s1 + $0x230] sm:$0xff] }
  0x1d   :  { %236 = vmatpush.msrb.mxu2 %v5004_v26  ;;  %256 = vmatpush.msrb.mxu3 %v5009_v27  ;;  %9139 = vst [vmem:[#allocation5_spill] sm:$0xff] %v5167_v49  ;;  %v5186_v52 = vld [vmem:[%s8843_s1 + $0x238] sm:$0xff]  ;;  %v5199_v53 = vld [vmem:[%s8843_s1 + $0x220] sm:$0xff]  ;;  %v5204_v54 = vld [vmem:[%s8843_s1 + $0x228] sm:$0xff] }
  0x1e   :  { %194 = vmatpush.msrb.mxu0 %v5018_v28  ;;  %214 = vmatpush.msrb.mxu1 %v5023_v29  ;;  %v5213_v55 = vld [vmem:[%s8843_s1 + $0x210] sm:$0xff]  ;;  %v5218_v56 = vld [vmem:[%s8843_s1 + $0x218] sm:$0xff]  ;;  %v5227_v57 = vld [vmem:[%s8843_s1 + $0x200] sm:$0xff] }
  0x1f   :  { %237 = vmatpush.msrb.mxu2 %v5018_v28  ;;  %257 = vmatpush.msrb.mxu3 %v5023_v29  ;;  %9140 = vst [vmem:[#allocation6_spill] sm:$0xff] %v5213_v55  ;;  %v5232_v58 = vld [vmem:[%s8843_s1 + $0x208] sm:$0xff]  ;;  %v5241_v59 = vld [vmem:[%s8843_s1 + $0x1f0] sm:$0xff]  ;;  %v5246_v60 = vld [vmem:[%s8843_s1 + $0x1f8] sm:$0xff] }
  0x20   :  { %195 = vmatpush.msrb.mxu0 %v5032_v30  ;;  %215 = vmatpush.msrb.mxu1 %v5037_v31  ;;  %9141 = vst [vmem:[#allocation7_spill] sm:$0xff] %v5218_v56  ;;  %v5255_v61 = vld [vmem:[%s8843_s1 + $0x1e0] sm:$0xff]  ;;  %v5260_v62 = vld [vmem:[%s8843_s1 + $0x1e8] sm:$0xff] }
  0x21   :  { %238 = vmatpush.msrb.mxu2 %v5032_v30  ;;  %258 = vmatpush.msrb.mxu3 %v5037_v31  ;;  %9142 = vst [vmem:[#allocation8_spill] sm:$0xff] %v5227_v57  ;;  %v5269_v63 = vld [vmem:[%s8842_s0] sm:$0xff] }
  0x22   :  { %196 = vmatpush.msrb.mxu0 %v5046_v32  ;;  %216 = vmatpush.msrb.mxu1 %v5051_v33  ;;  %9143 = vst [vmem:[#allocation9_spill] sm:$0xff] %v5232_v58 }
  0x23   :  { %239 = vmatpush.msrb.mxu2 %v5046_v32  ;;  %259 = vmatpush.msrb.mxu3 %v5051_v33  ;;  %9144 = vst [vmem:[#allocation10_spill] sm:$0xff] %v5241_v59 }
  0x24   :  { %197 = vmatpush.msrb.mxu0 %v5060_v34  ;;  %217 = vmatpush.msrb.mxu1 %v5065_v35  ;;  %9145 = vst [vmem:[#allocation11_spill] sm:$0xff] %v5246_v60 }
  0x25   :  { %240 = vmatpush.msrb.mxu2 %v5060_v34  ;;  %260 = vmatpush.msrb.mxu3 %v5065_v35  ;;  %9146 = vst [vmem:[#allocation12_spill] sm:$0xff] %v5255_v61 }
  0x26   :  { %198 = vmatpush.msrb.mxu0 %v5074_v36  ;;  %218 = vmatpush.msrb.mxu1 %v5079_v37  ;;  %9147 = vst [vmem:[#allocation13_spill] sm:$0xff] %v5260_v62 }
  0x27   :  { %241 = vmatpush.msrb.mxu2 %v5074_v36  ;;  %261 = vmatpush.msrb.mxu3 %v5079_v37 }
  0x28   :  { %199 = vmatpush.msrb.mxu0 %v5088_v38  ;;  %219 = vmatpush.msrb.mxu1 %v5093_v39 }
  0x29   :  { %242 = vmatpush.msrb.mxu2 %v5088_v38  ;;  %262 = vmatpush.msrb.mxu3 %v5093_v39 }
  0x2a   :  { %3962 = vmatmul.msk.f32.vlgmr.msra.gmra.mxu2 %vm98_vm0, %v5102_v40  ;;  %3963 = vmatmul.msk.f32.vlgmr.msra.gmra.mxu3 %vm98_vm0, %v5102_v40 }
  0x2b   :  { %200 = vmatpush.msrb.mxu0 %v5109_v41  ;;  %220 = vmatpush.msrb.mxu1 %v5114_v42 }
  0x2c   :  { %243 = vmatpush.msrb.mxu2 %v5109_v41  ;;  %263 = vmatpush.msrb.mxu3 %v5114_v42 }
  0x2d   :  { %201 = vmatpush.msrb.mxu0 %v5125_v43  ;;  %221 = vmatpush.msrb.mxu1 %v5130_v44 }
  0x2e   :  { %244 = vmatpush.msrb.mxu2 %v5125_v43  ;;  %264 = vmatpush.msrb.mxu3 %v5130_v44 }
  0x2f   :  { %202 = vmatpush.msrb.mxu0 %v5139_v45  ;;  %222 = vmatpush.msrb.mxu1 %v5144_v46 }
  0x30   :  { %245 = vmatpush.msrb.mxu2 %v5139_v45  ;;  %265 = vmatpush.msrb.mxu3 %v5144_v46 }
  0x31   :  { %203 = vmatpush.msrb.mxu0 %v5153_v47  ;;  %223 = vmatpush.msrb.mxu1 %v5158_v48 }
  0x32   :  { %246 = vmatpush.msrb.mxu2 %v5153_v47  ;;  %266 = vmatpush.msrb.mxu3 %v5158_v48 }
  0x33   :  { %3960 = vmatmul.msk.f32.vlgmr.msra.gmra.mxu0 %vm98_vm0, %v5167_v49  ;;  %3961 = vmatmul.msk.f32.vlgmr.msra.gmra.mxu1 %vm98_vm0, %v5167_v49  ;;  %v5276_v49 = vld [vmem:[%s8843_s1 + $0x1d0] sm:$0xff] }
  0x34   :  { %3966 = vmatmul.msk.f32.vlgmr.msrb.gmra.mxu2 %vm98_vm0, %v5174_v50  ;;  %3967 = vmatmul.msk.f32.vlgmr.msrb.gmra.mxu3 %vm98_vm0, %v5174_v50  ;;  %9148 = vst [vmem:[#allocation14_spill] sm:$0xff] %v5276_v49 }
  0x35   :  { %303 = vmatpush.msra.mxu0 %v5181_v51  ;;  %323 = vmatpush.msra.mxu1 %v5186_v52 }
  0x36   :  { %346 = vmatpush.msra.mxu2 %v5181_v51  ;;  %366 = vmatpush.msra.mxu3 %v5186_v52 }
  0x37   :  { %304 = vmatpush.msra.mxu0 %v5199_v53  ;;  %324 = vmatpush.msra.mxu1 %v5204_v54 }
  0x38   :  { %347 = vmatpush.msra.mxu2 %v5199_v53  ;;  %367 = vmatpush.msra.mxu3 %v5204_v54 }
  0x39   :  { %305 = vmatpush.msra.mxu0 %v5213_v55  ;;  %325 = vmatpush.msra.mxu1 %v5218_v56 }
  0x3a   :  { %348 = vmatpush.msra.mxu2 %v5213_v55  ;;  %368 = vmatpush.msra.mxu3 %v5218_v56  ;;  %v5413_v56 = vld [vmem:[%s8843_s1 + $0x2d8] sm:$0xff]  ;;  %v5728_v55 = vrot.slane %v5269_v63, 1 }
  0x3b   :  { %306 = vmatpush.msra.mxu0 %v5227_v57  ;;  %326 = vmatpush.msra.mxu1 %v5232_v58  ;;  %9165 = vst [vmem:[#allocation31_spill] sm:$0xff] %v5413_v56 }
  0x3c   :  { %349 = vmatpush.msra.mxu2 %v5227_v57  ;;  %369 = vmatpush.msra.mxu3 %v5232_v58  ;;  %v5297_v58 = vld [vmem:[%s8843_s1 + $0x1c8] sm:$0xff]  ;;  %v5408_v57 = vld [vmem:[%s8843_s1 + $0x2d0] sm:$0xff]  ;;  %9205 = vst [vmem:[#allocation71_spill] sm:$0xff] %v5728_v55 }
  0x3d   :  { %307 = vmatpush.msra.mxu0 %v5241_v59  ;;  %327 = vmatpush.msra.mxu1 %v5246_v60  ;;  %9151 = vst [vmem:[#allocation17_spill] sm:$0xff] %v5297_v58 }
  0x3e   :  { %350 = vmatpush.msra.mxu2 %v5241_v59  ;;  %370 = vmatpush.msra.mxu3 %v5246_v60  ;;  %v5281_v59 = vld [vmem:[%s8843_s1 + $0x1d8] sm:$0xff]  ;;  %v5292_v60 = vld [vmem:[%s8843_s1 + $0x1c0] sm:$0xff]  ;;  %9164 = vst [vmem:[#allocation30_spill] sm:$0xff] %v5408_v57 }
  0x3f   :  { %308 = vmatpush.msra.mxu0 %v5255_v61  ;;  %328 = vmatpush.msra.mxu1 %v5260_v62  ;;  %9149 = vst [vmem:[#allocation15_spill] sm:$0xff] %v5281_v59 }
  0x40   :  { %351 = vmatpush.msra.mxu2 %v5255_v61  ;;  %371 = vmatpush.msra.mxu3 %v5260_v62  ;;  %9150 = vst [vmem:[#allocation16_spill] sm:$0xff] %v5292_v60  ;;  %v5306_v62 = vld [vmem:[%s8843_s1 + $0x1b0] sm:$0xff]  ;;  %v5311_v61 = vld [vmem:[%s8843_s1 + $0x1b8] sm:$0xff] }
  0x41   :  { %3964 = vmatmul.msk.f32.vlgmr.msrb.gmra.mxu0 %vm98_vm0, %v5269_v63  ;;  %3965 = vmatmul.msk.f32.vlgmr.msrb.gmra.mxu1 %vm98_vm0, %v5269_v63  ;;  %9152 = vst [vmem:[#allocation18_spill] sm:$0xff] %v5306_v62 }
  0x42   :  { %309 = vmatpush.msra.mxu0 %v5276_v49  ;;  %329 = vmatpush.msra.mxu1 %v5281_v59  ;;  %9153 = vst [vmem:[#allocation19_spill] sm:$0xff] %v5311_v61 }
  0x43   :  { %352 = vmatpush.msra.mxu2 %v5276_v49  ;;  %372 = vmatpush.msra.mxu3 %v5281_v59  ;;  %v5320_v59 = vld [vmem:[%s8843_s1 + $0x1a0] sm:$0xff]  ;;  %v5325_v49 = vld [vmem:[%s8843_s1 + $0x1a8] sm:$0xff] }
  0x44   :  { %310 = vmatpush.msra.mxu0 %v5292_v60  ;;  %330 = vmatpush.msra.mxu1 %v5297_v58  ;;  %9154 = vst [vmem:[#allocation20_spill] sm:$0xff] %v5320_v59 }
  0x45   :  { %353 = vmatpush.msra.mxu2 %v5292_v60  ;;  %373 = vmatpush.msra.mxu3 %v5297_v58  ;;  %9155 = vst [vmem:[#allocation21_spill] sm:$0xff] %v5325_v49  ;;  %v5334_v58 = vld [vmem:[%s8843_s1 + $0x190] sm:$0xff]  ;;  %v5339_v60 = vld [vmem:[%s8843_s1 + $0x198] sm:$0xff] }
  0x46   :  { %311 = vmatpush.msra.mxu0 %v5306_v62  ;;  %331 = vmatpush.msra.mxu1 %v5311_v61  ;;  %9156 = vst [vmem:[#allocation22_spill] sm:$0xff] %v5334_v58 }
  0x47   :  { %354 = vmatpush.msra.mxu2 %v5306_v62  ;;  %374 = vmatpush.msra.mxu3 %v5311_v61  ;;  %9157 = vst [vmem:[#allocation23_spill] sm:$0xff] %v5339_v60  ;;  %v5348_v61 = vld [vmem:[%s8843_s1 + $0x180] sm:$0xff]  ;;  %v5353_v62 = vld [vmem:[%s8843_s1 + $0x188] sm:$0xff] }
  0x48   :  { %312 = vmatpush.msra.mxu0 %v5320_v59  ;;  %332 = vmatpush.msra.mxu1 %v5325_v49  ;;  %9158 = vst [vmem:[#allocation24_spill] sm:$0xff] %v5348_v61 }
  0x49   :  { %355 = vmatpush.msra.mxu2 %v5320_v59  ;;  %375 = vmatpush.msra.mxu3 %v5325_v49  ;;  %9159 = vst [vmem:[#allocation25_spill] sm:$0xff] %v5353_v62  ;;  %v5362_v49 = vld [vmem:[%s8842_s0 + $0x10] sm:$0xff] }
  0x4a   :  { %313 = vmatpush.msra.mxu0 %v5334_v58  ;;  %333 = vmatpush.msra.mxu1 %v5339_v60  ;;  %v5369_v59 = vld [vmem:[%s8842_s0 + $0x30] sm:$0xff] }
  0x4b   :  { %356 = vmatpush.msra.mxu2 %v5334_v58  ;;  %376 = vmatpush.msra.mxu3 %v5339_v60  ;;  %v5376_v60 = vld [vmem:[%s8843_s1 + $0x2f0] sm:$0xff]  ;;  %v5381_v58 = vld [vmem:[%s8843_s1 + $0x2f8] sm:$0xff] }
  0x4c   :  { %314 = vmatpush.msra.mxu0 %v5348_v61  ;;  %334 = vmatpush.msra.mxu1 %v5353_v62  ;;  %9160 = vst [vmem:[#allocation26_spill] sm:$0xff] %v5376_v60 }
  0x4d   :  { %357 = vmatpush.msra.mxu2 %v5348_v61  ;;  %377 = vmatpush.msra.mxu3 %v5353_v62  ;;  %9161 = vst [vmem:[#allocation27_spill] sm:$0xff] %v5381_v58  ;;  %v5394_v62 = vld [vmem:[%s8843_s1 + $0x2e0] sm:$0xff]  ;;  %v5399_v61 = vld [vmem:[%s8843_s1 + $0x2e8] sm:$0xff] }
  0x4e   :  { %3992 = vmatmul.msk.f32.vlgmr.msra.gmra.mxu0 %vm98_vm0, %v5362_v49  ;;  %3993 = vmatmul.msk.f32.vlgmr.msra.gmra.mxu1 %vm98_vm0, %v5362_v49  ;;  %9162 = vst [vmem:[#allocation28_spill] sm:$0xff] %v5394_v62 }
  0x4f   :  { %3994 = vmatmul.msk.f32.vlgmr.msra.gmra.mxu2 %vm98_vm0, %v5369_v59  ;;  %3995 = vmatmul.msk.f32.vlgmr.msra.gmra.mxu3 %vm98_vm0, %v5369_v59  ;;  %9163 = vst [vmem:[#allocation29_spill] sm:$0xff] %v5399_v61 }
  0x50   :  { %418 = vmatpush.msrb.mxu0 %v5376_v60  ;;  %438 = vmatpush.msrb.mxu1 %v5381_v58 }
  0x51   :  { %461 = vmatpush.msrb.mxu2 %v5376_v60  ;;  %481 = vmatpush.msrb.mxu3 %v5381_v58  ;;  %v5422_v58 = vld [vmem:[%s8843_s1 + $0x2c0] sm:$0xff]  ;;  %v5427_v60 = vld [vmem:[%s8843_s1 + $0x2c8] sm:$0xff] }
  0x52   :  { %419 = vmatpush.msrb.mxu0 %v5394_v62  ;;  %439 = vmatpush.msrb.mxu1 %v5399_v61  ;;  %9166 = vst [vmem:[#allocation32_spill] sm:$0xff] %v5422_v58 }
  0x53   :  { %462 = vmatpush.msrb.mxu2 %v5394_v62  ;;  %482 = vmatpush.msrb.mxu3 %v5399_v61  ;;  %9167 = vst [vmem:[#allocation33_spill] sm:$0xff] %v5427_v60  ;;  %v5436_v61 = vld [vmem:[%s8843_s1 + $0x2b0] sm:$0xff]  ;;  %v5441_v62 = vld [vmem:[%s8843_s1 + $0x2b8] sm:$0xff] }
  0x54   :  { %420 = vmatpush.msrb.mxu0 %v5408_v57  ;;  %440 = vmatpush.msrb.mxu1 %v5413_v56  ;;  %9168 = vst [vmem:[#allocation34_spill] sm:$0xff] %v5436_v61 }
  0x55   :  { %463 = vmatpush.msrb.mxu2 %v5408_v57  ;;  %483 = vmatpush.msrb.mxu3 %v5413_v56  ;;  %9169 = vst [vmem:[#allocation35_spill] sm:$0xff] %v5441_v62  ;;  %v5450_v56 = vld [vmem:[%s8843_s1 + $0x2a0] sm:$0xff]  ;;  %v5455_v57 = vld [vmem:[%s8843_s1 + $0x2a8] sm:$0xff] }
  0x56   :  { %421 = vmatpush.msrb.mxu0 %v5422_v58  ;;  %441 = vmatpush.msrb.mxu1 %v5427_v60  ;;  %9170 = vst [vmem:[#allocation36_spill] sm:$0xff] %v5450_v56 }
  0x57   :  { %464 = vmatpush.msrb.mxu2 %v5422_v58  ;;  %484 = vmatpush.msrb.mxu3 %v5427_v60  ;;  %9171 = vst [vmem:[#allocation37_spill] sm:$0xff] %v5455_v57  ;;  %v5464_v60 = vld [vmem:[%s8843_s1 + $0x290] sm:$0xff]  ;;  %v5469_v58 = vld [vmem:[%s8843_s1 + $0x298] sm:$0xff] }
  0x58   :  { %422 = vmatpush.msrb.mxu0 %v5436_v61  ;;  %442 = vmatpush.msrb.mxu1 %v5441_v62  ;;  %9172 = vst [vmem:[#allocation38_spill] sm:$0xff] %v5464_v60 }
  0x59   :  { %465 = vmatpush.msrb.mxu2 %v5436_v61  ;;  %485 = vmatpush.msrb.mxu3 %v5441_v62  ;;  %9173 = vst [vmem:[#allocation39_spill] sm:$0xff] %v5469_v58  ;;  %v5478_v62 = vld [vmem:[%s8843_s1 + $0x280] sm:$0xff]  ;;  %v5483_v61 = vld [vmem:[%s8843_s1 + $0x288] sm:$0xff] }
  0x5a   :  { %423 = vmatpush.msrb.mxu0 %v5450_v56  ;;  %443 = vmatpush.msrb.mxu1 %v5455_v57  ;;  %9174 = vst [vmem:[#allocation40_spill] sm:$0xff] %v5478_v62 }
  0x5b   :  { %466 = vmatpush.msrb.mxu2 %v5450_v56  ;;  %486 = vmatpush.msrb.mxu3 %v5455_v57  ;;  %9175 = vst [vmem:[#allocation41_spill] sm:$0xff] %v5483_v61  ;;  %v5492_v57 = vld [vmem:[%s8843_s1 + $0x270] sm:$0xff]  ;;  %v5497_v56 = vld [vmem:[%s8843_s1 + $0x278] sm:$0xff] }
  0x5c   :  { %424 = vmatpush.msrb.mxu0 %v5464_v60  ;;  %444 = vmatpush.msrb.mxu1 %v5469_v58  ;;  %9176 = vst [vmem:[#allocation42_spill] sm:$0xff] %v5492_v57 }
  0x5d   :  { %467 = vmatpush.msrb.mxu2 %v5464_v60  ;;  %487 = vmatpush.msrb.mxu3 %v5469_v58  ;;  %9177 = vst [vmem:[#allocation43_spill] sm:$0xff] %v5497_v56  ;;  %v5506_v58 = vld [vmem:[%s8843_s1 + $0x260] sm:$0xff]  ;;  %v5511_v60 = vld [vmem:[%s8843_s1 + $0x268] sm:$0xff] }
  0x5e   :  { %425 = vmatpush.msrb.mxu0 %v5478_v62  ;;  %445 = vmatpush.msrb.mxu1 %v5483_v61  ;;  %9178 = vst [vmem:[#allocation44_spill] sm:$0xff] %v5506_v58 }
  0x5f   :  { %468 = vmatpush.msrb.mxu2 %v5478_v62  ;;  %488 = vmatpush.msrb.mxu3 %v5483_v61  ;;  %9179 = vst [vmem:[#allocation45_spill] sm:$0xff] %v5511_v60  ;;  %v5520_v61 = vld [vmem:[%s8843_s1 + $0x250] sm:$0xff]  ;;  %v5525_v62 = vld [vmem:[%s8843_s1 + $0x258] sm:$0xff] }
  0x60   :  { %426 = vmatpush.msrb.mxu0 %v5492_v57  ;;  %446 = vmatpush.msrb.mxu1 %v5497_v56  ;;  %9180 = vst [vmem:[#allocation46_spill] sm:$0xff] %v5520_v61 }
  0x61   :  { %469 = vmatpush.msrb.mxu2 %v5492_v57  ;;  %489 = vmatpush.msrb.mxu3 %v5497_v56  ;;  %9181 = vst [vmem:[#allocation47_spill] sm:$0xff] %v5525_v62  ;;  %v5534_v56 = vld [vmem:[%s8843_s1 + $0x240] sm:$0xff]  ;;  %v5539_v57 = vld [vmem:[%s8843_s1 + $0x248] sm:$0xff] }
  0x62   :  { %427 = vmatpush.msrb.mxu0 %v5506_v58  ;;  %447 = vmatpush.msrb.mxu1 %v5511_v60  ;;  %9182 = vst [vmem:[#allocation48_spill] sm:$0xff] %v5534_v56 }
  0x63   :  { %470 = vmatpush.msrb.mxu2 %v5506_v58  ;;  %490 = vmatpush.msrb.mxu3 %v5511_v60  ;;  %9183 = vst [vmem:[#allocation49_spill] sm:$0xff] %v5539_v57  ;;  %v5548_v60 = vld [vmem:[%s8842_s0 + $0x18] sm:$0xff] }
  0x64   :  { %428 = vmatpush.msrb.mxu0 %v5520_v61  ;;  %448 = vmatpush.msrb.mxu1 %v5525_v62  ;;  %9184 = vst [vmem:[#allocation50_spill] sm:$0xff] %v5548_v60  ;;  %v5555_v58 = vld [vmem:[%s8842_s0 + $0x38] sm:$0xff] }
  0x65   :  { %471 = vmatpush.msrb.mxu2 %v5520_v61  ;;  %491 = vmatpush.msrb.mxu3 %v5525_v62  ;;  %9185 = vst [vmem:[#allocation51_spill] sm:$0xff] %v5555_v58  ;;  %v5562_v62 = vld [vmem:[%s8843_s1 + $0x3b0] sm:$0xff]  ;;  %v5567_v61 = vld [vmem:[%s8843_s1 + $0x3b8] sm:$0xff] }
  0x66   :  { %429 = vmatpush.msrb.mxu0 %v5534_v56  ;;  %449 = vmatpush.msrb.mxu1 %v5539_v57  ;;  %9186 = vst [vmem:[#allocation52_spill] sm:$0xff] %v5562_v62 }
  0x67   :  { %472 = vmatpush.msrb.mxu2 %v5534_v56  ;;  %492 = vmatpush.msrb.mxu3 %v5539_v57  ;;  %9187 = vst [vmem:[#allocation53_spill] sm:$0xff] %v5567_v61  ;;  %v5580_v57 = vld [vmem:[%s8843_s1 + $0x3a0] sm:$0xff]  ;;  %v5585_v56 = vld [vmem:[%s8843_s1 + $0x3a8] sm:$0xff] }
  0x68   :  { %4020 = vmatmul.msk.f32.vlgmr.msrb.gmra.mxu0 %vm98_vm0, %v5548_v60  ;;  %4021 = vmatmul.msk.f32.vlgmr.msrb.gmra.mxu1 %vm98_vm0, %v5548_v60  ;;  %9188 = vst [vmem:[#allocation54_spill] sm:$0xff] %v5580_v57  ;;  %v5599_v60 = vld [vmem:[%s8843_s1 + $0x398] sm:$0xff] }
  0x69   :  { %4022 = vmatmul.msk.f32.vlgmr.msrb.gmra.mxu2 %vm98_vm0, %v5555_v58  ;;  %4023 = vmatmul.msk.f32.vlgmr.msrb.gmra.mxu3 %vm98_vm0, %v5555_v58  ;;  %9189 = vst [vmem:[#allocation55_spill] sm:$0xff] %v5585_v56  ;;  %v5594_v58 = vld [vmem:[%s8843_s1 + $0x390] sm:$0xff] }
  0x6a   :  { %533 = vmatpush.msra.mxu0 %v5562_v62  ;;  %553 = vmatpush.msra.mxu1 %v5567_v61  ;;  %9190 = vst [vmem:[#allocation56_spill] sm:$0xff] %v5594_v58 }
  0x6b   :  { %576 = vmatpush.msra.mxu2 %v5562_v62  ;;  %596 = vmatpush.msra.mxu3 %v5567_v61  ;;  %9191 = vst [vmem:[#allocation57_spill] sm:$0xff] %v5599_v60  ;;  %v5608_v61 = vld [vmem:[%s8843_s1 + $0x380] sm:$0xff]  ;;  %v5613_v62 = vld [vmem:[%s8843_s1 + $0x388] sm:$0xff] }
  0x6c   :  { %534 = vmatpush.msra.mxu0 %v5580_v57  ;;  %554 = vmatpush.msra.mxu1 %v5585_v56  ;;  %9192 = vst [vmem:[#allocation58_spill] sm:$0xff] %v5608_v61 }
  0x6d   :  { %577 = vmatpush.msra.mxu2 %v5580_v57  ;;  %597 = vmatpush.msra.mxu3 %v5585_v56  ;;  %9193 = vst [vmem:[#allocation59_spill] sm:$0xff] %v5613_v62  ;;  %v5622_v56 = vld [vmem:[%s8843_s1 + $0x370] sm:$0xff]  ;;  %v5627_v57 = vld [vmem:[%s8843_s1 + $0x378] sm:$0xff] }
  0x6e   :  { %535 = vmatpush.msra.mxu0 %v5594_v58  ;;  %555 = vmatpush.msra.mxu1 %v5599_v60  ;;  %9194 = vst [vmem:[#allocation60_spill] sm:$0xff] %v5622_v56 }
  0x6f   :  { %578 = vmatpush.msra.mxu2 %v5594_v58  ;;  %598 = vmatpush.msra.mxu3 %v5599_v60  ;;  %9195 = vst [vmem:[#allocation61_spill] sm:$0xff] %v5627_v57  ;;  %v5636_v60 = vld [vmem:[%s8843_s1 + $0x360] sm:$0xff]  ;;  %v5641_v58 = vld [vmem:[%s8843_s1 + $0x368] sm:$0xff] }
  0x70   :  { %536 = vmatpush.msra.mxu0 %v5608_v61  ;;  %556 = vmatpush.msra.mxu1 %v5613_v62  ;;  %9196 = vst [vmem:[#allocation62_spill] sm:$0xff] %v5636_v60 }
  0x71   :  { %579 = vmatpush.msra.mxu2 %v5608_v61  ;;  %599 = vmatpush.msra.mxu3 %v5613_v62  ;;  %9197 = vst [vmem:[#allocation63_spill] sm:$0xff] %v5641_v58  ;;  %v5650_v62 = vld [vmem:[%s8843_s1 + $0x350] sm:$0xff]  ;;  %v5655_v61 = vld [vmem:[%s8843_s1 + $0x358] sm:$0xff] }
  0x72   :  { %537 = vmatpush.msra.mxu0 %v5622_v56  ;;  %557 = vmatpush.msra.mxu1 %v5627_v57  ;;  %9198 = vst [vmem:[#allocation64_spill] sm:$0xff] %v5650_v62 }
  0x73   :  { %580 = vmatpush.msra.mxu2 %v5622_v56  ;;  %600 = vmatpush.msra.mxu3 %v5627_v57  ;;  %9199 = vst [vmem:[#allocation65_spill] sm:$0xff] %v5655_v61  ;;  %v5664_v57 = vld [vmem:[%s8843_s1 + $0x340] sm:$0xff]  ;;  %v5669_v56 = vld [vmem:[%s8843_s1 + $0x348] sm:$0xff] }
  0x74   :  { %538 = vmatpush.msra.mxu0 %v5636_v60  ;;  %558 = vmatpush.msra.mxu1 %v5641_v58  ;;  %9200 = vst [vmem:[#allocation66_spill] sm:$0xff] %v5664_v57 }
  0x75   :  { %581 = vmatpush.msra.mxu2 %v5636_v60  ;;  %601 = vmatpush.msra.mxu3 %v5641_v58  ;;  %9201 = vst [vmem:[#allocation67_spill] sm:$0xff] %v5669_v56  ;;  %v5678_v58 = vld [vmem:[%s8843_s1 + $0x330] sm:$0xff]  ;;  %v5683_v60 = vld [vmem:[%s8843_s1 + $0x338] sm:$0xff] }
  0x76   :  { %539 = vmatpush.msra.mxu0 %v5650_v62  ;;  %559 = vmatpush.msra.mxu1 %v5655_v61  ;;  %9202 = vst [vmem:[#allocation68_spill] sm:$0xff] %v5678_v58  ;;  %v9263_v63 = vld [vmem:[#allocation61_spill] sm:$0xff] }
  0x77   :  { %582 = vmatpush.msra.mxu2 %v5650_v62  ;;  %602 = vmatpush.msra.mxu3 %v5655_v61  ;;  %9203 = vst [vmem:[#allocation69_spill] sm:$0xff] %v5683_v60  ;;  %v5692_v61 = vld [vmem:[%s8843_s1 + $0x320] sm:$0xff]  ;;  %v5697_v62 = vld [vmem:[%s8843_s1 + $0x328] sm:$0xff] }
  0x78   :  { %540 = vmatpush.msra.mxu0 %v5664_v57  ;;  %560 = vmatpush.msra.mxu1 %v5669_v56  ;;  %9204 = vst [vmem:[#allocation70_spill] sm:$0xff] %v5692_v61 }
  0x79   :  { %583 = vmatpush.msra.mxu2 %v5664_v57  ;;  %603 = vmatpush.msra.mxu3 %v5669_v56  ;;  %v5706_v56 = vld [vmem:[%s8843_s1 + $0x310] sm:$0xff]  ;;  %v5711_v57 = vld [vmem:[%s8843_s1 + $0x318] sm:$0xff] }
  0x7a   :  { %541 = vmatpush.msra.mxu0 %v5678_v58  ;;  %561 = vmatpush.msra.mxu1 %v5683_v60 }
  0x7b   :  { %584 = vmatpush.msra.mxu2 %v5678_v58  ;;  %604 = vmatpush.msra.mxu3 %v5683_v60  ;;  %v5720_v60 = vld [vmem:[%s8843_s1 + $0x300] sm:$0xff]  ;;  %v5725_v58 = vld [vmem:[%s8843_s1 + $0x308] sm:$0xff] }
  0x7c   :  { %542 = vmatpush.msra.mxu0 %v5692_v61  ;;  %562 = vmatpush.msra.mxu1 %v5697_v62 }
  0x7d   :  { %585 = vmatpush.msra.mxu2 %v5692_v61  ;;  %605 = vmatpush.msra.mxu3 %v5697_v62  ;;  %v5733_v61 = vrot.slane %v5174_v50, 1  ;;  %v9257_v50 = vld [vmem:[#allocation55_spill] sm:$0xff] }
  0x7e   :  { %543 = vmatpush.msra.mxu0 %v5706_v56  ;;  %563 = vmatpush.msra.mxu1 %v5711_v57 }
  0x7f   :  { %9206 = vst [vmem:[#allocation72_spill] sm:$0xff] %v5733_v61  ;;  %586 = vmatpush.msra.mxu2 %v5706_v56  ;;  %606 = vmatpush.msra.mxu3 %v5711_v57 }
  0x80   :  { %544 = vmatpush.msra.mxu0 %v5720_v60  ;;  %564 = vmatpush.msra.mxu1 %v5725_v58 }
  0x81   :  { %587 = vmatpush.msra.mxu2 %v5720_v60  ;;  %607 = vmatpush.msra.mxu3 %v5725_v58 }
  0x82   :  { %4048 = vmatmul.msk.f32.vlgmr.msra.gmra.mxu0 %vm98_vm0, %v5728_v55  ;;  %4049 = vmatmul.msk.f32.vlgmr.msra.gmra.mxu1 %vm98_vm0, %v5728_v55 }
  0x83   :  { %4050 = vmatmul.msk.f32.vlgmr.msra.gmra.mxu2 %vm98_vm0, %v5733_v61  ;;  %4051 = vmatmul.msk.f32.vlgmr.msra.gmra.mxu3 %vm98_vm0, %v5733_v61 }
  0x84   :  { %681 = vmatpush.msrb.mxu0 %v4826_v0  ;;  %701 = vmatpush.msrb.mxu1 %v4831_v1 }
  0x85   :  { %721 = vmatpush.msrb.mxu2 %v4826_v0  ;;  %741 = vmatpush.msrb.mxu3 %v4831_v1  ;;  %v9207_v0 = vld [vmem:[#allocation6_spill] sm:$0xff]  ;;  %v9208_v1 = vld [vmem:[#allocation7_spill] sm:$0xff] }
  0x86   :  { %682 = vmatpush.msrb.mxu0 %v4836_v2  ;;  %702 = vmatpush.msrb.mxu1 %v4843_v3 }
  0x87   :  { %722 = vmatpush.msrb.mxu2 %v4836_v2  ;;  %742 = vmatpush.msrb.mxu3 %v4843_v3  ;;  %v9209_v2 = vld [vmem:[#allocation8_spill] sm:$0xff]  ;;  %v9210_v3 = vld [vmem:[#allocation9_spill] sm:$0xff] }
  0x88   :  { %683 = vmatpush.msrb.mxu0 %v4850_v4  ;;  %703 = vmatpush.msrb.mxu1 %v4855_v5 }
  0x89   :  { %723 = vmatpush.msrb.mxu2 %v4850_v4  ;;  %743 = vmatpush.msrb.mxu3 %v4855_v5  ;;  %v9211_v4 = vld [vmem:[#allocation10_spill] sm:$0xff]  ;;  %v9212_v5 = vld [vmem:[#allocation11_spill] sm:$0xff] }
  0x8a   :  { %684 = vmatpush.msrb.mxu0 %v4864_v6  ;;  %704 = vmatpush.msrb.mxu1 %v4869_v7 }
  0x8b   :  { %724 = vmatpush.msrb.mxu2 %v4864_v6  ;;  %744 = vmatpush.msrb.mxu3 %v4869_v7  ;;  %v9213_v6 = vld [vmem:[#allocation12_spill] sm:$0xff]  ;;  %v9214_v7 = vld [vmem:[#allocation13_spill] sm:$0xff] }
  0x8c   :  { %685 = vmatpush.msrb.mxu0 %v4878_v8  ;;  %705 = vmatpush.msrb.mxu1 %v4883_v9 }
  0x8d   :  { %725 = vmatpush.msrb.mxu2 %v4878_v8  ;;  %745 = vmatpush.msrb.mxu3 %v4883_v9  ;;  %v9215_v8 = vld [vmem:[#allocation5_spill] sm:$0xff]  ;;  %v9216_v9 = vld [vmem:[#allocation14_spill] sm:$0xff] }
  0x8e   :  { %686 = vmatpush.msrb.mxu0 %v4892_v10  ;;  %706 = vmatpush.msrb.mxu1 %v4897_v11 }
  0x8f   :  { %726 = vmatpush.msrb.mxu2 %v4892_v10  ;;  %746 = vmatpush.msrb.mxu3 %v4897_v11  ;;  %v9217_v10 = vld [vmem:[#allocation15_spill] sm:$0xff]  ;;  %v9218_v11 = vld [vmem:[#allocation16_spill] sm:$0xff] }
  0x90   :  { %687 = vmatpush.msrb.mxu0 %v4906_v12  ;;  %707 = vmatpush.msrb.mxu1 %v4911_v13 }
  0x91   :  { %727 = vmatpush.msrb.mxu2 %v4906_v12  ;;  %747 = vmatpush.msrb.mxu3 %v4911_v13  ;;  %v9219_v12 = vld [vmem:[#allocation17_spill] sm:$0xff]  ;;  %v9220_v13 = vld [vmem:[#allocation18_spill] sm:$0xff] }
  0x92   :  { %688 = vmatpush.msrb.mxu0 %v4920_v14  ;;  %708 = vmatpush.msrb.mxu1 %v4925_v15 }
  0x93   :  { %728 = vmatpush.msrb.mxu2 %v4920_v14  ;;  %748 = vmatpush.msrb.mxu3 %v4925_v15  ;;  %v9221_v14 = vld [vmem:[#allocation19_spill] sm:$0xff]  ;;  %v9222_v15 = vld [vmem:[#allocation20_spill] sm:$0xff] }
  0x94   :  { %689 = vmatpush.msrb.mxu0 %v4934_v16  ;;  %709 = vmatpush.msrb.mxu1 %v4939_v17 }
  0x95   :  { %729 = vmatpush.msrb.mxu2 %v4934_v16  ;;  %749 = vmatpush.msrb.mxu3 %v4939_v17  ;;  %v9223_v16 = vld [vmem:[#allocation21_spill] sm:$0xff]  ;;  %v9224_v17 = vld [vmem:[#allocation22_spill] sm:$0xff] }
  0x96   :  { %690 = vmatpush.msrb.mxu0 %v4948_v18  ;;  %710 = vmatpush.msrb.mxu1 %v4953_v19 }
  0x97   :  { %730 = vmatpush.msrb.mxu2 %v4948_v18  ;;  %750 = vmatpush.msrb.mxu3 %v4953_v19  ;;  %v9225_v18 = vld [vmem:[#allocation23_spill] sm:$0xff]  ;;  %v9226_v19 = vld [vmem:[#allocation24_spill] sm:$0xff] }
  0x98   :  { %691 = vmatpush.msrb.mxu0 %v4962_v20  ;;  %711 = vmatpush.msrb.mxu1 %v4967_v21 }
  0x99   :  { %731 = vmatpush.msrb.mxu2 %v4962_v20  ;;  %751 = vmatpush.msrb.mxu3 %v4967_v21  ;;  %v9227_v20 = vld [vmem:[#allocation25_spill] sm:$0xff]  ;;  %v9228_v21 = vld [vmem:[#allocation50_spill] sm:$0xff] }
  0x9a   :  { %692 = vmatpush.msrb.mxu0 %v4976_v22  ;;  %712 = vmatpush.msrb.mxu1 %v4981_v23 }
  0x9b   :  { %732 = vmatpush.msrb.mxu2 %v4976_v22  ;;  %752 = vmatpush.msrb.mxu3 %v4981_v23  ;;  %v9229_v22 = vld [vmem:[#allocation51_spill] sm:$0xff]  ;;  %v9230_v23 = vld [vmem:[#allocation26_spill] sm:$0xff] }
  0x9c   :  { %761 = vmatpush.msra.mxu0 %v4990_v24  ;;  %781 = vmatpush.msra.mxu1 %v4995_v25 }
  0x9d   :  { %801 = vmatpush.msra.mxu2 %v4990_v24  ;;  %821 = vmatpush.msra.mxu3 %v4995_v25  ;;  %v9231_v24 = vld [vmem:[#allocation27_spill] sm:$0xff]  ;;  %v9232_v25 = vld [vmem:[#allocation28_spill] sm:$0xff] }
  0x9e   :  { %762 = vmatpush.msra.mxu0 %v5004_v26  ;;  %782 = vmatpush.msra.mxu1 %v5009_v27 }
  0x9f   :  { %802 = vmatpush.msra.mxu2 %v5004_v26  ;;  %822 = vmatpush.msra.mxu3 %v5009_v27  ;;  %v9233_v26 = vld [vmem:[#allocation29_spill] sm:$0xff]  ;;  %v9234_v27 = vld [vmem:[#allocation30_spill] sm:$0xff] }
  0xa0   :  { %763 = vmatpush.msra.mxu0 %v5018_v28  ;;  %783 = vmatpush.msra.mxu1 %v5023_v29 }
  0xa1   :  { %803 = vmatpush.msra.mxu2 %v5018_v28  ;;  %823 = vmatpush.msra.mxu3 %v5023_v29  ;;  %v9235_v28 = vld [vmem:[#allocation31_spill] sm:$0xff]  ;;  %v9236_v29 = vld [vmem:[#allocation32_spill] sm:$0xff] }
  0xa2   :  { %764 = vmatpush.msra.mxu0 %v5032_v30  ;;  %784 = vmatpush.msra.mxu1 %v5037_v31 }
  0xa3   :  { %804 = vmatpush.msra.mxu2 %v5032_v30  ;;  %824 = vmatpush.msra.mxu3 %v5037_v31  ;;  %v9237_v30 = vld [vmem:[#allocation33_spill] sm:$0xff]  ;;  %v9238_v31 = vld [vmem:[#allocation34_spill] sm:$0xff] }
  0xa4   :  { %765 = vmatpush.msra.mxu0 %v5046_v32  ;;  %785 = vmatpush.msra.mxu1 %v5051_v33 }
  0xa5   :  { %805 = vmatpush.msra.mxu2 %v5046_v32  ;;  %825 = vmatpush.msra.mxu3 %v5051_v33  ;;  %v9239_v32 = vld [vmem:[#allocation35_spill] sm:$0xff]  ;;  %v9240_v33 = vld [vmem:[#allocation36_spill] sm:$0xff] }
  0xa6   :  { %766 = vmatpush.msra.mxu0 %v5060_v34  ;;  %786 = vmatpush.msra.mxu1 %v5065_v35 }
  0xa7   :  { %806 = vmatpush.msra.mxu2 %v5060_v34  ;;  %826 = vmatpush.msra.mxu3 %v5065_v35  ;;  %v9241_v34 = vld [vmem:[#allocation37_spill] sm:$0xff]  ;;  %v9242_v35 = vld [vmem:[#allocation38_spill] sm:$0xff] }
  0xa8   :  { %767 = vmatpush.msra.mxu0 %v5074_v36  ;;  %787 = vmatpush.msra.mxu1 %v5079_v37 }
  0xa9   :  { %807 = vmatpush.msra.mxu2 %v5074_v36  ;;  %827 = vmatpush.msra.mxu3 %v5079_v37  ;;  %v9243_v36 = vld [vmem:[#allocation39_spill] sm:$0xff]  ;;  %v9244_v37 = vld [vmem:[#allocation40_spill] sm:$0xff] }
  0xaa   :  { %768 = vmatpush.msra.mxu0 %v5088_v38  ;;  %788 = vmatpush.msra.mxu1 %v5093_v39 }
  0xab   :  { %808 = vmatpush.msra.mxu2 %v5088_v38  ;;  %828 = vmatpush.msra.mxu3 %v5093_v39  ;;  %v9245_v38 = vld [vmem:[#allocation41_spill] sm:$0xff]  ;;  %v9246_v39 = vld [vmem:[#allocation42_spill] sm:$0xff] }
  0xac   :  { %4078 = vmatmul.msk.f32.vlgmr.msrb.gmra.mxu2 %vm98_vm0, %v5369_v59  ;;  %4079 = vmatmul.msk.f32.vlgmr.msrb.gmra.mxu3 %vm98_vm0, %v5369_v59  ;;  %v9262_v59 = vld [vmem:[#allocation60_spill] sm:$0xff] }
  0xad   :  { %769 = vmatpush.msra.mxu0 %v5109_v41  ;;  %789 = vmatpush.msra.mxu1 %v5114_v42 }
  0xae   :  { %809 = vmatpush.msra.mxu2 %v5109_v41  ;;  %829 = vmatpush.msra.mxu3 %v5114_v42  ;;  %v9248_v41 = vld [vmem:[#allocation44_spill] sm:$0xff]  ;;  %v9249_v42 = vld [vmem:[#allocation45_spill] sm:$0xff] }
  0xaf   :  { %770 = vmatpush.msra.mxu0 %v5125_v43  ;;  %790 = vmatpush.msra.mxu1 %v5130_v44 }
  0xb0   :  { %810 = vmatpush.msra.mxu2 %v5125_v43  ;;  %830 = vmatpush.msra.mxu3 %v5130_v44  ;;  %v9250_v43 = vld [vmem:[#allocation46_spill] sm:$0xff]  ;;  %v9251_v44 = vld [vmem:[#allocation47_spill] sm:$0xff] }
  0xb1   :  { %771 = vmatpush.msra.mxu0 %v5139_v45  ;;  %791 = vmatpush.msra.mxu1 %v5144_v46 }
  0xb2   :  { %811 = vmatpush.msra.mxu2 %v5139_v45  ;;  %831 = vmatpush.msra.mxu3 %v5144_v46  ;;  %v9252_v45 = vld [vmem:[#allocation48_spill] sm:$0xff]  ;;  %v9253_v46 = vld [vmem:[#allocation49_spill] sm:$0xff] }
  0xb3   :  { %772 = vmatpush.msra.mxu0 %v5153_v47  ;;  %792 = vmatpush.msra.mxu1 %v5158_v48 }
  0xb4   :  { %812 = vmatpush.msra.mxu2 %v5153_v47  ;;  %832 = vmatpush.msra.mxu3 %v5158_v48  ;;  %v9254_v47 = vld [vmem:[#allocation52_spill] sm:$0xff]  ;;  %v9255_v48 = vld [vmem:[#allocation53_spill] sm:$0xff] }
  0xb5   :  { %4076 = vmatmul.msk.f32.vlgmr.msrb.gmra.mxu0 %vm98_vm0, %v5362_v49  ;;  %4077 = vmatmul.msk.f32.vlgmr.msrb.gmra.mxu1 %vm98_vm0, %v5362_v49  ;;  %v9256_v49 = vld [vmem:[#allocation54_spill] sm:$0xff] }
  0xb6   :  { %4082 = vmatmul.msk.f32.vlgmr.msra.gmra.mxu2 %vm98_vm0, %v5102_v40  ;;  %4083 = vmatmul.msk.f32.vlgmr.msra.gmra.mxu3 %vm98_vm0, %v5102_v40  ;;  %v9247_v40 = vld [vmem:[#allocation43_spill] sm:$0xff] }
  0xb7   :  { %865 = vmatpush.msrb.mxu0 %v5181_v51  ;;  %885 = vmatpush.msrb.mxu1 %v5186_v52 }
  0xb8   :  { %905 = vmatpush.msrb.mxu2 %v5181_v51  ;;  %925 = vmatpush.msrb.mxu3 %v5186_v52  ;;  %v9258_v51 = vld [vmem:[#allocation56_spill] sm:$0xff]  ;;  %v9259_v52 = vld [vmem:[#allocation57_spill] sm:$0xff] }
  0xb9   :  { %866 = vmatpush.msrb.mxu0 %v5199_v53  ;;  %886 = vmatpush.msrb.mxu1 %v5204_v54 }
  0xba   :  { %906 = vmatpush.msrb.mxu2 %v5199_v53  ;;  %926 = vmatpush.msrb.mxu3 %v5204_v54  ;;  %v9260_v53 = vld [vmem:[#allocation58_spill] sm:$0xff]  ;;  %v9261_v54 = vld [vmem:[#allocation59_spill] sm:$0xff] }
  0xbb   :  { %867 = vmatpush.msrb.mxu0 %v9207_v0  ;;  %887 = vmatpush.msrb.mxu1 %v9208_v1 }
  0xbc   :  { %907 = vmatpush.msrb.mxu2 %v9207_v0  ;;  %927 = vmatpush.msrb.mxu3 %v9208_v1  ;;  %v9264_v0 = vld [vmem:[#allocation62_spill] sm:$0xff]  ;;  %v9265_v1 = vld [vmem:[#allocation63_spill] sm:$0xff] }
  0xbd   :  { %868 = vmatpush.msrb.mxu0 %v9209_v2  ;;  %888 = vmatpush.msrb.mxu1 %v9210_v3 }
  0xbe   :  { %908 = vmatpush.msrb.mxu2 %v9209_v2  ;;  %928 = vmatpush.msrb.mxu3 %v9210_v3  ;;  %v9266_v2 = vld [vmem:[#allocation64_spill] sm:$0xff]  ;;  %v9267_v3 = vld [vmem:[#allocation65_spill] sm:$0xff] }
  0xbf   :  { %869 = vmatpush.msrb.mxu0 %v9211_v4  ;;  %889 = vmatpush.msrb.mxu1 %v9212_v5 }
  0xc0   :  { %909 = vmatpush.msrb.mxu2 %v9211_v4  ;;  %929 = vmatpush.msrb.mxu3 %v9212_v5  ;;  %v9268_v4 = vld [vmem:[#allocation66_spill] sm:$0xff]  ;;  %v9269_v5 = vld [vmem:[#allocation67_spill] sm:$0xff] }
  0xc1   :  { %870 = vmatpush.msrb.mxu0 %v9213_v6  ;;  %890 = vmatpush.msrb.mxu1 %v9214_v7 }
  0xc2   :  { %910 = vmatpush.msrb.mxu2 %v9213_v6  ;;  %930 = vmatpush.msrb.mxu3 %v9214_v7  ;;  %v9270_v6 = vld [vmem:[#allocation68_spill] sm:$0xff]  ;;  %v9271_v7 = vld [vmem:[#allocation69_spill] sm:$0xff] }
  0xc3   :  { %4080 = vmatmul.msk.f32.vlgmr.msra.gmra.mxu0 %vm98_vm0, %v9215_v8  ;;  %4081 = vmatmul.msk.f32.vlgmr.msra.gmra.mxu1 %vm98_vm0, %v9215_v8 }
  0xc4   :  { %871 = vmatpush.msrb.mxu0 %v9216_v9  ;;  %891 = vmatpush.msrb.mxu1 %v9217_v10 }
  0xc5   :  { %911 = vmatpush.msrb.mxu2 %v9216_v9  ;;  %931 = vmatpush.msrb.mxu3 %v9217_v10  ;;  %v9272_v9 = vld [vmem:[#allocation70_spill] sm:$0xff]  ;;  %v6014_v10 = vrot.slane %v9215_v8, 1  ;;  %v6037_v8 = vld [vmem:[%s8843_s1 + $0x178] sm:$0xff] }
  0xc6   :  { %872 = vmatpush.msrb.mxu0 %v9218_v11  ;;  %892 = vmatpush.msrb.mxu1 %v9219_v12 }
  0xc7   :  { %912 = vmatpush.msrb.mxu2 %v9218_v11  ;;  %932 = vmatpush.msrb.mxu3 %v9219_v12  ;;  %9273 = vst [vmem:[#allocation6_spill] sm:$0xff] %v6014_v10  ;;  %v4729_v11 = vld [vmem:[%s8842_s0 + $0x28] sm:$0xff] }
  0xc8   :  { %873 = vmatpush.msrb.mxu0 %v9220_v13  ;;  %893 = vmatpush.msrb.mxu1 %v9221_v14  ;;  %v6021_v12 = vrot.slane %v4729_v11, 1  ;;  %v6449_v11 = vld [vmem:[%s8843_s1 + $0x1f0] sm:$0xff] }
  0xc9   :  { %913 = vmatpush.msrb.mxu2 %v9220_v13  ;;  %933 = vmatpush.msrb.mxu3 %v9221_v14  ;;  %v6078_v13 = vld [vmem:[%s8843_s1 + $0x140] sm:$0xff]  ;;  %v6083_v14 = vld [vmem:[%s8843_s1 + $0x148] sm:$0xff]  ;;  %9293 = vst [vmem:[#allocation25_spill] sm:$0xff] %v6449_v11 }
  0xca   :  { %874 = vmatpush.msrb.mxu0 %v9222_v15  ;;  %894 = vmatpush.msrb.mxu1 %v9223_v16  ;;  %9274 = vst [vmem:[#allocation7_spill] sm:$0xff] %v6021_v12 }
  0xcb   :  { %914 = vmatpush.msrb.mxu2 %v9222_v15  ;;  %934 = vmatpush.msrb.mxu3 %v9223_v16  ;;  %v6092_v15 = vld [vmem:[%s8843_s1 + $0x130] sm:$0xff]  ;;  %v6097_v16 = vld [vmem:[%s8843_s1 + $0x138] sm:$0xff] }
  0xcc   :  { %875 = vmatpush.msrb.mxu0 %v9224_v17  ;;  %895 = vmatpush.msrb.mxu1 %v9225_v18 }
  0xcd   :  { %915 = vmatpush.msrb.mxu2 %v9224_v17  ;;  %935 = vmatpush.msrb.mxu3 %v9225_v18  ;;  %v6106_v17 = vld [vmem:[%s8843_s1 + $0x120] sm:$0xff]  ;;  %v6111_v18 = vld [vmem:[%s8843_s1 + $0x128] sm:$0xff] }
  0xce   :  { %876 = vmatpush.msrb.mxu0 %v9226_v19  ;;  %896 = vmatpush.msrb.mxu1 %v9227_v20 }
  0xcf   :  { %916 = vmatpush.msrb.mxu2 %v9226_v19  ;;  %936 = vmatpush.msrb.mxu3 %v9227_v20  ;;  %v6120_v19 = vld [vmem:[%s8843_s1 + $0x110] sm:$0xff]  ;;  %v6125_v20 = vld [vmem:[%s8843_s1 + $0x118] sm:$0xff] }
  0xd0   :  { %4108 = vmatmul.msk.f32.vlgmr.msrb.gmra.mxu0 %vm98_vm0, %v9228_v21  ;;  %4109 = vmatmul.msk.f32.vlgmr.msrb.gmra.mxu1 %vm98_vm0, %v9228_v21 }
  0xd1   :  { %4110 = vmatmul.msk.f32.vlgmr.msrb.gmra.mxu2 %vm98_vm0, %v9229_v22  ;;  %4111 = vmatmul.msk.f32.vlgmr.msrb.gmra.mxu3 %vm98_vm0, %v9229_v22 }
  0xd2   :  { %973 = vmatpush.msra.mxu0 %v9230_v23  ;;  %993 = vmatpush.msra.mxu1 %v9231_v24 }
  0xd3   :  { %1013 = vmatpush.msra.mxu2 %v9230_v23  ;;  %1033 = vmatpush.msra.mxu3 %v9231_v24  ;;  %v6134_v23 = vld [vmem:[%s8843_s1 + $0x100] sm:$0xff]  ;;  %v6139_v24 = vld [vmem:[%s8843_s1 + $0x108] sm:$0xff] }
  0xd4   :  { %974 = vmatpush.msra.mxu0 %v9232_v25  ;;  %994 = vmatpush.msra.mxu1 %v9233_v26 }
  0xd5   :  { %1014 = vmatpush.msra.mxu2 %v9232_v25  ;;  %1034 = vmatpush.msra.mxu3 %v9233_v26  ;;  %v6148_v25 = vld [vmem:[%s8843_s1 + $0xf0] sm:$0xff]  ;;  %v6153_v26 = vld [vmem:[%s8843_s1 + $0xf8] sm:$0xff] }
  0xd6   :  { %975 = vmatpush.msra.mxu0 %v9234_v27  ;;  %995 = vmatpush.msra.mxu1 %v9235_v28 }
  0xd7   :  { %1015 = vmatpush.msra.mxu2 %v9234_v27  ;;  %1035 = vmatpush.msra.mxu3 %v9235_v28  ;;  %v6162_v27 = vld [vmem:[%s8843_s1 + $0xe0] sm:$0xff]  ;;  %v6167_v28 = vld [vmem:[%s8843_s1 + $0xe8] sm:$0xff] }
  0xd8   :  { %976 = vmatpush.msra.mxu0 %v9236_v29  ;;  %996 = vmatpush.msra.mxu1 %v9237_v30 }
  0xd9   :  { %1016 = vmatpush.msra.mxu2 %v9236_v29  ;;  %1036 = vmatpush.msra.mxu3 %v9237_v30  ;;  %v6176_v29 = vld [vmem:[%s8843_s1 + $0xd0] sm:$0xff]  ;;  %v6181_v30 = vld [vmem:[%s8843_s1 + $0xd8] sm:$0xff] }
  0xda   :  { %977 = vmatpush.msra.mxu0 %v9238_v31  ;;  %997 = vmatpush.msra.mxu1 %v9239_v32 }
  0xdb   :  { %1017 = vmatpush.msra.mxu2 %v9238_v31  ;;  %1037 = vmatpush.msra.mxu3 %v9239_v32  ;;  %v6190_v31 = vld [vmem:[%s8843_s1 + $0xc0] sm:$0xff]  ;;  %v6195_v32 = vld [vmem:[%s8843_s1 + $0xc8] sm:$0xff] }
  0xdc   :  { %978 = vmatpush.msra.mxu0 %v9240_v33  ;;  %998 = vmatpush.msra.mxu1 %v9241_v34 }
  0xdd   :  { %1018 = vmatpush.msra.mxu2 %v9240_v33  ;;  %1038 = vmatpush.msra.mxu3 %v9241_v34  ;;  %v6204_v33 = vld [vmem:[%s8843_s1 + $0xb0] sm:$0xff]  ;;  %v6209_v34 = vld [vmem:[%s8843_s1 + $0xb8] sm:$0xff] }
  0xde   :  { %979 = vmatpush.msra.mxu0 %v9242_v35  ;;  %999 = vmatpush.msra.mxu1 %v9243_v36 }
  0xdf   :  { %1019 = vmatpush.msra.mxu2 %v9242_v35  ;;  %1039 = vmatpush.msra.mxu3 %v9243_v36  ;;  %v6218_v35 = vld [vmem:[%s8843_s1 + $0xa0] sm:$0xff]  ;;  %v6223_v36 = vld [vmem:[%s8843_s1 + $0xa8] sm:$0xff] }
  0xe0   :  { %980 = vmatpush.msra.mxu0 %v9244_v37  ;;  %1000 = vmatpush.msra.mxu1 %v9245_v38 }
  0xe1   :  { %1020 = vmatpush.msra.mxu2 %v9244_v37  ;;  %1040 = vmatpush.msra.mxu3 %v9245_v38  ;;  %v6232_v37 = vld [vmem:[%s8843_s1 + $0x90] sm:$0xff]  ;;  %v6237_v38 = vld [vmem:[%s8843_s1 + $0x98] sm:$0xff] }
  0xe2   :  { %981 = vmatpush.msra.mxu0 %v9246_v39  ;;  %1001 = vmatpush.msra.mxu1 %v9247_v40 }
  0xe3   :  { %1021 = vmatpush.msra.mxu2 %v9246_v39  ;;  %1041 = vmatpush.msra.mxu3 %v9247_v40  ;;  %v6246_v39 = vld [vmem:[%s8843_s1 + $0x80] sm:$0xff]  ;;  %v6251_v40 = vld [vmem:[%s8843_s1 + $0x88] sm:$0xff] }
  0xe4   :  { %982 = vmatpush.msra.mxu0 %v9248_v41  ;;  %1002 = vmatpush.msra.mxu1 %v9249_v42 }
  0xe5   :  { %1022 = vmatpush.msra.mxu2 %v9248_v41  ;;  %1042 = vmatpush.msra.mxu3 %v9249_v42  ;;  %v6260_v41 = vld [vmem:[%s8843_s1 + $0x70] sm:$0xff]  ;;  %v6265_v42 = vld [vmem:[%s8843_s1 + $0x78] sm:$0xff] }
  0xe6   :  { %983 = vmatpush.msra.mxu0 %v9250_v43  ;;  %1003 = vmatpush.msra.mxu1 %v9251_v44 }
  0xe7   :  { %1023 = vmatpush.msra.mxu2 %v9250_v43  ;;  %1043 = vmatpush.msra.mxu3 %v9251_v44  ;;  %v6274_v43 = vld [vmem:[%s8843_s1 + $0x60] sm:$0xff]  ;;  %v6279_v44 = vld [vmem:[%s8843_s1 + $0x68] sm:$0xff] }
  0xe8   :  { %984 = vmatpush.msra.mxu0 %v9252_v45  ;;  %1004 = vmatpush.msra.mxu1 %v9253_v46 }
  0xe9   :  { %1024 = vmatpush.msra.mxu2 %v9252_v45  ;;  %1044 = vmatpush.msra.mxu3 %v9253_v46  ;;  %v6288_v45 = vld [vmem:[%s8843_s1 + $0x50] sm:$0xff]  ;;  %v6293_v46 = vld [vmem:[%s8843_s1 + $0x58] sm:$0xff] }
  0xea   :  { %4136 = vmatmul.msk.f32.vlgmr.msra.gmra.mxu0 %vm98_vm0, %v5728_v55  ;;  %4137 = vmatmul.msk.f32.vlgmr.msra.gmra.mxu1 %vm98_vm0, %v5728_v55 }
  0xeb   :  { %4138 = vmatmul.msk.f32.vlgmr.msra.gmra.mxu2 %vm98_vm0, %v5733_v61  ;;  %4139 = vmatmul.msk.f32.vlgmr.msra.gmra.mxu3 %vm98_vm0, %v5733_v61 }
  0xec   :  { %1084 = vmatpush.msrb.mxu0 %v9254_v47  ;;  %1104 = vmatpush.msrb.mxu1 %v9255_v48 }
  0xed   :  { %1127 = vmatpush.msrb.mxu2 %v9254_v47  ;;  %1147 = vmatpush.msrb.mxu3 %v9255_v48  ;;  %v6302_v47 = vld [vmem:[%s8843_s1 + $0x40] sm:$0xff]  ;;  %v6307_v48 = vld [vmem:[%s8843_s1 + $0x48] sm:$0xff] }
  0xee   :  { %1085 = vmatpush.msrb.mxu0 %v9256_v49  ;;  %1105 = vmatpush.msrb.mxu1 %v9257_v50  ;;  %9275 = vst [vmem:[#allocation8_spill] sm:$0xff] %v6302_v47 }
  0xef   :  { %1128 = vmatpush.msrb.mxu2 %v9256_v49  ;;  %1148 = vmatpush.msrb.mxu3 %v9257_v50  ;;  %9276 = vst [vmem:[#allocation9_spill] sm:$0xff] %v6307_v48  ;;  %v6318_v49 = vld [vmem:[%s8843_s1 + $0x30] sm:$0xff]  ;;  %v6323_v50 = vld [vmem:[%s8843_s1 + $0x38] sm:$0xff] }
  0xf0   :  { %1086 = vmatpush.msrb.mxu0 %v9258_v51  ;;  %1106 = vmatpush.msrb.mxu1 %v9259_v52  ;;  %9277 = vst [vmem:[#allocation10_spill] sm:$0xff] %v6318_v49 }
  0xf1   :  { %1129 = vmatpush.msrb.mxu2 %v9258_v51  ;;  %1149 = vmatpush.msrb.mxu3 %v9259_v52  ;;  %9278 = vst [vmem:[#allocation11_spill] sm:$0xff] %v6323_v50  ;;  %v6334_v51 = vld [vmem:[%s8843_s1 + $0x20] sm:$0xff]  ;;  %v6339_v52 = vld [vmem:[%s8843_s1 + $0x28] sm:$0xff] }
  0xf2   :  { %1087 = vmatpush.msrb.mxu0 %v9260_v53  ;;  %1107 = vmatpush.msrb.mxu1 %v9261_v54  ;;  %9279 = vst [vmem:[#allocation12_spill] sm:$0xff] %v6334_v51 }
  0xf3   :  { %1130 = vmatpush.msrb.mxu2 %v9260_v53  ;;  %1150 = vmatpush.msrb.mxu3 %v9261_v54  ;;  %9280 = vst [vmem:[#allocation13_spill] sm:$0xff] %v6339_v52  ;;  %v6353_v53 = vld [vmem:[%s8843_s1 + $0x18] sm:$0xff]  ;;  %v6362_v54 = vld [vmem:[%s8843_s1] sm:$0xff] }
  0xf4   :  { %1088 = vmatpush.msrb.mxu0 %v9262_v59  ;;  %1108 = vmatpush.msrb.mxu1 %v9263_v63  ;;  %9282 = vst [vmem:[#allocation14_spill] sm:$0xff] %v6353_v53 }
  0xf5   :  { %1131 = vmatpush.msrb.mxu2 %v9262_v59  ;;  %1151 = vmatpush.msrb.mxu3 %v9263_v63  ;;  %9283 = vst [vmem:[#allocation15_spill] sm:$0xff] %v6362_v54  ;;  %v6367_v59 = vld [vmem:[%s8843_s1 + $0x8] sm:$0xff]  ;;  %v6373_v63 = vpop.f32.mrf.mxu0 }
  0xf6   :  { %1089 = vmatpush.msrb.mxu0 %v9264_v0  ;;  %1109 = vmatpush.msrb.mxu1 %v9265_v1  ;;  %9284 = vst [vmem:[#allocation16_spill] sm:$0xff] %v6367_v59 }
  0xf7   :  { %1132 = vmatpush.msrb.mxu2 %v9264_v0  ;;  %1152 = vmatpush.msrb.mxu3 %v9265_v1  ;;  %v6375_v0 = vpop.f32.mrf.mxu1  ;;  %v6384_v1 = vld [vmem:[%s8843_s1 + $0x230] sm:$0xff] }
  0xf8   :  { %1090 = vmatpush.msrb.mxu0 %v9266_v2  ;;  %1110 = vmatpush.msrb.mxu1 %v9267_v3  ;;  %9285 = vst [vmem:[#allocation17_spill] sm:$0xff] %v6384_v1 }
  0xf9   :  { %1133 = vmatpush.msrb.mxu2 %v9266_v2  ;;  %1153 = vmatpush.msrb.mxu3 %v9267_v3  ;;  %v6389_v2 = vld [vmem:[%s8843_s1 + $0x238] sm:$0xff]  ;;  %v6398_v3 = vld [vmem:[%s8842_s0 + $0x30] sm:$0xff] }
  0xfa   :  { %1091 = vmatpush.msrb.mxu0 %v9268_v4  ;;  %1111 = vmatpush.msrb.mxu1 %v9269_v5  ;;  %9286 = vst [vmem:[#allocation18_spill] sm:$0xff] %v6389_v2 }
  0xfb   :  { %1134 = vmatpush.msrb.mxu2 %v9268_v4  ;;  %1154 = vmatpush.msrb.mxu3 %v9269_v5  ;;  %v6407_v4 = vld [vmem:[%s8843_s1 + $0x220] sm:$0xff]  ;;  %v6421_v5 = vld [vmem:[%s8843_s1 + $0x210] sm:$0xff] }
  0xfc   :  { %1092 = vmatpush.msrb.mxu0 %v9270_v6  ;;  %1112 = vmatpush.msrb.mxu1 %v9271_v7  ;;  %9287 = vst [vmem:[#allocation19_spill] sm:$0xff] %v6407_v4 }
  0xfd   :  { %1135 = vmatpush.msrb.mxu2 %v9270_v6  ;;  %1155 = vmatpush.msrb.mxu3 %v9271_v7  ;;  %9289 = vst [vmem:[#allocation21_spill] sm:$0xff] %v6421_v5  ;;  %v6426_v6 = vld [vmem:[%s8843_s1 + $0x218] sm:$0xff]  ;;  %v6435_v7 = vld [vmem:[%s8843_s1 + $0x200] sm:$0xff] }
  0xfe   :  { %1093 = vmatpush.msrb.mxu0 %v9272_v9  ;;  %1113 = vmatpush.msrb.mxu1 %v5697_v62  ;;  %9290 = vst [vmem:[#allocation22_spill] sm:$0xff] %v6426_v6 }
  0xff   :  { %1136 = vmatpush.msrb.mxu2 %v9272_v9  ;;  %1156 = vmatpush.msrb.mxu3 %v5697_v62  ;;  %v6032_v62 = vld [vmem:[%s8843_s1 + $0x170] sm:$0xff]  ;;  %9291 = vst [vmem:[#allocation23_spill] sm:$0xff] %v6435_v7  ;;  %v6440_v9 = vld [vmem:[%s8843_s1 + $0x208] sm:$0xff] }
 0x100   :  { %1094 = vmatpush.msrb.mxu0 %v5706_v56  ;;  %1114 = vmatpush.msrb.mxu1 %v5711_v57  ;;  %9292 = vst [vmem:[#allocation24_spill] sm:$0xff] %v6440_v9 }
 0x101   :  { %1137 = vmatpush.msrb.mxu2 %v5706_v56  ;;  %1157 = vmatpush.msrb.mxu3 %v5711_v57  ;;  %v6050_v56 = vld [vmem:[%s8843_s1 + $0x160] sm:$0xff]  ;;  %v6055_v57 = vld [vmem:[%s8843_s1 + $0x168] sm:$0xff] }
 0x102   :  { %1095 = vmatpush.msrb.mxu0 %v5720_v60  ;;  %1115 = vmatpush.msrb.mxu1 %v5725_v58 }
 0x103   :  { %1138 = vmatpush.msrb.mxu2 %v5720_v60  ;;  %1158 = vmatpush.msrb.mxu3 %v5725_v58  ;;  %v6064_v58 = vld [vmem:[%s8843_s1 + $0x150] sm:$0xff]  ;;  %v6069_v60 = vld [vmem:[%s8843_s1 + $0x158] sm:$0xff] }
 0x104   :  { %4164 = vmatmul.msk.f32.vlgmr.msrb.gmra.mxu0 %vm98_vm0, %v6014_v10  ;;  %4165 = vmatmul.msk.f32.vlgmr.msrb.gmra.mxu1 %vm98_vm0, %v6014_v10 }
 0x105   :  { %4166 = vmatmul.msk.f32.vlgmr.msrb.gmra.mxu2 %vm98_vm0, %v6021_v12  ;;  %4167 = vmatmul.msk.f32.vlgmr.msrb.gmra.mxu3 %vm98_vm0, %v6021_v12 }
 0x106   :  { %1227 = vmatpush.msra.mxu0 %v6032_v62  ;;  %1247 = vmatpush.msra.mxu1 %v6037_v8 }
 0x107   :  { %1267 = vmatpush.msra.mxu2 %v6032_v62  ;;  %1287 = vmatpush.msra.mxu3 %v6037_v8 }
 0x108   :  { %1228 = vmatpush.msra.mxu0 %v6050_v56  ;;  %1248 = vmatpush.msra.mxu1 %v6055_v57 }
 0x109   :  { %1268 = vmatpush.msra.mxu2 %v6050_v56  ;;  %1288 = vmatpush.msra.mxu3 %v6055_v57 }
 0x10a   :  { %1229 = vmatpush.msra.mxu0 %v6064_v58  ;;  %1249 = vmatpush.msra.mxu1 %v6069_v60 }
 0x10b   :  { %1269 = vmatpush.msra.mxu2 %v6064_v58  ;;  %1289 = vmatpush.msra.mxu3 %v6069_v60 }
 0x10c   :  { %1230 = vmatpush.msra.mxu0 %v6078_v13  ;;  %1250 = vmatpush.msra.mxu1 %v6083_v14 }
 0x10d   :  { %1270 = vmatpush.msra.mxu2 %v6078_v13  ;;  %1290 = vmatpush.msra.mxu3 %v6083_v14 }
 0x10e   :  { %1231 = vmatpush.msra.mxu0 %v6092_v15  ;;  %1251 = vmatpush.msra.mxu1 %v6097_v16 }
 0x10f   :  { %1271 = vmatpush.msra.mxu2 %v6092_v15  ;;  %1291 = vmatpush.msra.mxu3 %v6097_v16 }
 0x110   :  { %1232 = vmatpush.msra.mxu0 %v6106_v17  ;;  %1252 = vmatpush.msra.mxu1 %v6111_v18 }
 0x111   :  { %1272 = vmatpush.msra.mxu2 %v6106_v17  ;;  %1292 = vmatpush.msra.mxu3 %v6111_v18 }
 0x112   :  { %1233 = vmatpush.msra.mxu0 %v6120_v19  ;;  %1253 = vmatpush.msra.mxu1 %v6125_v20 }
 0x113   :  { %1273 = vmatpush.msra.mxu2 %v6120_v19  ;;  %1293 = vmatpush.msra.mxu3 %v6125_v20 }
 0x114   :  { %1234 = vmatpush.msra.mxu0 %v6134_v23  ;;  %1254 = vmatpush.msra.mxu1 %v6139_v24 }
 0x115   :  { %1274 = vmatpush.msra.mxu2 %v6134_v23  ;;  %1294 = vmatpush.msra.mxu3 %v6139_v24 }
 0x116   :  { %1235 = vmatpush.msra.mxu0 %v6148_v25  ;;  %1255 = vmatpush.msra.mxu1 %v6153_v26 }
 0x117   :  { %1275 = vmatpush.msra.mxu2 %v6148_v25  ;;  %1295 = vmatpush.msra.mxu3 %v6153_v26 }
 0x118   :  { %1236 = vmatpush.msra.mxu0 %v6162_v27  ;;  %1256 = vmatpush.msra.mxu1 %v6167_v28 }
 0x119   :  { %1276 = vmatpush.msra.mxu2 %v6162_v27  ;;  %1296 = vmatpush.msra.mxu3 %v6167_v28 }
 0x11a   :  { %1237 = vmatpush.msra.mxu0 %v6176_v29  ;;  %1257 = vmatpush.msra.mxu1 %v6181_v30 }
 0x11b   :  { %1277 = vmatpush.msra.mxu2 %v6176_v29  ;;  %1297 = vmatpush.msra.mxu3 %v6181_v30 }
 0x11c   :  { %1238 = vmatpush.msra.mxu0 %v6190_v31  ;;  %1258 = vmatpush.msra.mxu1 %v6195_v32 }
 0x11d   :  { %1278 = vmatpush.msra.mxu2 %v6190_v31  ;;  %1298 = vmatpush.msra.mxu3 %v6195_v32 }
 0x11e   :  { %1307 = vmatpush.msrb.mxu0 %v6204_v33  ;;  %1327 = vmatpush.msrb.mxu1 %v6209_v34 }
 0x11f   :  { %1347 = vmatpush.msrb.mxu2 %v6204_v33  ;;  %1367 = vmatpush.msrb.mxu3 %v6209_v34 }
 0x120   :  { %1308 = vmatpush.msrb.mxu0 %v6218_v35  ;;  %1328 = vmatpush.msrb.mxu1 %v6223_v36 }
 0x121   :  { %1348 = vmatpush.msrb.mxu2 %v6218_v35  ;;  %1368 = vmatpush.msrb.mxu3 %v6223_v36 }
 0x122   :  { %1309 = vmatpush.msrb.mxu0 %v6232_v37  ;;  %1329 = vmatpush.msrb.mxu1 %v6237_v38 }
 0x123   :  { %1349 = vmatpush.msrb.mxu2 %v6232_v37  ;;  %1369 = vmatpush.msrb.mxu3 %v6237_v38 }
 0x124   :  { %1310 = vmatpush.msrb.mxu0 %v6246_v39  ;;  %1330 = vmatpush.msrb.mxu1 %v6251_v40 }
 0x125   :  { %1350 = vmatpush.msrb.mxu2 %v6246_v39  ;;  %1370 = vmatpush.msrb.mxu3 %v6251_v40 }
 0x126   :  { %1311 = vmatpush.msrb.mxu0 %v6260_v41  ;;  %1331 = vmatpush.msrb.mxu1 %v6265_v42 }
 0x127   :  { %1351 = vmatpush.msrb.mxu2 %v6260_v41  ;;  %1371 = vmatpush.msrb.mxu3 %v6265_v42 }
 0x128   :  { %1312 = vmatpush.msrb.mxu0 %v6274_v43  ;;  %1332 = vmatpush.msrb.mxu1 %v6279_v44 }
 0x129   :  { %1352 = vmatpush.msrb.mxu2 %v6274_v43  ;;  %1372 = vmatpush.msrb.mxu3 %v6279_v44 }
 0x12a   :  { %1313 = vmatpush.msrb.mxu0 %v6288_v45  ;;  %1333 = vmatpush.msrb.mxu1 %v6293_v46 }
 0x12b   :  { %1353 = vmatpush.msrb.mxu2 %v6288_v45  ;;  %1373 = vmatpush.msrb.mxu3 %v6293_v46 }
 0x12c   :  { %1314 = vmatpush.msrb.mxu0 %v6302_v47  ;;  %1334 = vmatpush.msrb.mxu1 %v6307_v48 }
 0x12d   :  { %1354 = vmatpush.msrb.mxu2 %v6302_v47  ;;  %1374 = vmatpush.msrb.mxu3 %v6307_v48 }
 0x12e   :  { %4194 = vmatmul.msk.f32.vlgmr.msra.gmra.mxu2 %vm98_vm0, %v9229_v22  ;;  %4195 = vmatmul.msk.f32.vlgmr.msra.gmra.mxu3 %vm98_vm0, %v9229_v22  ;;  %v6348_v22 = vld [vmem:[%s8843_s1 + $0x10] sm:$0xff] }
 0x12f   :  { %1315 = vmatpush.msrb.mxu0 %v6318_v49  ;;  %1335 = vmatpush.msrb.mxu1 %v6323_v50  ;;  %9281 = vst [vmem:[#allocation5_spill] sm:$0xff] %v6348_v22 }
 0x130   :  { %1355 = vmatpush.msrb.mxu2 %v6318_v49  ;;  %1375 = vmatpush.msrb.mxu3 %v6323_v50 }
 0x131   :  { %1316 = vmatpush.msrb.mxu0 %v6334_v51  ;;  %1336 = vmatpush.msrb.mxu1 %v6339_v52 }
 0x132   :  { %1356 = vmatpush.msrb.mxu2 %v6334_v51  ;;  %1376 = vmatpush.msrb.mxu3 %v6339_v52 }
 0x133   :  { %1317 = vmatpush.msrb.mxu0 %v6348_v22  ;;  %1337 = vmatpush.msrb.mxu1 %v6353_v53 }
 0x134   :  { %1357 = vmatpush.msrb.mxu2 %v6348_v22  ;;  %1377 = vmatpush.msrb.mxu3 %v6353_v53 }
 0x135   :  { %1318 = vmatpush.msrb.mxu0 %v6362_v54  ;;  %1338 = vmatpush.msrb.mxu1 %v6367_v59 }
 0x136   :  { %1358 = vmatpush.msrb.mxu2 %v6362_v54  ;;  %1378 = vmatpush.msrb.mxu3 %v6367_v59  ;;  %v6522_v59 = vld [vmem:[%s8843_s1 + $0x1b0] sm:$0xff]  ;;  %v6527_v54 = vld [vmem:[%s8843_s1 + $0x1b8] sm:$0xff] }
 0x137   :  { %4192 = vmatmul.msk.f32.vlgmr.msra.gmra.mxu0 %vm98_vm0, %v9228_v21  ;;  %4193 = vmatmul.msk.f32.vlgmr.msra.gmra.mxu1 %vm98_vm0, %v9228_v21  ;;  %v6412_v21 = vld [vmem:[%s8843_s1 + $0x228] sm:$0xff]  ;;  %9301 = vst [vmem:[#allocation31_spill] sm:$0xff] %v6522_v59 }
 0x138   :  { %4198 = vmatmul.msk.f32.vlgmr.msrb.gmra.mxu2 %vm98_vm0, %v6398_v3  ;;  %4199 = vmatmul.msk.f32.vlgmr.msrb.gmra.mxu3 %vm98_vm0, %v6398_v3  ;;  %9288 = vst [vmem:[#allocation20_spill] sm:$0xff] %v6412_v21 }
 0x139   :  { %1411 = vmatpush.msra.mxu0 %v6384_v1  ;;  %1431 = vmatpush.msra.mxu1 %v6389_v2  ;;  %9302 = vst [vmem:[#allocation32_spill] sm:$0xff] %v6527_v54 }
 0x13a   :  { %1451 = vmatpush.msra.mxu2 %v6384_v1  ;;  %1471 = vmatpush.msra.mxu3 %v6389_v2  ;;  %v6458_v2 = vpop.f32.mrf.mxu1 }
 0x13b   :  { %1412 = vmatpush.msra.mxu0 %v6407_v4  ;;  %1432 = vmatpush.msra.mxu1 %v6412_v21  ;;  %v226_v47 = vadd.f32 %v6458_v2, %v6375_v0  ;;  %v6886_v0 = vld [vmem:[%s8843_s1 + $0x348] sm:$0xff] }
 0x13c   :  { %1452 = vmatpush.msra.mxu2 %v6407_v4  ;;  %1472 = vmatpush.msra.mxu3 %v6412_v21  ;;  %v6454_v21 = vld [vmem:[%s8843_s1 + $0x1f8] sm:$0xff]  ;;  %v6456_v4 = vpop.f32.mrf.mxu0 }
 0x13d   :  { %1413 = vmatpush.msra.mxu0 %v6421_v5  ;;  %1433 = vmatpush.msra.mxu1 %v6426_v6  ;;  %9294 = vst [vmem:[#allocation50_spill] sm:$0xff] %v6454_v21  ;;  %v206_v48 = vadd.f32 %v6456_v4, %v6373_v63 }
 0x13e   :  { %1453 = vmatpush.msra.mxu2 %v6421_v5  ;;  %1473 = vmatpush.msra.mxu3 %v6426_v6  ;;  %v6467_v6 = vld [vmem:[%s8843_s1 + $0x1e0] sm:$0xff]  ;;  %v6472_v5 = vld [vmem:[%s8843_s1 + $0x1e8] sm:$0xff] }
 0x13f   :  { %1414 = vmatpush.msra.mxu0 %v6435_v7  ;;  %1434 = vmatpush.msra.mxu1 %v6440_v9  ;;  %9295 = vst [vmem:[#allocation51_spill] sm:$0xff] %v6467_v6 }
 0x140   :  { %1454 = vmatpush.msra.mxu2 %v6435_v7  ;;  %1474 = vmatpush.msra.mxu3 %v6440_v9  ;;  %9296 = vst [vmem:[#allocation26_spill] sm:$0xff] %v6472_v5  ;;  %v6483_v9 = vld [vmem:[%s8843_s1 + $0x1d0] sm:$0xff]  ;;  %v6488_v7 = vld [vmem:[%s8843_s1 + $0x1d8] sm:$0xff] }
 0x141   :  { %1415 = vmatpush.msra.mxu0 %v6449_v11  ;;  %1435 = vmatpush.msra.mxu1 %v6454_v21  ;;  %9297 = vst [vmem:[#allocation27_spill] sm:$0xff] %v6483_v9 }
 0x142   :  { %1455 = vmatpush.msra.mxu2 %v6449_v11  ;;  %1475 = vmatpush.msra.mxu3 %v6454_v21  ;;  %9298 = vst [vmem:[#allocation28_spill] sm:$0xff] %v6488_v7  ;;  %v6495_v21 = vld [vmem:[%s8842_s0 + $0x10] sm:$0xff]  ;;  %v6504_v11 = vld [vmem:[%s8843_s1 + $0x1c0] sm:$0xff]  ;;  %v6515_v1 = vpop.f32.mrf.mxu1 }
 0x143   :  { %1416 = vmatpush.msra.mxu0 %v6467_v6  ;;  %1436 = vmatpush.msra.mxu1 %v6472_v5  ;;  %9299 = vst [vmem:[#allocation29_spill] sm:$0xff] %v6504_v11  ;;  %v383_v2 = vadd.f32 %v6515_v1, %v226_v47  ;;  %v6905_v47 = vld [vmem:[%s8843_s1 + $0x338] sm:$0xff] }
 0x144   :  { %1456 = vmatpush.msra.mxu2 %v6467_v6  ;;  %1476 = vmatpush.msra.mxu3 %v6472_v5  ;;  %v6509_v5 = vld [vmem:[%s8843_s1 + $0x1c8] sm:$0xff]  ;;  %v6513_v6 = vpop.f32.mrf.mxu0 }
 0x145   :  { %4196 = vmatmul.msk.f32.vlgmr.msrb.gmra.mxu0 %vm98_vm0, %v6495_v21  ;;  %4197 = vmatmul.msk.f32.vlgmr.msrb.gmra.mxu1 %vm98_vm0, %v6495_v21  ;;  %9300 = vst [vmem:[#allocation30_spill] sm:$0xff] %v6509_v5  ;;  %v382_v63 = vadd.f32 %v6513_v6, %v206_v48  ;;  %v47_v48 = vld [vmem:[%s8844_s2] sm:$0x3] }
 0x146   :  { %1417 = vmatpush.msra.mxu0 %v6483_v9  ;;  %1437 = vmatpush.msra.mxu1 %v6488_v7 }
 0x147   :  { %1457 = vmatpush.msra.mxu2 %v6483_v9  ;;  %1477 = vmatpush.msra.mxu3 %v6488_v7  ;;  %v6536_v7 = vld [vmem:[%s8843_s1 + $0x1a0] sm:$0xff]  ;;  %v6541_v9 = vld [vmem:[%s8843_s1 + $0x1a8] sm:$0xff] }
 0x148   :  { %1418 = vmatpush.msra.mxu0 %v6504_v11  ;;  %1438 = vmatpush.msra.mxu1 %v6509_v5  ;;  %9303 = vst [vmem:[#allocation33_spill] sm:$0xff] %v6536_v7 }
 0x149   :  { %1458 = vmatpush.msra.mxu2 %v6504_v11  ;;  %1478 = vmatpush.msra.mxu3 %v6509_v5  ;;  %9304 = vst [vmem:[#allocation34_spill] sm:$0xff] %v6541_v9  ;;  %v6550_v5 = vld [vmem:[%s8843_s1 + $0x190] sm:$0xff]  ;;  %v6555_v11 = vld [vmem:[%s8843_s1 + $0x198] sm:$0xff] }
 0x14a   :  { %1419 = vmatpush.msra.mxu0 %v6522_v59  ;;  %1439 = vmatpush.msra.mxu1 %v6527_v54  ;;  %9305 = vst [vmem:[#allocation35_spill] sm:$0xff] %v6550_v5  ;;  %v6575_v22 = vpop.f32.mrf.mxu1 }
 0x14b   :  { %1459 = vmatpush.msra.mxu2 %v6522_v59  ;;  %1479 = vmatpush.msra.mxu3 %v6527_v54  ;;  %9306 = vst [vmem:[#allocation36_spill] sm:$0xff] %v6555_v11  ;;  %v6564_v54 = vld [vmem:[%s8843_s1 + $0x180] sm:$0xff]  ;;  %v6569_v59 = vld [vmem:[%s8843_s1 + $0x188] sm:$0xff]  ;;  %v498_v1 = vadd.f32 %v6575_v22, %v383_v2  ;;  %v6939_v2 = vld [vmem:[%s8843_s1 + $0x310] sm:$0xff] }
 0x14c   :  { %1420 = vmatpush.msra.mxu0 %v6536_v7  ;;  %1440 = vmatpush.msra.mxu1 %v6541_v9  ;;  %9307 = vst [vmem:[#allocation37_spill] sm:$0xff] %v6564_v54  ;;  %v6573_v53 = vpop.f32.mrf.mxu0  ;;  %v6922_v22 = vld [vmem:[%s8843_s1 + $0x320] sm:$0xff] }
 0x14d   :  { %1460 = vmatpush.msra.mxu2 %v6536_v7  ;;  %1480 = vmatpush.msra.mxu3 %v6541_v9  ;;  %9308 = vst [vmem:[#allocation38_spill] sm:$0xff] %v6569_v59  ;;  %v6586_v9 = vld [vmem:[%s8843_s1 + $0x2f0] sm:$0xff]  ;;  %v6591_v7 = vld [vmem:[%s8843_s1 + $0x2f8] sm:$0xff]  ;;  %v497_v6 = vadd.f32 %v6573_v53, %v382_v63 }
 0x14e   :  { %1421 = vmatpush.msra.mxu0 %v6550_v5  ;;  %1441 = vmatpush.msra.mxu1 %v6555_v11  ;;  %9309 = vst [vmem:[#allocation39_spill] sm:$0xff] %v6586_v9 }
 0x14f   :  { %1461 = vmatpush.msra.mxu2 %v6550_v5  ;;  %1481 = vmatpush.msra.mxu3 %v6555_v11  ;;  %9310 = vst [vmem:[#allocation40_spill] sm:$0xff] %v6591_v7  ;;  %v6618_v11 = vld [vmem:[%s8843_s1 + $0x2d0] sm:$0xff]  ;;  %v6623_v5 = vld [vmem:[%s8843_s1 + $0x2d8] sm:$0xff] }
 0x150   :  { %1422 = vmatpush.msra.mxu0 %v6564_v54  ;;  %1442 = vmatpush.msra.mxu1 %v6569_v59  ;;  %9313 = vst [vmem:[#allocation43_spill] sm:$0xff] %v6618_v11 }
 0x151   :  { %1462 = vmatpush.msra.mxu2 %v6564_v54  ;;  %1482 = vmatpush.msra.mxu3 %v6569_v59  ;;  %v6604_v59 = vld [vmem:[%s8843_s1 + $0x2e0] sm:$0xff]  ;;  %v6609_v54 = vld [vmem:[%s8843_s1 + $0x2e8] sm:$0xff]  ;;  %9314 = vst [vmem:[#allocation44_spill] sm:$0xff] %v6623_v5 }
 0x152   :  { %4224 = vmatmul.msk.f32.vlgmr.msra.gmra.mxu0 %vm98_vm0, %v5728_v55  ;;  %4225 = vmatmul.msk.f32.vlgmr.msra.gmra.mxu1 %vm98_vm0, %v5728_v55  ;;  %9311 = vst [vmem:[#allocation41_spill] sm:$0xff] %v6604_v59  ;;  %v6629_v52 = vpop.f32.mrf.mxu1 }
 0x153   :  { %4226 = vmatmul.msk.f32.vlgmr.msra.gmra.mxu2 %vm98_vm0, %v5733_v61  ;;  %4227 = vmatmul.msk.f32.vlgmr.msra.gmra.mxu3 %vm98_vm0, %v5733_v61  ;;  %9312 = vst [vmem:[#allocation42_spill] sm:$0xff] %v6609_v54 }
 0x154   :  { %1519 = vmatpush.msrb.mxu0 %v6586_v9  ;;  %1539 = vmatpush.msrb.mxu1 %v6591_v7  ;;  %v6627_v55 = vpop.f32.mrf.mxu0 }
 0x155   :  { %1559 = vmatpush.msrb.mxu2 %v6586_v9  ;;  %1579 = vmatpush.msrb.mxu3 %v6591_v7  ;;  %v6636_v7 = vld [vmem:[%s8843_s1 + $0x2c0] sm:$0xff]  ;;  %v6641_v9 = vld [vmem:[%s8843_s1 + $0x2c8] sm:$0xff]  ;;  %v612_v63 = vadd.f32 %v6627_v55, %v497_v6 }
 0x156   :  { %1520 = vmatpush.msrb.mxu0 %v6604_v59  ;;  %1540 = vmatpush.msrb.mxu1 %v6609_v54  ;;  %9315 = vst [vmem:[#allocation45_spill] sm:$0xff] %v6636_v7 }
 0x157   :  { %1560 = vmatpush.msrb.mxu2 %v6604_v59  ;;  %1580 = vmatpush.msrb.mxu3 %v6609_v54  ;;  %9316 = vst [vmem:[#allocation46_spill] sm:$0xff] %v6641_v9  ;;  %v6650_v54 = vld [vmem:[%s8843_s1 + $0x2b0] sm:$0xff]  ;;  %v6655_v59 = vld [vmem:[%s8843_s1 + $0x2b8] sm:$0xff] }
 0x158   :  { %1521 = vmatpush.msrb.mxu0 %v6618_v11  ;;  %1541 = vmatpush.msrb.mxu1 %v6623_v5  ;;  %9317 = vst [vmem:[#allocation47_spill] sm:$0xff] %v6650_v54 }
 0x159   :  { %1561 = vmatpush.msrb.mxu2 %v6618_v11  ;;  %1581 = vmatpush.msrb.mxu3 %v6623_v5  ;;  %9318 = vst [vmem:[#allocation48_spill] sm:$0xff] %v6655_v59  ;;  %v6664_v5 = vld [vmem:[%s8843_s1 + $0x2a0] sm:$0xff]  ;;  %v6669_v11 = vld [vmem:[%s8843_s1 + $0x2a8] sm:$0xff] }
 0x15a   :  { %1522 = vmatpush.msrb.mxu0 %v6636_v7  ;;  %1542 = vmatpush.msrb.mxu1 %v6641_v9  ;;  %9319 = vst [vmem:[#allocation49_spill] sm:$0xff] %v6664_v5  ;;  %v6689_v50 = vpop.f32.mrf.mxu1 }
 0x15b   :  { %1562 = vmatpush.msrb.mxu2 %v6636_v7  ;;  %1582 = vmatpush.msrb.mxu3 %v6641_v9  ;;  %9320 = vst [vmem:[#allocation52_spill] sm:$0xff] %v6669_v11  ;;  %v6678_v9 = vld [vmem:[%s8843_s1 + $0x290] sm:$0xff]  ;;  %v6683_v7 = vld [vmem:[%s8843_s1 + $0x298] sm:$0xff] }
 0x15c   :  { %1523 = vmatpush.msrb.mxu0 %v6650_v54  ;;  %1543 = vmatpush.msrb.mxu1 %v6655_v59  ;;  %9321 = vst [vmem:[#allocation53_spill] sm:$0xff] %v6678_v9  ;;  %v6687_v51 = vpop.f32.mrf.mxu0 }
 0x15d   :  { %1563 = vmatpush.msrb.mxu2 %v6650_v54  ;;  %1583 = vmatpush.msrb.mxu3 %v6655_v59  ;;  %9322 = vst [vmem:[#allocation54_spill] sm:$0xff] %v6683_v7  ;;  %v6696_v59 = vld [vmem:[%s8843_s1 + $0x280] sm:$0xff]  ;;  %v6701_v54 = vld [vmem:[%s8843_s1 + $0x288] sm:$0xff] }
 0x15e   :  { %1524 = vmatpush.msrb.mxu0 %v6664_v5  ;;  %1544 = vmatpush.msrb.mxu1 %v6669_v11  ;;  %9323 = vst [vmem:[#allocation55_spill] sm:$0xff] %v6696_v59 }
 0x15f   :  { %1564 = vmatpush.msrb.mxu2 %v6664_v5  ;;  %1584 = vmatpush.msrb.mxu3 %v6669_v11  ;;  %9324 = vst [vmem:[#allocation56_spill] sm:$0xff] %v6701_v54  ;;  %v6710_v11 = vld [vmem:[%s8843_s1 + $0x270] sm:$0xff]  ;;  %v6715_v5 = vld [vmem:[%s8843_s1 + $0x278] sm:$0xff] }
 0x160   :  { %1525 = vmatpush.msrb.mxu0 %v6678_v9  ;;  %1545 = vmatpush.msrb.mxu1 %v6683_v7  ;;  %9325 = vst [vmem:[#allocation57_spill] sm:$0xff] %v6710_v11 }
 0x161   :  { %1565 = vmatpush.msrb.mxu2 %v6678_v9  ;;  %1585 = vmatpush.msrb.mxu3 %v6683_v7  ;;  %9326 = vst [vmem:[#allocation58_spill] sm:$0xff] %v6715_v5  ;;  %v6724_v7 = vld [vmem:[%s8843_s1 + $0x260] sm:$0xff]  ;;  %v6729_v9 = vld [vmem:[%s8843_s1 + $0x268] sm:$0xff] }
 0x162   :  { %1526 = vmatpush.msrb.mxu0 %v6696_v59  ;;  %1546 = vmatpush.msrb.mxu1 %v6701_v54  ;;  %9327 = vst [vmem:[#allocation59_spill] sm:$0xff] %v6724_v7  ;;  %v6763_v61 = vpop.f32.mrf.mxu1 }
 0x163   :  { %1566 = vmatpush.msrb.mxu2 %v6696_v59  ;;  %1586 = vmatpush.msrb.mxu3 %v6701_v54  ;;  %9328 = vst [vmem:[#allocation60_spill] sm:$0xff] %v6729_v9  ;;  %v6738_v54 = vld [vmem:[%s8843_s1 + $0x250] sm:$0xff]  ;;  %v6743_v59 = vld [vmem:[%s8843_s1 + $0x258] sm:$0xff]  ;;  %v795_v53 = vadd.f32 %v6763_v61, %v6689_v50  ;;  %v6927_v61 = vld [vmem:[%s8843_s1 + $0x328] sm:$0xff]  ;;  %v6930_v50 = vperm.slane %v47_v48, 1 }
 0x164   :  { %1527 = vmatpush.msrb.mxu0 %v6710_v11  ;;  %1547 = vmatpush.msrb.mxu1 %v6715_v5  ;;  %9329 = vst [vmem:[#allocation61_spill] sm:$0xff] %v6738_v54  ;;  %v6761_v49 = vpop.f32.mrf.mxu0 }
 0x165   :  { %1567 = vmatpush.msrb.mxu2 %v6710_v11  ;;  %1587 = vmatpush.msrb.mxu3 %v6715_v5  ;;  %9330 = vst [vmem:[#allocation62_spill] sm:$0xff] %v6743_v59  ;;  %v6752_v5 = vld [vmem:[%s8843_s1 + $0x240] sm:$0xff]  ;;  %v6757_v11 = vld [vmem:[%s8843_s1 + $0x248] sm:$0xff] }
 0x166   :  { %1528 = vmatpush.msrb.mxu0 %v6724_v7  ;;  %1548 = vmatpush.msrb.mxu1 %v6729_v9  ;;  %9331 = vst [vmem:[#allocation63_spill] sm:$0xff] %v6752_v5 }
 0x167   :  { %1568 = vmatpush.msrb.mxu2 %v6724_v7  ;;  %1588 = vmatpush.msrb.mxu3 %v6729_v9  ;;  %9332 = vst [vmem:[#allocation64_spill] sm:$0xff] %v6757_v11  ;;  %v6774_v9 = vld [vmem:[%s8843_s1 + $0x3b0] sm:$0xff]  ;;  %v6779_v7 = vld [vmem:[%s8843_s1 + $0x3b8] sm:$0xff] }
 0x168   :  { %1529 = vmatpush.msrb.mxu0 %v6738_v54  ;;  %1549 = vmatpush.msrb.mxu1 %v6743_v59  ;;  %9333 = vst [vmem:[#allocation65_spill] sm:$0xff] %v6774_v9 }
 0x169   :  { %1569 = vmatpush.msrb.mxu2 %v6738_v54  ;;  %1589 = vmatpush.msrb.mxu3 %v6743_v59  ;;  %9334 = vst [vmem:[#allocation66_spill] sm:$0xff] %v6779_v7  ;;  %v6806_v59 = vld [vmem:[%s8843_s1 + $0x390] sm:$0xff]  ;;  %v6811_v54 = vld [vmem:[%s8843_s1 + $0x398] sm:$0xff] }
 0x16a   :  { %1530 = vmatpush.msrb.mxu0 %v6752_v5  ;;  %1550 = vmatpush.msrb.mxu1 %v6757_v11  ;;  %9337 = vst [vmem:[#allocation69_spill] sm:$0xff] %v6806_v59 }
 0x16b   :  { %1570 = vmatpush.msrb.mxu2 %v6752_v5  ;;  %1590 = vmatpush.msrb.mxu3 %v6757_v11  ;;  %v6792_v11 = vld [vmem:[%s8843_s1 + $0x3a0] sm:$0xff]  ;;  %v6797_v5 = vld [vmem:[%s8843_s1 + $0x3a8] sm:$0xff]  ;;  %9338 = vst [vmem:[#allocation70_spill] sm:$0xff] %v6811_v54 }
 0x16c   :  { %4252 = vmatmul.msk.f32.vlgmr.msrb.gmra.mxu0 %vm98_vm0, %v6014_v10  ;;  %4253 = vmatmul.msk.f32.vlgmr.msrb.gmra.mxu1 %vm98_vm0, %v6014_v10  ;;  %9335 = vst [vmem:[#allocation67_spill] sm:$0xff] %v6792_v11  ;;  %v898_v10 = vpop.f32.mrf.mxu1 }
 0x16d   :  { %4254 = vmatmul.msk.f32.vlgmr.msrb.gmra.mxu2 %vm98_vm0, %v6021_v12  ;;  %4255 = vmatmul.msk.f32.vlgmr.msrb.gmra.mxu3 %vm98_vm0, %v6021_v12  ;;  %9336 = vst [vmem:[#allocation68_spill] sm:$0xff] %v6797_v5  ;;  %v878_v12 = vpop.f32.mrf.mxu0 }
 0x16e   :  { %1630 = vmatpush.msra.mxu0 %v6774_v9  ;;  %1650 = vmatpush.msra.mxu1 %v6779_v7  ;;  %9346 = vst [vmem:[#allocation80_spill] sm:$0xff] %v6927_v61 }
 0x16f   :  { %1673 = vmatpush.msra.mxu2 %v6774_v9  ;;  %1693 = vmatpush.msra.mxu3 %v6779_v7  ;;  %v6820_v7 = vld [vmem:[%s8843_s1 + $0x380] sm:$0xff]  ;;  %v6825_v9 = vld [vmem:[%s8843_s1 + $0x388] sm:$0xff] }
 0x170   :  { %1631 = vmatpush.msra.mxu0 %v6792_v11  ;;  %1651 = vmatpush.msra.mxu1 %v6797_v5  ;;  %9339 = vst [vmem:[#allocation73_spill] sm:$0xff] %v6820_v7 }
 0x171   :  { %1674 = vmatpush.msra.mxu2 %v6792_v11  ;;  %1694 = vmatpush.msra.mxu3 %v6797_v5  ;;  %9340 = vst [vmem:[#allocation74_spill] sm:$0xff] %v6825_v9  ;;  %v6834_v5 = vld [vmem:[%s8843_s1 + $0x370] sm:$0xff]  ;;  %v6839_v11 = vld [vmem:[%s8843_s1 + $0x378] sm:$0xff] }
 0x172   :  { %1632 = vmatpush.msra.mxu0 %v6806_v59  ;;  %1652 = vmatpush.msra.mxu1 %v6811_v54  ;;  %9341 = vst [vmem:[#allocation75_spill] sm:$0xff] %v6834_v5 }
 0x173   :  { %1675 = vmatpush.msra.mxu2 %v6806_v59  ;;  %1695 = vmatpush.msra.mxu3 %v6811_v54  ;;  %9342 = vst [vmem:[#allocation76_spill] sm:$0xff] %v6839_v11  ;;  %v6848_v54 = vld [vmem:[%s8843_s1 + $0x360] sm:$0xff]  ;;  %v6853_v59 = vld [vmem:[%s8843_s1 + $0x368] sm:$0xff] }
 0x174   :  { %1633 = vmatpush.msra.mxu0 %v6820_v7  ;;  %1653 = vmatpush.msra.mxu1 %v6825_v9  ;;  %9343 = vst [vmem:[#allocation77_spill] sm:$0xff] %v6848_v54 }
 0x175   :  { %1676 = vmatpush.msra.mxu2 %v6820_v7  ;;  %1696 = vmatpush.msra.mxu3 %v6825_v9  ;;  %9344 = vst [vmem:[#allocation78_spill] sm:$0xff] %v6853_v59  ;;  %v6864_v9 = vld [vmem:[%s8843_s1 + $0x350] sm:$0xff]  ;;  %v6869_v7 = vld [vmem:[%s8843_s1 + $0x358] sm:$0xff]  ;;  %v986_v4 = vpop.f32.mrf.mxu0 }
 0x176   :  { %1634 = vmatpush.msra.mxu0 %v6834_v5  ;;  %1654 = vmatpush.msra.mxu1 %v6839_v11  ;;  %9345 = vst [vmem:[#allocation79_spill] sm:$0xff] %v6869_v7 }
 0x177   :  { %1677 = vmatpush.msra.mxu2 %v6834_v5  ;;  %1697 = vmatpush.msra.mxu3 %v6839_v11  ;;  %v1006_v11 = vpop.f32.mrf.mxu1  ;;  %v6881_v5 = vld [vmem:[%s8843_s1 + $0x340] sm:$0xff] }
 0x178   :  { %1635 = vmatpush.msra.mxu0 %v6848_v54  ;;  %1655 = vmatpush.msra.mxu1 %v6853_v59 }
 0x179   :  { %1678 = vmatpush.msra.mxu2 %v6848_v54  ;;  %1698 = vmatpush.msra.mxu3 %v6853_v59  ;;  %v6900_v59 = vld [vmem:[%s8843_s1 + $0x330] sm:$0xff]  ;;  %v775_v54 = vadd.f32 %v6761_v49, %v6687_v51  ;;  %v613_v49 = vadd.f32 %v6629_v52, %v498_v1  ;;  %v942_v51 = vadd.f32 %v898_v10, %v795_v53  ;;  %v6944_v52 = vld [vmem:[%s8843_s1 + $0x318] sm:$0xff]  ;;  %v6965_v53 = vrot.slane %v6495_v21, 1 }
 0x17a   :  { %1636 = vmatpush.msra.mxu0 %v6864_v9  ;;  %1656 = vmatpush.msra.mxu1 %v6869_v7 }
 0x17b   :  { %1679 = vmatpush.msra.mxu2 %v6864_v9  ;;  %1699 = vmatpush.msra.mxu3 %v6869_v7  ;;  %v6915_v7 = vperm.slane %v47_v48, 0  ;;  %v941_v55 = vadd.f32 %v878_v12, %v775_v54  ;;  %v1050_v10 = vadd.f32 %v1006_v11, %v942_v51  ;;  %v6954_v48 = vld [vmem:[%s8843_s1 + $0x300] sm:$0xff]  ;;  %v622_v1 = vadd.f32 %v6930_v50, %v613_v49 }
 0x17c   :  { %1637 = vmatpush.msra.mxu0 %v6881_v5  ;;  %1657 = vmatpush.msra.mxu1 %v6886_v0  ;;  %v6970_v51 = vrot.slane %v6398_v3, 1 }
 0x17d   :  { %1680 = vmatpush.msra.mxu2 %v6881_v5  ;;  %1700 = vmatpush.msra.mxu3 %v6886_v0  ;;  %v1049_v12 = vadd.f32 %v986_v4, %v941_v55  ;;  %v621_v54 = vadd.f32 %v6915_v7, %v612_v63  ;;  %v6959_v4 = vld [vmem:[%s8843_s1 + $0x308] sm:$0xff] }
 0x17e   :  { %1638 = vmatpush.msra.mxu0 %v6900_v59  ;;  %1658 = vmatpush.msra.mxu1 %v6905_v47 }
 0x17f   :  { %1681 = vmatpush.msra.mxu2 %v6900_v59  ;;  %1701 = vmatpush.msra.mxu3 %v6905_v47  ;;  %v625_v21 = vmax.f32 %v621_v54, 0.0 }
 0x180   :  { %1639 = vmatpush.msra.mxu0 %v6922_v22  ;;  %1659 = vmatpush.msra.mxu1 %v6927_v61 }
 0x181   :  { %1682 = vmatpush.msra.mxu2 %v6922_v22  ;;  %1702 = vmatpush.msra.mxu3 %v6927_v61  ;;  %v1097_v11 = vpop.f32.mrf.mxu0  ;;  %v1117_v6 = vpop.f32.mrf.mxu1 }
 0x182   :  { %1640 = vmatpush.msra.mxu0 %v6939_v2  ;;  %1660 = vmatpush.msra.mxu1 %v6944_v52  ;;  %v1163_v63 = vadd.f32 %v1097_v11, %v1049_v12  ;;  %v1164_v55 = vadd.f32 %v1117_v6, %v1050_v10  ;;  %v626_v12 = vmax.f32 %v622_v1, 0.0  ;;  %v9384_v6 = vld [vmem:[#allocation6_spill] sm:$0xff]  ;;  %v9385_v1 = vld [vmem:[#allocation7_spill] sm:$0xff] }
 0x183   :  { %1683 = vmatpush.msra.mxu2 %v6939_v2  ;;  %1703 = vmatpush.msra.mxu3 %v6944_v52 }
 0x184   :  { %1641 = vmatpush.msra.mxu0 %v6954_v48  ;;  %1661 = vmatpush.msra.mxu1 %v6959_v4  ;;  %v1167_v49 = vadd.f32 %v1163_v63, %v6915_v7  ;;  %v1168_v61 = vadd.f32 %v1164_v55, %v6930_v50  ;;  %v9386_v63 = vld [vmem:[#allocation39_spill] sm:$0xff]  ;;  %v9387_v55 = vld [vmem:[#allocation40_spill] sm:$0xff] }
 0x185   :  { %1684 = vmatpush.msra.mxu2 %v6954_v48  ;;  %1704 = vmatpush.msra.mxu3 %v6959_v4 }
 0x186   :  { %4280 = vmatmul.msk.f32.vlgmr.msra.gmra.mxu0 %vm98_vm0, %v6965_v53  ;;  %4281 = vmatmul.msk.f32.vlgmr.msra.gmra.mxu1 %vm98_vm0, %v6965_v53  ;;  %v1171_v3 = vmax.f32 %v1167_v49, 0.0  ;;  %v1172_v10 = vmax.f32 %v1168_v61, 0.0  ;;  %v9388_v49 = vld [vmem:[#allocation41_spill] sm:$0xff] }
 0x187   :  { %4282 = vmatmul.msk.f32.vlgmr.msra.gmra.mxu2 %vm98_vm0, %v6970_v51  ;;  %4283 = vmatmul.msk.f32.vlgmr.msra.gmra.mxu3 %vm98_vm0, %v6970_v51 }
 0x188   :  { %1773 = vmatpush.msrb.mxu0 %v6032_v62  ;;  %1793 = vmatpush.msrb.mxu1 %v6037_v8  ;;  %v2267_v54 = vmax.f32 %v625_v21, %v1171_v3  ;;  %v2268_v11 = vmax.f32 %v626_v12, %v1172_v10  ;;  %v9389_v21 = vld [vmem:[#allocation42_spill] sm:$0xff]  ;;  %v9390_v12 = vld [vmem:[#allocation43_spill] sm:$0xff]  ;;  %v9391_v3 = vld [vmem:[#allocation44_spill] sm:$0xff] }
 0x189   :  { %1813 = vmatpush.msrb.mxu2 %v6032_v62  ;;  %1833 = vmatpush.msrb.mxu3 %v6037_v8  ;;  %v9348_v62 = vld [vmem:[#allocation8_spill] sm:$0xff]  ;;  %v9349_v8 = vld [vmem:[#allocation9_spill] sm:$0xff] }
 0x18a   :  { %1774 = vmatpush.msrb.mxu0 %v6050_v56  ;;  %1794 = vmatpush.msrb.mxu1 %v6055_v57  ;;  %v6992_v61 = vmax.f32 %v2267_v54, %v2268_v11  ;;  %v9392_v10 = vld [vmem:[#allocation45_spill] sm:$0xff]  ;;  %v9393_v54 = vld [vmem:[#allocation46_spill] sm:$0xff]  ;;  %v9394_v11 = vld [vmem:[#allocation47_spill] sm:$0xff] }
 0x18b   :  { %1814 = vmatpush.msrb.mxu2 %v6050_v56  ;;  %1834 = vmatpush.msrb.mxu3 %v6055_v57  ;;  %v9350_v56 = vld [vmem:[#allocation72_spill] sm:$0xff]  ;;  %v9351_v57 = vld [vmem:[#allocation10_spill] sm:$0xff] }
 0x18c   :  { %9347 = vst [vmem:[#allocation81_spill] sm:$0xff] %v6992_v61  ;;  %1775 = vmatpush.msrb.mxu0 %v6064_v58  ;;  %1795 = vmatpush.msrb.mxu1 %v6069_v60 }
 0x18d   :  { %1815 = vmatpush.msrb.mxu2 %v6064_v58  ;;  %1835 = vmatpush.msrb.mxu3 %v6069_v60  ;;  %v9352_v58 = vld [vmem:[#allocation11_spill] sm:$0xff]  ;;  %v9353_v60 = vld [vmem:[#allocation12_spill] sm:$0xff] }
 0x18e   :  { %1776 = vmatpush.msrb.mxu0 %v6078_v13  ;;  %1796 = vmatpush.msrb.mxu1 %v6083_v14 }
 0x18f   :  { %1816 = vmatpush.msrb.mxu2 %v6078_v13  ;;  %1836 = vmatpush.msrb.mxu3 %v6083_v14  ;;  %v9354_v13 = vld [vmem:[#allocation13_spill] sm:$0xff] }
 0x190   :  { %1777 = vmatpush.msrb.mxu0 %v6092_v15  ;;  %1797 = vmatpush.msrb.mxu1 %v6097_v16  ;;  %v9355_v14 = vld [vmem:[#allocation5_spill] sm:$0xff] }
 0x191   :  { %1817 = vmatpush.msrb.mxu2 %v6092_v15  ;;  %1837 = vmatpush.msrb.mxu3 %v6097_v16  ;;  %v9356_v15 = vld [vmem:[#allocation14_spill] sm:$0xff]  ;;  %v9357_v16 = vld [vmem:[#allocation15_spill] sm:$0xff] }
 0x192   :  { %1778 = vmatpush.msrb.mxu0 %v6106_v17  ;;  %1798 = vmatpush.msrb.mxu1 %v6111_v18 }
 0x193   :  { %1818 = vmatpush.msrb.mxu2 %v6106_v17  ;;  %1838 = vmatpush.msrb.mxu3 %v6111_v18  ;;  %v9358_v17 = vld [vmem:[#allocation16_spill] sm:$0xff]  ;;  %v9359_v18 = vld [vmem:[#allocation71_spill] sm:$0xff] }
 0x194   :  { %1779 = vmatpush.msrb.mxu0 %v6120_v19  ;;  %1799 = vmatpush.msrb.mxu1 %v6125_v20 }
 0x195   :  { %1819 = vmatpush.msrb.mxu2 %v6120_v19  ;;  %1839 = vmatpush.msrb.mxu3 %v6125_v20  ;;  %v7095_v19 = vld [vmem:[%s8842_s0 + $0x38] sm:$0xff]  ;;  %v9360_v20 = vld [vmem:[#allocation17_spill] sm:$0xff] }
 0x196   :  { %1780 = vmatpush.msrb.mxu0 %v6134_v23  ;;  %1800 = vmatpush.msrb.mxu1 %v6139_v24 }
 0x197   :  { %1820 = vmatpush.msrb.mxu2 %v6134_v23  ;;  %1840 = vmatpush.msrb.mxu3 %v6139_v24  ;;  %v9361_v23 = vld [vmem:[#allocation18_spill] sm:$0xff]  ;;  %v9362_v24 = vld [vmem:[#allocation19_spill] sm:$0xff] }
 0x198   :  { %1781 = vmatpush.msrb.mxu0 %v6148_v25  ;;  %1801 = vmatpush.msrb.mxu1 %v6153_v26 }
 0x199   :  { %1821 = vmatpush.msrb.mxu2 %v6148_v25  ;;  %1841 = vmatpush.msrb.mxu3 %v6153_v26  ;;  %v9363_v25 = vld [vmem:[#allocation20_spill] sm:$0xff]  ;;  %v9364_v26 = vld [vmem:[#allocation21_spill] sm:$0xff] }
 0x19a   :  { %1782 = vmatpush.msrb.mxu0 %v6162_v27  ;;  %1802 = vmatpush.msrb.mxu1 %v6167_v28 }
 0x19b   :  { %1822 = vmatpush.msrb.mxu2 %v6162_v27  ;;  %1842 = vmatpush.msrb.mxu3 %v6167_v28  ;;  %v9365_v27 = vld [vmem:[#allocation22_spill] sm:$0xff]  ;;  %v9366_v28 = vld [vmem:[#allocation23_spill] sm:$0xff] }
 0x19c   :  { %1783 = vmatpush.msrb.mxu0 %v6176_v29  ;;  %1803 = vmatpush.msrb.mxu1 %v6181_v30 }
 0x19d   :  { %1823 = vmatpush.msrb.mxu2 %v6176_v29  ;;  %1843 = vmatpush.msrb.mxu3 %v6181_v30  ;;  %v9367_v29 = vld [vmem:[#allocation24_spill] sm:$0xff]  ;;  %v9368_v30 = vld [vmem:[#allocation25_spill] sm:$0xff] }
 0x19e   :  { %1784 = vmatpush.msrb.mxu0 %v6190_v31  ;;  %1804 = vmatpush.msrb.mxu1 %v6195_v32 }
 0x19f   :  { %1824 = vmatpush.msrb.mxu2 %v6190_v31  ;;  %1844 = vmatpush.msrb.mxu3 %v6195_v32  ;;  %v9369_v31 = vld [vmem:[#allocation50_spill] sm:$0xff]  ;;  %v9370_v32 = vld [vmem:[#allocation51_spill] sm:$0xff] }
 0x1a0   :  { %1853 = vmatpush.msra.mxu0 %v6204_v33  ;;  %1873 = vmatpush.msra.mxu1 %v6209_v34 }
 0x1a1   :  { %1893 = vmatpush.msra.mxu2 %v6204_v33  ;;  %1913 = vmatpush.msra.mxu3 %v6209_v34  ;;  %v9371_v33 = vld [vmem:[#allocation26_spill] sm:$0xff]  ;;  %v7128_v34 = vld [vmem:[%s8842_s0 + $0x18] sm:$0xff] }
 0x1a2   :  { %1854 = vmatpush.msra.mxu0 %v6218_v35  ;;  %1874 = vmatpush.msra.mxu1 %v6223_v36 }
 0x1a3   :  { %1894 = vmatpush.msra.mxu2 %v6218_v35  ;;  %1914 = vmatpush.msra.mxu3 %v6223_v36  ;;  %v9372_v35 = vld [vmem:[#allocation27_spill] sm:$0xff]  ;;  %v9373_v36 = vld [vmem:[#allocation28_spill] sm:$0xff] }
 0x1a4   :  { %1855 = vmatpush.msra.mxu0 %v6232_v37  ;;  %1875 = vmatpush.msra.mxu1 %v6237_v38 }
 0x1a5   :  { %1895 = vmatpush.msra.mxu2 %v6232_v37  ;;  %1915 = vmatpush.msra.mxu3 %v6237_v38  ;;  %v9374_v37 = vld [vmem:[#allocation29_spill] sm:$0xff]  ;;  %v9375_v38 = vld [vmem:[#allocation30_spill] sm:$0xff] }
 0x1a6   :  { %1856 = vmatpush.msra.mxu0 %v6246_v39  ;;  %1876 = vmatpush.msra.mxu1 %v6251_v40 }
 0x1a7   :  { %1896 = vmatpush.msra.mxu2 %v6246_v39  ;;  %1916 = vmatpush.msra.mxu3 %v6251_v40  ;;  %v9376_v39 = vld [vmem:[#allocation31_spill] sm:$0xff]  ;;  %v9377_v40 = vld [vmem:[#allocation32_spill] sm:$0xff] }
 0x1a8   :  { %1857 = vmatpush.msra.mxu0 %v6260_v41  ;;  %1877 = vmatpush.msra.mxu1 %v6265_v42 }
 0x1a9   :  { %1897 = vmatpush.msra.mxu2 %v6260_v41  ;;  %1917 = vmatpush.msra.mxu3 %v6265_v42  ;;  %v9378_v41 = vld [vmem:[#allocation33_spill] sm:$0xff]  ;;  %v9379_v42 = vld [vmem:[#allocation34_spill] sm:$0xff] }
 0x1aa   :  { %1858 = vmatpush.msra.mxu0 %v6274_v43  ;;  %1878 = vmatpush.msra.mxu1 %v6279_v44 }
 0x1ab   :  { %1898 = vmatpush.msra.mxu2 %v6274_v43  ;;  %1918 = vmatpush.msra.mxu3 %v6279_v44  ;;  %v9380_v43 = vld [vmem:[#allocation35_spill] sm:$0xff]  ;;  %v9381_v44 = vld [vmem:[#allocation36_spill] sm:$0xff] }
 0x1ac   :  { %1859 = vmatpush.msra.mxu0 %v6288_v45  ;;  %1879 = vmatpush.msra.mxu1 %v6293_v46 }
 0x1ad   :  { %1899 = vmatpush.msra.mxu2 %v6288_v45  ;;  %1919 = vmatpush.msra.mxu3 %v6293_v46  ;;  %v9382_v45 = vld [vmem:[#allocation37_spill] sm:$0xff]  ;;  %v9383_v46 = vld [vmem:[#allocation38_spill] sm:$0xff] }
 0x1ae   :  { %1860 = vmatpush.msra.mxu0 %v9348_v62  ;;  %1880 = vmatpush.msra.mxu1 %v9349_v8 }
 0x1af   :  { %1900 = vmatpush.msra.mxu2 %v9348_v62  ;;  %1920 = vmatpush.msra.mxu3 %v9349_v8  ;;  %v9395_v62 = vld [vmem:[#allocation48_spill] sm:$0xff]  ;;  %v9396_v8 = vld [vmem:[#allocation49_spill] sm:$0xff] }
 0x1b0   :  { %4310 = vmatmul.msk.f32.vlgmr.msrb.gmra.mxu2 %vm98_vm0, %v9350_v56  ;;  %4311 = vmatmul.msk.f32.vlgmr.msrb.gmra.mxu3 %vm98_vm0, %v9350_v56  ;;  %v9397_v56 = vld [vmem:[#allocation52_spill] sm:$0xff] }
 0x1b1   :  { %1861 = vmatpush.msra.mxu0 %v9351_v57  ;;  %1881 = vmatpush.msra.mxu1 %v9352_v58 }
 0x1b2   :  { %1901 = vmatpush.msra.mxu2 %v9351_v57  ;;  %1921 = vmatpush.msra.mxu3 %v9352_v58  ;;  %v9398_v57 = vld [vmem:[#allocation53_spill] sm:$0xff]  ;;  %v9399_v58 = vld [vmem:[#allocation54_spill] sm:$0xff] }
 0x1b3   :  { %1862 = vmatpush.msra.mxu0 %v9353_v60  ;;  %1882 = vmatpush.msra.mxu1 %v9354_v13 }
 0x1b4   :  { %1902 = vmatpush.msra.mxu2 %v9353_v60  ;;  %1922 = vmatpush.msra.mxu3 %v9354_v13  ;;  %v9400_v60 = vld [vmem:[#allocation55_spill] sm:$0xff]  ;;  %v9401_v13 = vld [vmem:[#allocation56_spill] sm:$0xff] }
 0x1b5   :  { %1863 = vmatpush.msra.mxu0 %v9355_v14  ;;  %1883 = vmatpush.msra.mxu1 %v9356_v15 }
 0x1b6   :  { %1903 = vmatpush.msra.mxu2 %v9355_v14  ;;  %1923 = vmatpush.msra.mxu3 %v9356_v15  ;;  %v9402_v14 = vld [vmem:[#allocation57_spill] sm:$0xff]  ;;  %v9403_v15 = vld [vmem:[#allocation58_spill] sm:$0xff] }
 0x1b7   :  { %1864 = vmatpush.msra.mxu0 %v9357_v16  ;;  %1884 = vmatpush.msra.mxu1 %v9358_v17 }
 0x1b8   :  { %1904 = vmatpush.msra.mxu2 %v9357_v16  ;;  %1924 = vmatpush.msra.mxu3 %v9358_v17  ;;  %v9404_v16 = vld [vmem:[#allocation59_spill] sm:$0xff]  ;;  %v9405_v17 = vld [vmem:[#allocation60_spill] sm:$0xff] }
 0x1b9   :  { %4308 = vmatmul.msk.f32.vlgmr.msrb.gmra.mxu0 %vm98_vm0, %v9359_v18  ;;  %4309 = vmatmul.msk.f32.vlgmr.msrb.gmra.mxu1 %vm98_vm0, %v9359_v18  ;;  %v9406_v18 = vld [vmem:[#allocation61_spill] sm:$0xff] }
 0x1ba   :  { %4314 = vmatmul.msk.f32.vlgmr.msra.gmra.mxu2 %vm98_vm0, %v7095_v19  ;;  %4315 = vmatmul.msk.f32.vlgmr.msra.gmra.mxu3 %vm98_vm0, %v7095_v19 }
 0x1bb   :  { %1957 = vmatpush.msrb.mxu0 %v9360_v20  ;;  %1977 = vmatpush.msrb.mxu1 %v9361_v23 }
 0x1bc   :  { %1997 = vmatpush.msrb.mxu2 %v9360_v20  ;;  %2017 = vmatpush.msrb.mxu3 %v9361_v23  ;;  %v9407_v20 = vld [vmem:[#allocation62_spill] sm:$0xff]  ;;  %v7210_v23 = vpop.f32.mrf.mxu2 }
 0x1bd   :  { %1958 = vmatpush.msrb.mxu0 %v9362_v24  ;;  %1978 = vmatpush.msrb.mxu1 %v9363_v25 }
 0x1be   :  { %1998 = vmatpush.msrb.mxu2 %v9362_v24  ;;  %2018 = vmatpush.msrb.mxu3 %v9363_v25  ;;  %v7212_v24 = vpop.f32.mrf.mxu3  ;;  %v9408_v25 = vld [vmem:[#allocation63_spill] sm:$0xff] }
 0x1bf   :  { %1959 = vmatpush.msrb.mxu0 %v9364_v26  ;;  %1979 = vmatpush.msrb.mxu1 %v9365_v27 }
 0x1c0   :  { %1999 = vmatpush.msrb.mxu2 %v9364_v26  ;;  %2019 = vmatpush.msrb.mxu3 %v9365_v27  ;;  %v9409_v26 = vld [vmem:[#allocation64_spill] sm:$0xff]  ;;  %v9410_v27 = vld [vmem:[#allocation65_spill] sm:$0xff] }
 0x1c1   :  { %1960 = vmatpush.msrb.mxu0 %v9366_v28  ;;  %1980 = vmatpush.msrb.mxu1 %v9367_v29 }
 0x1c2   :  { %2000 = vmatpush.msrb.mxu2 %v9366_v28  ;;  %2020 = vmatpush.msrb.mxu3 %v9367_v29  ;;  %v9411_v28 = vld [vmem:[#allocation66_spill] sm:$0xff]  ;;  %v9412_v29 = vld [vmem:[#allocation67_spill] sm:$0xff] }
 0x1c3   :  { %1961 = vmatpush.msrb.mxu0 %v9368_v30  ;;  %1981 = vmatpush.msrb.mxu1 %v9369_v31 }
 0x1c4   :  { %2001 = vmatpush.msrb.mxu2 %v9368_v30  ;;  %2021 = vmatpush.msrb.mxu3 %v9369_v31  ;;  %v9413_v30 = vld [vmem:[#allocation68_spill] sm:$0xff]  ;;  %v9415_v31 = vld [vmem:[#allocation70_spill] sm:$0xff] }
 0x1c5   :  { %1962 = vmatpush.msrb.mxu0 %v9370_v32  ;;  %1982 = vmatpush.msrb.mxu1 %v9371_v33 }
 0x1c6   :  { %2002 = vmatpush.msrb.mxu2 %v9370_v32  ;;  %2022 = vmatpush.msrb.mxu3 %v9371_v33  ;;  %v7240_v32 = vpop.f32.mrf.mxu3  ;;  %v9416_v33 = vld [vmem:[#allocation73_spill] sm:$0xff] }
 0x1c7   :  { %4312 = vmatmul.msk.f32.vlgmr.msra.gmra.mxu0 %vm98_vm0, %v7128_v34  ;;  %4313 = vmatmul.msk.f32.vlgmr.msra.gmra.mxu1 %vm98_vm0, %v7128_v34 }
 0x1c8   :  { %1963 = vmatpush.msrb.mxu0 %v9372_v35  ;;  %1983 = vmatpush.msrb.mxu1 %v9373_v36 }
 0x1c9   :  { %2003 = vmatpush.msrb.mxu2 %v9372_v35  ;;  %2023 = vmatpush.msrb.mxu3 %v9373_v36  ;;  %v9417_v35 = vld [vmem:[#allocation74_spill] sm:$0xff]  ;;  %v9418_v36 = vld [vmem:[#allocation75_spill] sm:$0xff] }
 0x1ca   :  { %1964 = vmatpush.msrb.mxu0 %v9374_v37  ;;  %1984 = vmatpush.msrb.mxu1 %v9375_v38 }
 0x1cb   :  { %2004 = vmatpush.msrb.mxu2 %v9374_v37  ;;  %2024 = vmatpush.msrb.mxu3 %v9375_v38  ;;  %v9419_v37 = vld [vmem:[#allocation76_spill] sm:$0xff]  ;;  %v9420_v38 = vld [vmem:[#allocation77_spill] sm:$0xff] }
 0x1cc   :  { %1965 = vmatpush.msrb.mxu0 %v9376_v39  ;;  %1985 = vmatpush.msrb.mxu1 %v9377_v40 }
 0x1cd   :  { %2005 = vmatpush.msrb.mxu2 %v9376_v39  ;;  %2025 = vmatpush.msrb.mxu3 %v9377_v40  ;;  %v9421_v39 = vld [vmem:[#allocation78_spill] sm:$0xff]  ;;  %v9422_v40 = vld [vmem:[#allocation79_spill] sm:$0xff] }
 0x1ce   :  { %1966 = vmatpush.msrb.mxu0 %v9378_v41  ;;  %1986 = vmatpush.msrb.mxu1 %v9379_v42 }
 0x1cf   :  { %2006 = vmatpush.msrb.mxu2 %v9378_v41  ;;  %2026 = vmatpush.msrb.mxu3 %v9379_v42  ;;  %v7260_v42 = vpop.f32.mrf.mxu3 }
 0x1d0   :  { %1967 = vmatpush.msrb.mxu0 %v9380_v43  ;;  %1987 = vmatpush.msrb.mxu1 %v9381_v44 }
 0x1d1   :  { %2007 = vmatpush.msrb.mxu2 %v9380_v43  ;;  %2027 = vmatpush.msrb.mxu3 %v9381_v44  ;;  %v4431_v43 = vld [vmem:[%s8845_s3 + $0x1f8] sm:$0xff]  ;;  %v4428_v44 = vld [vmem:[%s8845_s3 + $0x1e0] sm:$0xff] }
 0x1d2   :  { %1968 = vmatpush.msrb.mxu0 %v9382_v45  ;;  %1988 = vmatpush.msrb.mxu1 %v9383_v46 }
 0x1d3   :  { %2008 = vmatpush.msrb.mxu2 %v9382_v45  ;;  %2028 = vmatpush.msrb.mxu3 %v9383_v46  ;;  %v4429_v45 = vld [vmem:[%s8845_s3 + $0x1e8] sm:$0xff]  ;;  %v4426_v46 = vld [vmem:[%s8845_s3 + $0x1d0] sm:$0xff] }
 0x1d4   :  { %4340 = vmatmul.msk.f32.vlgmr.msrb.gmra.mxu0 %vm98_vm0, %v9384_v6  ;;  %4341 = vmatmul.msk.f32.vlgmr.msrb.gmra.mxu1 %vm98_vm0, %v9384_v6  ;;  %v4427_v6 = vld [vmem:[%s8845_s3 + $0x1d8] sm:$0xff] }
 0x1d5   :  { %4342 = vmatmul.msk.f32.vlgmr.msrb.gmra.mxu2 %vm98_vm0, %v9385_v1  ;;  %4343 = vmatmul.msk.f32.vlgmr.msrb.gmra.mxu3 %vm98_vm0, %v9385_v1 }
 0x1d6   :  { %2065 = vmatpush.msra.mxu0 %v9386_v63  ;;  %2085 = vmatpush.msra.mxu1 %v9387_v55 }
 0x1d7   :  { %2105 = vmatpush.msra.mxu2 %v9386_v63  ;;  %2125 = vmatpush.msra.mxu3 %v9387_v55 }
 0x1d8   :  { %2066 = vmatpush.msra.mxu0 %v9388_v49  ;;  %2086 = vmatpush.msra.mxu1 %v9389_v21 }
 0x1d9   :  { %2106 = vmatpush.msra.mxu2 %v9388_v49  ;;  %2126 = vmatpush.msra.mxu3 %v9389_v21  ;;  %v4424_v21 = vld [vmem:[%s8845_s3 + $0x1c0] sm:$0xff] }
 0x1da   :  { %2067 = vmatpush.msra.mxu0 %v9390_v12  ;;  %2087 = vmatpush.msra.mxu1 %v9391_v3 }
 0x1db   :  { %2107 = vmatpush.msra.mxu2 %v9390_v12  ;;  %2127 = vmatpush.msra.mxu3 %v9391_v3  ;;  %v4425_v12 = vld [vmem:[%s8845_s3 + $0x1c8] sm:$0xff]  ;;  %v4422_v3 = vld [vmem:[%s8845_s3 + $0x1b0] sm:$0xff] }
 0x1dc   :  { %2068 = vmatpush.msra.mxu0 %v9392_v10  ;;  %2088 = vmatpush.msra.mxu1 %v9393_v54 }
 0x1dd   :  { %2108 = vmatpush.msra.mxu2 %v9392_v10  ;;  %2128 = vmatpush.msra.mxu3 %v9393_v54  ;;  %v4423_v10 = vld [vmem:[%s8845_s3 + $0x1b8] sm:$0xff]  ;;  %v4420_v54 = vld [vmem:[%s8845_s3 + $0x1a0] sm:$0xff] }
 0x1de   :  { %2069 = vmatpush.msra.mxu0 %v9394_v11  ;;  %2089 = vmatpush.msra.mxu1 %v9395_v62 }
 0x1df   :  { %2109 = vmatpush.msra.mxu2 %v9394_v11  ;;  %2129 = vmatpush.msra.mxu3 %v9395_v62  ;;  %v4421_v11 = vld [vmem:[%s8845_s3 + $0x1a8] sm:$0xff] }
 0x1e0   :  { %2070 = vmatpush.msra.mxu0 %v9396_v8  ;;  %2090 = vmatpush.msra.mxu1 %v9397_v56 }
 0x1e1   :  { %2110 = vmatpush.msra.mxu2 %v9396_v8  ;;  %2130 = vmatpush.msra.mxu3 %v9397_v56  ;;  %v7352_v56 = vpop.f32.mrf.mxu0 }
 0x1e2   :  { %2071 = vmatpush.msra.mxu0 %v9398_v57  ;;  %2091 = vmatpush.msra.mxu1 %v9399_v58 }
 0x1e3   :  { %2111 = vmatpush.msra.mxu2 %v9398_v57  ;;  %2131 = vmatpush.msra.mxu3 %v9399_v58  ;;  %v7354_v57 = vpop.f32.mrf.mxu1  ;;  %v4418_v58 = vld [vmem:[%s8845_s3 + $0x190] sm:$0xff] }
 0x1e4   :  { %2072 = vmatpush.msra.mxu0 %v9400_v60  ;;  %2092 = vmatpush.msra.mxu1 %v9401_v13 }
 0x1e5   :  { %2112 = vmatpush.msra.mxu2 %v9400_v60  ;;  %2132 = vmatpush.msra.mxu3 %v9401_v13  ;;  %v4419_v60 = vld [vmem:[%s8845_s3 + $0x198] sm:$0xff]  ;;  %v4416_v13 = vld [vmem:[%s8845_s3 + $0x180] sm:$0xff] }
 0x1e6   :  { %2073 = vmatpush.msra.mxu0 %v9402_v14  ;;  %2093 = vmatpush.msra.mxu1 %v9403_v15 }
 0x1e7   :  { %2113 = vmatpush.msra.mxu2 %v9402_v14  ;;  %2133 = vmatpush.msra.mxu3 %v9403_v15  ;;  %v4417_v14 = vld [vmem:[%s8845_s3 + $0x188] sm:$0xff]  ;;  %v4414_v15 = vld [vmem:[%s8845_s3 + $0x170] sm:$0xff] }
 0x1e8   :  { %2074 = vmatpush.msra.mxu0 %v9404_v16  ;;  %2094 = vmatpush.msra.mxu1 %v9405_v17 }
 0x1e9   :  { %2114 = vmatpush.msra.mxu2 %v9404_v16  ;;  %2134 = vmatpush.msra.mxu3 %v9405_v17  ;;  %v4415_v16 = vld [vmem:[%s8845_s3 + $0x178] sm:$0xff]  ;;  %v4412_v17 = vld [vmem:[%s8845_s3 + $0x160] sm:$0xff] }
 0x1ea   :  { %2075 = vmatpush.msra.mxu0 %v9406_v18  ;;  %2095 = vmatpush.msra.mxu1 %v9407_v20 }
 0x1eb   :  { %2115 = vmatpush.msra.mxu2 %v9406_v18  ;;  %2135 = vmatpush.msra.mxu3 %v9407_v20  ;;  %v4413_v18 = vld [vmem:[%s8845_s3 + $0x168] sm:$0xff]  ;;  %v4410_v20 = vld [vmem:[%s8845_s3 + $0x150] sm:$0xff] }
 0x1ec   :  { %2076 = vmatpush.msra.mxu0 %v9408_v25  ;;  %2096 = vmatpush.msra.mxu1 %v9409_v26 }
 0x1ed   :  { %2116 = vmatpush.msra.mxu2 %v9408_v25  ;;  %2136 = vmatpush.msra.mxu3 %v9409_v26  ;;  %v4411_v25 = vld [vmem:[%s8845_s3 + $0x158] sm:$0xff] }
 0x1ee   :  { %4368 = vmatmul.msk.f32.vlgmr.msra.gmra.mxu0 %vm98_vm0, %v6965_v53  ;;  %4369 = vmatmul.msk.f32.vlgmr.msra.gmra.mxu1 %vm98_vm0, %v6965_v53  ;;  %v9414_v53 = vld [vmem:[#allocation69_spill] sm:$0xff] }
 0x1ef   :  { %4370 = vmatmul.msk.f32.vlgmr.msra.gmra.mxu2 %vm98_vm0, %v6970_v51  ;;  %4371 = vmatmul.msk.f32.vlgmr.msra.gmra.mxu3 %vm98_vm0, %v6970_v51  ;;  %v7238_v51 = vpop.f32.mrf.mxu2 }
 0x1f0   :  { %2176 = vmatpush.msrb.mxu0 %v9410_v27  ;;  %2196 = vmatpush.msrb.mxu1 %v9411_v28 }
 0x1f1   :  { %2219 = vmatpush.msrb.mxu2 %v9410_v27  ;;  %2239 = vmatpush.msrb.mxu3 %v9411_v28  ;;  %v4408_v28 = vld [vmem:[%s8845_s3 + $0x140] sm:$0xff] }
 0x1f2   :  { %2177 = vmatpush.msrb.mxu0 %v9412_v29  ;;  %2197 = vmatpush.msrb.mxu1 %v9413_v30 }
 0x1f3   :  { %2220 = vmatpush.msrb.mxu2 %v9412_v29  ;;  %2240 = vmatpush.msrb.mxu3 %v9413_v30  ;;  %v4409_v29 = vld [vmem:[%s8845_s3 + $0x148] sm:$0xff]  ;;  %v7396_v30 = vpop.f32.mrf.mxu0 }
 0x1f4   :  { %2178 = vmatpush.msrb.mxu0 %v9414_v53  ;;  %2198 = vmatpush.msrb.mxu1 %v9415_v31 }
 0x1f5   :  { %2221 = vmatpush.msrb.mxu2 %v9414_v53  ;;  %2241 = vmatpush.msrb.mxu3 %v9415_v31  ;;  %v7398_v53 = vpop.f32.mrf.mxu1  ;;  %v4406_v31 = vld [vmem:[%s8845_s3 + $0x130] sm:$0xff] }
 0x1f6   :  { %2179 = vmatpush.msrb.mxu0 %v9416_v33  ;;  %2199 = vmatpush.msrb.mxu1 %v9417_v35 }
 0x1f7   :  { %2222 = vmatpush.msrb.mxu2 %v9416_v33  ;;  %2242 = vmatpush.msrb.mxu3 %v9417_v35  ;;  %v7258_v41 = vpop.f32.mrf.mxu2  ;;  %v4407_v33 = vld [vmem:[%s8845_s3 + $0x138] sm:$0xff]  ;;  %v4404_v35 = vld [vmem:[%s8845_s3 + $0x120] sm:$0xff] }
 0x1f8   :  { %2180 = vmatpush.msrb.mxu0 %v9418_v36  ;;  %2200 = vmatpush.msrb.mxu1 %v9419_v37 }
 0x1f9   :  { %2223 = vmatpush.msrb.mxu2 %v9418_v36  ;;  %2243 = vmatpush.msrb.mxu3 %v9419_v37  ;;  %v4405_v36 = vld [vmem:[%s8845_s3 + $0x128] sm:$0xff] }
 0x1fa   :  { %2181 = vmatpush.msrb.mxu0 %v9420_v38  ;;  %2201 = vmatpush.msrb.mxu1 %v9421_v39 }
 0x1fb   :  { %2224 = vmatpush.msrb.mxu2 %v9420_v38  ;;  %2244 = vmatpush.msrb.mxu3 %v9421_v39  ;;  %v7416_v39 = vpop.f32.mrf.mxu0 }
 0x1fc   :  { %2182 = vmatpush.msrb.mxu0 %v6864_v9  ;;  %2202 = vmatpush.msrb.mxu1 %v9422_v40 }
 0x1fd   :  { %2225 = vmatpush.msrb.mxu2 %v6864_v9  ;;  %2245 = vmatpush.msrb.mxu3 %v9422_v40  ;;  %v9423_v9 = vld [vmem:[#allocation80_spill] sm:$0xff]  ;;  %v7418_v40 = vpop.f32.mrf.mxu1 }
 0x1fe   :  { %2183 = vmatpush.msrb.mxu0 %v6881_v5  ;;  %2203 = vmatpush.msrb.mxu1 %v6886_v0 }
 0x1ff   :  { %2226 = vmatpush.msrb.mxu2 %v6881_v5  ;;  %2246 = vmatpush.msrb.mxu3 %v6886_v0  ;;  %v2169_v5 = vrot.slane %v7128_v34, 1  ;;  %v7280_v0 = vpop.f32.mrf.mxu2 }
 0x200   :  { %2184 = vmatpush.msrb.mxu0 %v6900_v59  ;;  %2204 = vmatpush.msrb.mxu1 %v6905_v47 }
 0x201   :  { %2227 = vmatpush.msrb.mxu2 %v6900_v59  ;;  %2247 = vmatpush.msrb.mxu3 %v6905_v47  ;;  %v2212_v59 = vrot.slane %v7095_v19, 1  ;;  %v7282_v47 = vpop.f32.mrf.mxu3 }
 0x202   :  { %2185 = vmatpush.msrb.mxu0 %v6922_v22  ;;  %2205 = vmatpush.msrb.mxu1 %v9423_v9 }
 0x203   :  { %2228 = vmatpush.msrb.mxu2 %v6922_v22  ;;  %2248 = vmatpush.msrb.mxu3 %v9423_v9  ;;  %v4402_v9 = vld [vmem:[%s8845_s3 + $0x110] sm:$0xff] }
 0x204   :  { %2186 = vmatpush.msrb.mxu0 %v6939_v2  ;;  %2206 = vmatpush.msrb.mxu1 %v6944_v52 }
 0x205   :  { %2229 = vmatpush.msrb.mxu2 %v6939_v2  ;;  %2249 = vmatpush.msrb.mxu3 %v6944_v52 }
 0x206   :  { %2187 = vmatpush.msrb.mxu0 %v6954_v48  ;;  %2207 = vmatpush.msrb.mxu1 %v6959_v4 }
 0x207   :  { %2230 = vmatpush.msrb.mxu2 %v6954_v48  ;;  %2250 = vmatpush.msrb.mxu3 %v6959_v4  ;;  %v7292_v22 = vpop.f32.mrf.mxu2  ;;  %v4430_v4 = vld [vmem:[%s8845_s3 + $0x1f0] sm:$0xff] }
 0x208   :  { %4396 = vmatmul.msk.f32.vlgmr.msrb.gmra.mxu0 %vm98_vm0, %v2169_v5  ;;  %4397 = vmatmul.msk.f32.vlgmr.msrb.gmra.mxu1 %vm98_vm0, %v2169_v5  ;;  %v4403_v5 = vld [vmem:[%s8845_s3 + $0x118] sm:$0xff] }
 0x209   :  { %4398 = vmatmul.msk.f32.vlgmr.msrb.gmra.mxu2 %vm98_vm0, %v2212_v59  ;;  %4399 = vmatmul.msk.f32.vlgmr.msrb.gmra.mxu3 %vm98_vm0, %v2212_v59  ;;  %v7294_v2 = vpop.f32.mrf.mxu3  ;;  %v4400_v59 = vld [vmem:[%s8845_s3 + $0x100] sm:$0xff] }
 0x20a   :  { %9424 = vst [vmem:[#allocation8_spill] sm:$0xff] %v7294_v2  ;;  %2344 = vmatpush.msra.mxu0 %v4430_v4  ;;  %2364 = vmatpush.msra.mxu1 %v4431_v43 }
 0x20b   :  { %2384 = vmatpush.msra.mxu2 %v4430_v4  ;;  %2404 = vmatpush.msra.mxu3 %v4431_v43  ;;  %v4401_v4 = vld [vmem:[%s8845_s3 + $0x108] sm:$0xff]  ;;  %v2309_v43 = vld [vmem:[%s8845_s3 + $0xf0] sm:$0xff] }
 0x20c   :  { %2345 = vmatpush.msra.mxu0 %v4428_v44  ;;  %2365 = vmatpush.msra.mxu1 %v4429_v45 }
 0x20d   :  { %2385 = vmatpush.msra.mxu2 %v4428_v44  ;;  %2405 = vmatpush.msra.mxu3 %v4429_v45  ;;  %v2310_v44 = vld [vmem:[%s8845_s3 + $0xf8] sm:$0xff]  ;;  %v2307_v45 = vld [vmem:[%s8845_s3 + $0xe0] sm:$0xff] }
 0x20e   :  { %2346 = vmatpush.msra.mxu0 %v4426_v46  ;;  %2366 = vmatpush.msra.mxu1 %v4427_v6 }
 0x20f   :  { %v7296_v52 = vpop.f32.mrf.mxu2  ;;  %2386 = vmatpush.msra.mxu2 %v4426_v46  ;;  %2406 = vmatpush.msra.mxu3 %v4427_v6  ;;  %v2308_v46 = vld [vmem:[%s8845_s3 + $0xe8] sm:$0xff] }
 0x210   :  { %2347 = vmatpush.msra.mxu0 %v4424_v21  ;;  %2367 = vmatpush.msra.mxu1 %v4425_v12 }
 0x211   :  { %v7298_v19 = vpop.f32.mrf.mxu3  ;;  %2387 = vmatpush.msra.mxu2 %v4424_v21  ;;  %2407 = vmatpush.msra.mxu3 %v4425_v12  ;;  %v7448_v12 = vpop.f32.mrf.mxu0 }
 0x212   :  { %2348 = vmatpush.msra.mxu0 %v4422_v3  ;;  %2368 = vmatpush.msra.mxu1 %v4423_v10 }
 0x213   :  { %2388 = vmatpush.msra.mxu2 %v4422_v3  ;;  %2408 = vmatpush.msra.mxu3 %v4423_v10  ;;  %v7450_v3 = vpop.f32.mrf.mxu1  ;;  %v2305_v10 = vld [vmem:[%s8845_s3 + $0xd0] sm:$0xff] }
 0x214   :  { %2349 = vmatpush.msra.mxu0 %v4420_v54  ;;  %2369 = vmatpush.msra.mxu1 %v4421_v11 }
 0x215   :  { %2389 = vmatpush.msra.mxu2 %v4420_v54  ;;  %2409 = vmatpush.msra.mxu3 %v4421_v11  ;;  %v2306_v54 = vld [vmem:[%s8845_s3 + $0xd8] sm:$0xff]  ;;  %v2303_v11 = vld [vmem:[%s8845_s3 + $0xc0] sm:$0xff] }
 0x216   :  { %2350 = vmatpush.msra.mxu0 %v4418_v58  ;;  %2370 = vmatpush.msra.mxu1 %v4419_v60 }
 0x217   :  { %v7300_v34 = vpop.f32.mrf.mxu2  ;;  %2390 = vmatpush.msra.mxu2 %v4418_v58  ;;  %2410 = vmatpush.msra.mxu3 %v4419_v60  ;;  %v2304_v58 = vld [vmem:[%s8845_s3 + $0xc8] sm:$0xff]  ;;  %v2301_v60 = vld [vmem:[%s8845_s3 + $0xb0] sm:$0xff] }
 0x218   :  { %2351 = vmatpush.msra.mxu0 %v4416_v13  ;;  %2371 = vmatpush.msra.mxu1 %v4417_v14 }
 0x219   :  { %v7302_v48 = vpop.f32.mrf.mxu3  ;;  %2391 = vmatpush.msra.mxu2 %v4416_v13  ;;  %2411 = vmatpush.msra.mxu3 %v4417_v14  ;;  %v2302_v13 = vld [vmem:[%s8845_s3 + $0xb8] sm:$0xff]  ;;  %v2299_v14 = vld [vmem:[%s8845_s3 + $0xa0] sm:$0xff] }
 0x21a   :  { %2352 = vmatpush.msra.mxu0 %v4414_v15  ;;  %2372 = vmatpush.msra.mxu1 %v4415_v16 }
 0x21b   :  { %2392 = vmatpush.msra.mxu2 %v4414_v15  ;;  %2412 = vmatpush.msra.mxu3 %v4415_v16  ;;  %v2300_v15 = vld [vmem:[%s8845_s3 + $0xa8] sm:$0xff]  ;;  %v2297_v16 = vld [vmem:[%s8845_s3 + $0x90] sm:$0xff] }
 0x21c   :  { %2353 = vmatpush.msra.mxu0 %v4412_v17  ;;  %2373 = vmatpush.msra.mxu1 %v4413_v18 }
 0x21d   :  { %2393 = vmatpush.msra.mxu2 %v4412_v17  ;;  %2413 = vmatpush.msra.mxu3 %v4413_v18  ;;  %v2298_v17 = vld [vmem:[%s8845_s3 + $0x98] sm:$0xff] }
 0x21e   :  { %2354 = vmatpush.msra.mxu0 %v4410_v20  ;;  %2374 = vmatpush.msra.mxu1 %v4411_v25 }
 0x21f   :  { %v7322_v1 = vpop.f32.mrf.mxu2  ;;  %2394 = vmatpush.msra.mxu2 %v4410_v20  ;;  %2414 = vmatpush.msra.mxu3 %v4411_v25  ;;  %v7486_v25 = vpop.f32.mrf.mxu0 }
 0x220   :  { %2355 = vmatpush.msra.mxu0 %v4408_v28  ;;  %2375 = vmatpush.msra.mxu1 %v4409_v29 }
 0x221   :  { %v7324_v63 = vpop.f32.mrf.mxu3  ;;  %2395 = vmatpush.msra.mxu2 %v4408_v28  ;;  %2415 = vmatpush.msra.mxu3 %v4409_v29  ;;  %v7488_v28 = vpop.f32.mrf.mxu1  ;;  %v2295_v29 = vld [vmem:[%s8845_s3 + $0x80] sm:$0xff] }
 0x222   :  { %2356 = vmatpush.msra.mxu0 %v4406_v31  ;;  %2376 = vmatpush.msra.mxu1 %v4407_v33 }
 0x223   :  { %2396 = vmatpush.msra.mxu2 %v4406_v31  ;;  %2416 = vmatpush.msra.mxu3 %v4407_v33  ;;  %v2296_v31 = vld [vmem:[%s8845_s3 + $0x88] sm:$0xff]  ;;  %v2293_v33 = vld [vmem:[%s8845_s3 + $0x70] sm:$0xff] }
 0x224   :  { %2357 = vmatpush.msra.mxu0 %v4404_v35  ;;  %2377 = vmatpush.msra.mxu1 %v4405_v36 }
 0x225   :  { %2397 = vmatpush.msra.mxu2 %v4404_v35  ;;  %2417 = vmatpush.msra.mxu3 %v4405_v36  ;;  %v2294_v35 = vld [vmem:[%s8845_s3 + $0x78] sm:$0xff]  ;;  %v2291_v36 = vld [vmem:[%s8845_s3 + $0x60] sm:$0xff] }
 0x226   :  { %2358 = vmatpush.msra.mxu0 %v4402_v9  ;;  %2378 = vmatpush.msra.mxu1 %v4403_v5 }
 0x227   :  { %v7326_v55 = vpop.f32.mrf.mxu2  ;;  %2398 = vmatpush.msra.mxu2 %v4402_v9  ;;  %2418 = vmatpush.msra.mxu3 %v4403_v5  ;;  %v2292_v9 = vld [vmem:[%s8845_s3 + $0x68] sm:$0xff] }
 0x228   :  { %2359 = vmatpush.msra.mxu0 %v4400_v59  ;;  %2379 = vmatpush.msra.mxu1 %v4401_v4 }
 0x229   :  { %v7328_v49 = vpop.f32.mrf.mxu3  ;;  %2399 = vmatpush.msra.mxu2 %v4400_v59  ;;  %2419 = vmatpush.msra.mxu3 %v4401_v4 }
 0x22a   :  { %2424 = vmatpush.msrb.mxu0 %v2309_v43  ;;  %2444 = vmatpush.msrb.mxu1 %v2310_v44 }
 0x22b   :  { %2464 = vmatpush.msrb.mxu2 %v2309_v43  ;;  %2484 = vmatpush.msrb.mxu3 %v2310_v44  ;;  %v2289_v44 = vld [vmem:[%s8845_s3 + $0x50] sm:$0xff] }
 0x22c   :  { %2425 = vmatpush.msrb.mxu0 %v2307_v45  ;;  %2445 = vmatpush.msrb.mxu1 %v2308_v46 }
 0x22d   :  { %2465 = vmatpush.msrb.mxu2 %v2307_v45  ;;  %2485 = vmatpush.msrb.mxu3 %v2308_v46  ;;  %v2290_v45 = vld [vmem:[%s8845_s3 + $0x58] sm:$0xff]  ;;  %v2287_v46 = vld [vmem:[%s8845_s3 + $0x40] sm:$0xff] }
 0x22e   :  { %2426 = vmatpush.msrb.mxu0 %v2305_v10  ;;  %2446 = vmatpush.msrb.mxu1 %v2306_v54 }
 0x22f   :  { %v7348_v62 = vpop.f32.mrf.mxu2  ;;  %2466 = vmatpush.msrb.mxu2 %v2305_v10  ;;  %2486 = vmatpush.msrb.mxu3 %v2306_v54  ;;  %v2288_v10 = vld [vmem:[%s8845_s3 + $0x48] sm:$0xff]  ;;  %v2285_v54 = vld [vmem:[%s8845_s3 + $0x30] sm:$0xff] }
 0x230   :  { %2427 = vmatpush.msrb.mxu0 %v2303_v11  ;;  %2447 = vmatpush.msrb.mxu1 %v2304_v58 }
 0x231   :  { %v7350_v8 = vpop.f32.mrf.mxu3  ;;  %2467 = vmatpush.msrb.mxu2 %v2303_v11  ;;  %2487 = vmatpush.msrb.mxu3 %v2304_v58  ;;  %v2286_v11 = vld [vmem:[%s8845_s3 + $0x38] sm:$0xff] }
 0x232   :  { %2428 = vmatpush.msrb.mxu0 %v2301_v60  ;;  %2448 = vmatpush.msrb.mxu1 %v2302_v13 }
 0x233   :  { %2468 = vmatpush.msrb.mxu2 %v2301_v60  ;;  %2488 = vmatpush.msrb.mxu3 %v2302_v13  ;;  %v2283_v13 = vld [vmem:[%s8845_s3 + $0x20] sm:$0xff] }
 0x234   :  { %2429 = vmatpush.msrb.mxu0 %v2299_v14  ;;  %2449 = vmatpush.msrb.mxu1 %v2300_v15 }
 0x235   :  { %2469 = vmatpush.msrb.mxu2 %v2299_v14  ;;  %2489 = vmatpush.msrb.mxu3 %v2300_v15  ;;  %v2284_v14 = vld [vmem:[%s8845_s3 + $0x28] sm:$0xff] }
 0x236   :  { %2430 = vmatpush.msrb.mxu0 %v2297_v16  ;;  %2450 = vmatpush.msrb.mxu1 %v2298_v17  ;;  %v1786_v4 = vpop.f32.mrf.mxu0  ;;  %v1806_v43 = vpop.f32.mrf.mxu1 }
 0x237   :  { %v7386_v26 = vpop.f32.mrf.mxu2  ;;  %2470 = vmatpush.msrb.mxu2 %v2297_v16  ;;  %2490 = vmatpush.msrb.mxu3 %v2298_v17  ;;  %v2281_v17 = vld [vmem:[%s8845_s3 + $0x10] sm:$0xff] }
 0x238   :  { %2431 = vmatpush.msrb.mxu0 %v2295_v29  ;;  %2451 = vmatpush.msrb.mxu1 %v2296_v31 }
 0x239   :  { %v7388_v27 = vpop.f32.mrf.mxu3  ;;  %2471 = vmatpush.msrb.mxu2 %v2295_v29  ;;  %2491 = vmatpush.msrb.mxu3 %v2296_v31  ;;  %v2282_v29 = vld [vmem:[%s8845_s3 + $0x18] sm:$0xff]  ;;  %v2279_v31 = vld [vmem:[%s8845_s3] sm:$0xff] }
 0x23a   :  { %2432 = vmatpush.msrb.mxu0 %v2293_v33  ;;  %2452 = vmatpush.msrb.mxu1 %v2294_v35 }
 0x23b   :  { %2472 = vmatpush.msrb.mxu2 %v2293_v33  ;;  %2492 = vmatpush.msrb.mxu3 %v2294_v35  ;;  %v2280_v33 = vld [vmem:[%s8845_s3 + $0x8] sm:$0xff] }
 0x23c   :  { %2433 = vmatpush.msrb.mxu0 %v2291_v36  ;;  %2453 = vmatpush.msrb.mxu1 %v2292_v9 }
 0x23d   :  { %2473 = vmatpush.msrb.mxu2 %v2291_v36  ;;  %2493 = vmatpush.msrb.mxu3 %v2292_v9 }
 0x23e   :  { %2434 = vmatpush.msrb.mxu0 %v2289_v44  ;;  %2454 = vmatpush.msrb.mxu1 %v2290_v45 }
 0x23f   :  { %v7412_v37 = vpop.f32.mrf.mxu2  ;;  %2474 = vmatpush.msrb.mxu2 %v2289_v44  ;;  %2494 = vmatpush.msrb.mxu3 %v2290_v45  ;;  %v1321_v45 = vadd.f32 %v7396_v30, %v7352_v56 }
 0x240   :  { %2435 = vmatpush.msrb.mxu0 %v2287_v46  ;;  %2455 = vmatpush.msrb.mxu1 %v2288_v10 }
 0x241   :  { %v7414_v38 = vpop.f32.mrf.mxu3  ;;  %2475 = vmatpush.msrb.mxu2 %v2287_v46  ;;  %2495 = vmatpush.msrb.mxu3 %v2288_v10  ;;  %v1341_v46 = vadd.f32 %v7398_v53, %v7354_v57  ;;  %v1361_v53 = vadd.f32 %v7412_v37, %v7386_v26 }
 0x242   :  { %2436 = vmatpush.msrb.mxu0 %v2285_v54  ;;  %2456 = vmatpush.msrb.mxu1 %v2286_v11 }
 0x243   :  { %2476 = vmatpush.msrb.mxu2 %v2285_v54  ;;  %2496 = vmatpush.msrb.mxu3 %v2286_v11 }
 0x244   :  { %2437 = vmatpush.msrb.mxu0 %v2283_v13  ;;  %2457 = vmatpush.msrb.mxu1 %v2284_v14  ;;  %v1866_v15 = vpop.f32.mrf.mxu0  ;;  %v1886_v16 = vpop.f32.mrf.mxu1 }
 0x245   :  { %2477 = vmatpush.msrb.mxu2 %v2283_v13  ;;  %2497 = vmatpush.msrb.mxu3 %v2284_v14  ;;  %v1487_v14 = vadd.f32 %v7416_v39, %v1321_v45  ;;  %v1887_v61 = vadd.f32 %v1886_v16, %v1806_v43  ;;  %v1381_v39 = vadd.f32 %v7414_v38, %v7388_v27 }
 0x246   :  { %2438 = vmatpush.msrb.mxu0 %v2281_v17  ;;  %2458 = vmatpush.msrb.mxu1 %v2282_v29 }
 0x247   :  { %v7444_v6 = vpop.f32.mrf.mxu2  ;;  %2478 = vmatpush.msrb.mxu2 %v2281_v17  ;;  %2498 = vmatpush.msrb.mxu3 %v2282_v29  ;;  %v1488_v17 = vadd.f32 %v7418_v40, %v1341_v46  ;;  %v1595_v29 = vadd.f32 %v7448_v12, %v1487_v14  ;;  %v249_v40 = vadd.f32 %v7238_v51, %v7210_v23 }
 0x248   :  { %2439 = vmatpush.msrb.mxu0 %v2279_v31  ;;  %2459 = vmatpush.msrb.mxu1 %v2280_v33  ;;  %v269_v12 = vadd.f32 %v7240_v32, %v7212_v24  ;;  %v1489_v26 = vadd.f32 %v7444_v6, %v1361_v53  ;;  %v4460_v53 = vld [vmem:[%s8845_s3 + $0x2e0] sm:$0xff] }
 0x249   :  { %v7446_v21 = vpop.f32.mrf.mxu3  ;;  %2479 = vmatpush.msrb.mxu2 %v2279_v31  ;;  %2499 = vmatpush.msrb.mxu3 %v2280_v33  ;;  %v1596_v31 = vadd.f32 %v7450_v3, %v1488_v17  ;;  %v1867_v33 = vadd.f32 %v1866_v15, %v1786_v4  ;;  %v1709_v2 = vadd.f32 %v7486_v25, %v1595_v29 }
 0x24a   :  { %v1490_v27 = vadd.f32 %v7446_v21, %v1381_v39 }
 0x24b   :  { %v1710_v56 = vadd.f32 %v7488_v28, %v1596_v31  ;;  %v815_v28 = vadd.f32 %v7300_v34, %v7296_v52  ;;  %v1713_v23 = vadd.f32 %v1709_v2, %v6915_v7 }
 0x24d   :  { %v1714_v24 = vadd.f32 %v1710_v56, %v6930_v50  ;;  %v943_v34 = vadd.f32 %v7322_v1, %v815_v28  ;;  %v1717_v45 = vmax.f32 %v1713_v23, 0.0  ;;  %v385_v1 = vadd.f32 %v7260_v42, %v269_v12  ;;  %v4457_v23 = vld [vmem:[%s8845_s3 + $0x2c8] sm:$0xff] }
 0x24f   :  { %v7482_v18 = vpop.f32.mrf.mxu2  ;;  %v500_v42 = vadd.f32 %v7282_v47, %v385_v1  ;;  %v4440_v1 = vld [vmem:[%s8845_s3 + $0x240] sm:$0xff] }
 0x250   :  { %v1597_v15 = vadd.f32 %v7482_v18, %v1489_v26 }
 0x251   :  { %v7484_v20 = vpop.f32.mrf.mxu3  ;;  %v1970_v9 = vpop.f32.mrf.mxu0 }
 0x252   :  { %v1990_v44 = vpop.f32.mrf.mxu1  ;;  %v2033_v30 = vadd.f32 %v1970_v9, %v1867_v33  ;;  %v1598_v16 = vadd.f32 %v7484_v20, %v1490_v27  ;;  %v1718_v20 = vmax.f32 %v1714_v24, 0.0 }
 0x253   :  { %v2034_v57 = vadd.f32 %v1990_v44, %v1887_v61  ;;  %v835_v61 = vadd.f32 %v7302_v48, %v7298_v19 }
 0x255   :  { %v944_v48 = vadd.f32 %v7324_v63, %v835_v61 }
 0x257   :  { %v7508_v5 = vpop.f32.mrf.mxu2 }
 0x258   :  { %v1711_v21 = vadd.f32 %v7508_v5, %v1597_v15 }
 0x259   :  { %v7510_v59 = vpop.f32.mrf.mxu3 }
 0x25a   :  { %v1712_v9 = vadd.f32 %v7510_v59, %v1598_v16  ;;  %v9426_v16 = vld [vmem:[#allocation81_spill] sm:$0xff] }
 0x25f   :  { %v7530_v58 = vpop.f32.mrf.mxu2 }
 0x261   :  { %v7532_v60 = vpop.f32.mrf.mxu3 }
 0x267   :  { %v1906_v35 = vpop.f32.mrf.mxu2 }
 0x268   :  { %v1907_v52 = vadd.f32 %v1906_v35, %v7530_v58 }
 0x269   :  { %v1926_v36 = vpop.f32.mrf.mxu3 }
 0x26a   :  { %v1927_v19 = vadd.f32 %v1926_v36, %v7532_v60  ;;  %v384_v60 = vadd.f32 %v7258_v41, %v249_v40  ;;  %v1051_v36 = vadd.f32 %v7326_v55, %v943_v34  ;;  %v4462_v55 = vld [vmem:[%s8845_s3 + $0x2f0] sm:$0xff] }
 0x26b   :  { %v2078_v11 = vpop.f32.mrf.mxu0  ;;  %v2098_v13 = vpop.f32.mrf.mxu1 }
 0x26c   :  { %v2141_v3 = vadd.f32 %v2078_v11, %v2033_v30  ;;  %v2142_v4 = vadd.f32 %v2098_v13, %v2034_v57  ;;  %v1052_v11 = vadd.f32 %v7328_v49, %v944_v48  ;;  %v499_v41 = vadd.f32 %v7280_v0, %v384_v60  ;;  %v4463_v49 = vld [vmem:[%s8845_s3 + $0x2f8] sm:$0xff] }
 0x26d   :  { %v1165_v31 = vadd.f32 %v7348_v62, %v1051_v36  ;;  %v9425_v57 = vld [vmem:[#allocation8_spill] sm:$0xff] }
 0x26e   :  { %v1166_v56 = vadd.f32 %v7350_v8, %v1052_v11  ;;  %v614_v47 = vadd.f32 %v7292_v22, %v499_v41  ;;  %v615_v62 = vadd.f32 %v9425_v57, %v500_v42  ;;  %v4461_v8 = vld [vmem:[%s8845_s3 + $0x2e8] sm:$0xff]  ;;  %v4443_v60 = vld [vmem:[%s8845_s3 + $0x258] sm:$0xff]  ;;  %v4436_v11 = vld [vmem:[%s8845_s3 + $0x220] sm:$0xff] }
 0x26f   :  { %v2010_v10 = vpop.f32.mrf.mxu2  ;;  %v1169_v22 = vadd.f32 %v1165_v31, %v6915_v7  ;;  %v4439_v36 = vld [vmem:[%s8845_s3 + $0x238] sm:$0xff]  ;;  %v4492_v41 = vld [vmem:[%s8845_s3 + $0x3e0] sm:$0xff]  ;;  %v4493_v42 = vld [vmem:[%s8845_s3 + $0x3e8] sm:$0xff] }
 0x270   :  { %v2035_v44 = vadd.f32 %v2010_v10, %v1907_v52  ;;  %v1715_v10 = vadd.f32 %v1711_v21, %v6915_v7  ;;  %v623_v26 = vadd.f32 %v6915_v7, %v614_v47  ;;  %v624_v27 = vadd.f32 %v6930_v50, %v615_v62  ;;  %v4452_v52 = vld [vmem:[%s8845_s3 + $0x2a0] sm:$0xff]  ;;  %v4490_v31 = vld [vmem:[%s8845_s3 + $0x3d0] sm:$0xff]  ;;  %v4487_v47 = vld [vmem:[%s8845_s3 + $0x3b8] sm:$0xff] }
 0x271   :  { %v2030_v54 = vpop.f32.mrf.mxu3  ;;  %v1173_v24 = vmax.f32 %v1169_v22, 0.0  ;;  %v4484_v57 = vld [vmem:[%s8845_s3 + $0x3a0] sm:$0xff]  ;;  %v4485_v62 = vld [vmem:[%s8845_s3 + $0x3a8] sm:$0xff] }
 0x272   :  { %v2036_v18 = vadd.f32 %v2030_v54, %v1927_v19  ;;  %v1716_v54 = vadd.f32 %v1712_v9, %v6930_v50  ;;  %v1719_v39 = vmax.f32 %v1715_v10, 0.0  ;;  %v628_v15 = vmax.f32 %v624_v27, 0.0  ;;  %v4453_v19 = vld [vmem:[%s8845_s3 + $0x2a8] sm:$0xff]  ;;  %v4448_v9 = vld [vmem:[%s8845_s3 + $0x280] sm:$0xff]  ;;  %v4471_v27 = vld [vmem:[%s8845_s3 + $0x338] sm:$0xff] }
 0x273   :  { %v4433_v10 = vld [vmem:[%s8845_s3 + $0x208] sm:$0xff]  ;;  %v4476_v22 = vld [vmem:[%s8845_s3 + $0x360] sm:$0xff] }
 0x274   :  { %v1720_v40 = vmax.f32 %v1716_v54, 0.0  ;;  %v7717_v54 = vrot.slane %v9426_v16, 1 }
 0x277   :  { %v2118_v43 = vpop.f32.mrf.mxu2 }
 0x278   :  { %v2143_v35 = vadd.f32 %v2118_v43, %v2035_v44  ;;  %v4459_v43 = vld [vmem:[%s8845_s3 + $0x2d8] sm:$0xff]  ;;  %v4449_v44 = vld [vmem:[%s8845_s3 + $0x288] sm:$0xff] }
 0x279   :  { %v2138_v25 = vpop.f32.mrf.mxu3 }
 0x27a   :  { %v2144_v63 = vadd.f32 %v2138_v25, %v2036_v18  ;;  %v1170_v25 = vadd.f32 %v1166_v56, %v6930_v50  ;;  %v4446_v18 = vld [vmem:[%s8845_s3 + $0x270] sm:$0xff]  ;;  %v4488_v56 = vld [vmem:[%s8845_s3 + $0x3c0] sm:$0xff] }
 0x285   :  { %v2189_v37 = vpop.f32.mrf.mxu0  ;;  %v2209_v38 = vpop.f32.mrf.mxu1 }
 0x286   :  { %v2255_v51 = vadd.f32 %v2189_v37, %v2141_v3  ;;  %v2256_v32 = vadd.f32 %v2209_v38, %v2142_v4  ;;  %v4458_v4 = vld [vmem:[%s8845_s3 + $0x2d0] sm:$0xff]  ;;  %v4456_v38 = vld [vmem:[%s8845_s3 + $0x2c0] sm:$0xff] }
 0x288   :  { %v2259_v6 = vadd.f32 %v2255_v51, %v6915_v7  ;;  %v2260_v2 = vadd.f32 %v2256_v32, %v6930_v50  ;;  %v1174_v51 = vmax.f32 %v1170_v25, 0.0  ;;  %v627_v32 = vmax.f32 %v623_v26, 0.0  ;;  %v4475_v25 = vld [vmem:[%s8845_s3 + $0x358] sm:$0xff]  ;;  %v4470_v26 = vld [vmem:[%s8845_s3 + $0x330] sm:$0xff] }
 0x28a   :  { %v2263_v46 = vmax.f32 %v2259_v6, 0.0  ;;  %v2264_v58 = vmax.f32 %v2260_v2, 0.0  ;;  %v2269_v34 = vmax.f32 %v627_v32, %v1173_v24  ;;  %v2270_v48 = vmax.f32 %v628_v15, %v1174_v51  ;;  %v4450_v6 = vld [vmem:[%s8845_s3 + $0x290] sm:$0xff]  ;;  %v4451_v2 = vld [vmem:[%s8845_s3 + $0x298] sm:$0xff] }
 0x28b   :  { %v4466_v24 = vld [vmem:[%s8845_s3 + $0x310] sm:$0xff]  ;;  %v4467_v51 = vld [vmem:[%s8845_s3 + $0x318] sm:$0xff] }
 0x28c   :  { %v2271_v13 = vmax.f32 %v1717_v45, %v2263_v46  ;;  %v2272_v5 = vmax.f32 %v1718_v20, %v2264_v58  ;;  %v2232_v14 = vpop.f32.mrf.mxu2  ;;  %v2252_v59 = vpop.f32.mrf.mxu3  ;;  %v7658_v21 = vmax.f32 %v2269_v34, %v2270_v48  ;;  %v4447_v45 = vld [vmem:[%s8845_s3 + $0x278] sm:$0xff]  ;;  %v4444_v20 = vld [vmem:[%s8845_s3 + $0x260] sm:$0xff]  ;;  %v4445_v46 = vld [vmem:[%s8845_s3 + $0x268] sm:$0xff] }
 0x28d   :  { %v2257_v17 = vadd.f32 %v2232_v14, %v2143_v35  ;;  %v2258_v29 = vadd.f32 %v2252_v59, %v2144_v63  ;;  %v4442_v58 = vld [vmem:[%s8845_s3 + $0x250] sm:$0xff]  ;;  %v4441_v35 = vld [vmem:[%s8845_s3 + $0x248] sm:$0xff]  ;;  %v4435_v14 = vld [vmem:[%s8845_s3 + $0x218] sm:$0xff] }
 0x28e   :  { %v7597_v33 = vmax.f32 %v2271_v13, %v2272_v5  ;;  %v4438_v63 = vld [vmem:[%s8845_s3 + $0x230] sm:$0xff]  ;;  %v4437_v13 = vld [vmem:[%s8845_s3 + $0x228] sm:$0xff]  ;;  %v4432_v59 = vld [vmem:[%s8845_s3 + $0x200] sm:$0xff] }
 0x28f   :  { %v2261_v30 = vadd.f32 %v2257_v17, %v6915_v7  ;;  %v2262_v0 = vadd.f32 %v2258_v29, %v6930_v50  ;;  %v4454_v7 = vld [vmem:[%s8845_s3 + $0x2b0] sm:$0xff]  ;;  %v4455_v50 = vld [vmem:[%s8845_s3 + $0x2b8] sm:$0xff]  ;;  %v4525_v34 = vld [vmem:[%s8845_s3 + $0x4e8] sm:$0xff] }
 0x290   :  { %2360 = vmatmul.f32.vlgmr.msra.gmra.mxu0 %v7597_v33  ;;  %2380 = vmatmul.f32.vlgmr.msra.gmra.mxu1 %v7597_v33  ;;  %v4434_v5 = vld [vmem:[%s8845_s3 + $0x210] sm:$0xff]  ;;  %v4495_v29 = vld [vmem:[%s8845_s3 + $0x3f8] sm:$0xff]  ;;  %v7823_v32 = vrot.slane %v7597_v33, 1 }
 0x291   :  { %v2265_v12 = vmax.f32 %v2261_v30, 0.0  ;;  %v2266_v3 = vmax.f32 %v2262_v0, 0.0  ;;  %2540 = vmatpush.msra.mxu0 %v4462_v55  ;;  %2560 = vmatpush.msra.mxu1 %v4463_v49  ;;  %v4494_v17 = vld [vmem:[%s8845_s3 + $0x3f0] sm:$0xff]  ;;  %v4489_v30 = vld [vmem:[%s8845_s3 + $0x3c8] sm:$0xff] }
 0x292   :  { %v4486_v0 = vld [vmem:[%s8845_s3 + $0x3b0] sm:$0xff] }
 0x293   :  { %v2273_v28 = vmax.f32 %v1719_v39, %v2265_v12  ;;  %v2274_v61 = vmax.f32 %v1720_v40, %v2266_v3  ;;  %2541 = vmatpush.msra.mxu0 %v4460_v53  ;;  %2561 = vmatpush.msra.mxu1 %v4461_v8  ;;  %v4480_v39 = vld [vmem:[%s8845_s3 + $0x380] sm:$0xff]  ;;  %v4481_v40 = vld [vmem:[%s8845_s3 + $0x388] sm:$0xff]  ;;  %v4478_v12 = vld [vmem:[%s8845_s3 + $0x370] sm:$0xff] }
 0x294   :  { %v4479_v3 = vld [vmem:[%s8845_s3 + $0x378] sm:$0xff]  ;;  %v4526_v15 = vld [vmem:[%s8845_s3 + $0x4f0] sm:$0xff] }
 0x295   :  { %v7628_v37 = vmax.f32 %v2273_v28, %v2274_v61  ;;  %2542 = vmatpush.msra.mxu0 %v4458_v4  ;;  %2562 = vmatpush.msra.mxu1 %v4459_v43  ;;  %v4472_v28 = vld [vmem:[%s8845_s3 + $0x340] sm:$0xff]  ;;  %v4473_v61 = vld [vmem:[%s8845_s3 + $0x348] sm:$0xff]  ;;  %v4522_v48 = vld [vmem:[%s8845_s3 + $0x4d0] sm:$0xff] }
 0x297   :  { %2400 = vmatmul.f32.vlgmr.msra.gmra.mxu2 %v7628_v37  ;;  %2420 = vmatmul.f32.vlgmr.msra.gmra.mxu3 %v7628_v37 }
 0x298   :  { %2543 = vmatpush.msra.mxu0 %v4456_v38  ;;  %2563 = vmatpush.msra.mxu1 %v4457_v23 }
 0x299   :  { %2583 = vmatpush.msra.mxu2 %v4462_v55  ;;  %2603 = vmatpush.msra.mxu3 %v4463_v49  ;;  %v4491_v55 = vld [vmem:[%s8845_s3 + $0x3d8] sm:$0xff]  ;;  %v7740_v49 = vrot.slane %v7658_v21, 1 }
 0x29a   :  { %2440 = vmatmul.f32.vlgmr.msrb.gmra.mxu0 %v9426_v16  ;;  %2460 = vmatmul.f32.vlgmr.msrb.gmra.mxu1 %v9426_v16 }
 0x29b   :  { %2544 = vmatpush.msra.mxu0 %v4454_v7  ;;  %2564 = vmatpush.msra.mxu1 %v4455_v50 }
 0x29c   :  { %2584 = vmatpush.msra.mxu2 %v4460_v53  ;;  %2604 = vmatpush.msra.mxu3 %v4461_v8  ;;  %v4482_v53 = vld [vmem:[%s8845_s3 + $0x390] sm:$0xff]  ;;  %v4483_v8 = vld [vmem:[%s8845_s3 + $0x398] sm:$0xff] }
 0x29d   :  { %2545 = vmatpush.msra.mxu0 %v4452_v52  ;;  %2565 = vmatpush.msra.mxu1 %v4453_v19 }
 0x29e   :  { %2585 = vmatpush.msra.mxu2 %v4458_v4  ;;  %2605 = vmatpush.msra.mxu3 %v4459_v43  ;;  %v4477_v4 = vld [vmem:[%s8845_s3 + $0x368] sm:$0xff]  ;;  %v4474_v43 = vld [vmem:[%s8845_s3 + $0x350] sm:$0xff] }
 0x29f   :  { %2546 = vmatpush.msra.mxu0 %v4450_v6  ;;  %2566 = vmatpush.msra.mxu1 %v4451_v2 }
 0x2a0   :  { %2586 = vmatpush.msra.mxu2 %v4456_v38  ;;  %2606 = vmatpush.msra.mxu3 %v4457_v23  ;;  %v4468_v38 = vld [vmem:[%s8845_s3 + $0x320] sm:$0xff]  ;;  %v4469_v23 = vld [vmem:[%s8845_s3 + $0x328] sm:$0xff] }
 0x2a1   :  { %2480 = vmatmul.f32.vlgmr.msrb.gmra.mxu2 %v7658_v21  ;;  %2500 = vmatmul.f32.vlgmr.msrb.gmra.mxu3 %v7658_v21 }
 0x2a2   :  { %2547 = vmatpush.msra.mxu0 %v4448_v9  ;;  %2567 = vmatpush.msra.mxu1 %v4449_v44 }
 0x2a3   :  { %2587 = vmatpush.msra.mxu2 %v4454_v7  ;;  %2607 = vmatpush.msra.mxu3 %v4455_v50  ;;  %v4464_v7 = vld [vmem:[%s8845_s3 + $0x300] sm:$0xff]  ;;  %v4465_v50 = vld [vmem:[%s8845_s3 + $0x308] sm:$0xff] }
 0x2a4   :  { %2548 = vmatpush.msra.mxu0 %v4446_v18  ;;  %2568 = vmatpush.msra.mxu1 %v4447_v45 }
 0x2a5   :  { %2588 = vmatpush.msra.mxu2 %v4452_v52  ;;  %2608 = vmatpush.msra.mxu3 %v4453_v19  ;;  %v4527_v52 = vld [vmem:[%s8845_s3 + $0x4f8] sm:$0xff]  ;;  %v4524_v19 = vld [vmem:[%s8845_s3 + $0x4e0] sm:$0xff] }
 0x2a6   :  { %2549 = vmatpush.msra.mxu0 %v4444_v20  ;;  %2569 = vmatpush.msra.mxu1 %v4445_v46 }
 0x2a7   :  { %2589 = vmatpush.msra.mxu2 %v4450_v6  ;;  %2609 = vmatpush.msra.mxu3 %v4451_v2  ;;  %v4523_v6 = vld [vmem:[%s8845_s3 + $0x4d8] sm:$0xff]  ;;  %v7846_v2 = vrot.slane %v7628_v37, 1 }
 0x2a8   :  { %2550 = vmatpush.msra.mxu0 %v4442_v58  ;;  %2570 = vmatpush.msra.mxu1 %v4443_v60 }
 0x2a9   :  { %2590 = vmatpush.msra.mxu2 %v4448_v9  ;;  %2610 = vmatpush.msra.mxu3 %v4449_v44  ;;  %v4520_v9 = vld [vmem:[%s8845_s3 + $0x4c0] sm:$0xff]  ;;  %v4521_v44 = vld [vmem:[%s8845_s3 + $0x4c8] sm:$0xff] }
 0x2aa   :  { %2551 = vmatpush.msra.mxu0 %v4440_v1  ;;  %2571 = vmatpush.msra.mxu1 %v4441_v35 }
 0x2ab   :  { %2591 = vmatpush.msra.mxu2 %v4446_v18  ;;  %2611 = vmatpush.msra.mxu3 %v4447_v45  ;;  %v4518_v18 = vld [vmem:[%s8845_s3 + $0x4b0] sm:$0xff]  ;;  %v4519_v45 = vld [vmem:[%s8845_s3 + $0x4b8] sm:$0xff] }
 0x2ac   :  { %2552 = vmatpush.msra.mxu0 %v4438_v63  ;;  %2572 = vmatpush.msra.mxu1 %v4439_v36 }
 0x2ad   :  { %2592 = vmatpush.msra.mxu2 %v4444_v20  ;;  %2612 = vmatpush.msra.mxu3 %v4445_v46  ;;  %v4516_v20 = vld [vmem:[%s8845_s3 + $0x4a0] sm:$0xff]  ;;  %v4517_v46 = vld [vmem:[%s8845_s3 + $0x4a8] sm:$0xff] }
 0x2ae   :  { %2553 = vmatpush.msra.mxu0 %v4436_v11  ;;  %2573 = vmatpush.msra.mxu1 %v4437_v13 }
 0x2af   :  { %2593 = vmatpush.msra.mxu2 %v4442_v58  ;;  %2613 = vmatpush.msra.mxu3 %v4443_v60  ;;  %v4514_v58 = vld [vmem:[%s8845_s3 + $0x490] sm:$0xff]  ;;  %v4515_v60 = vld [vmem:[%s8845_s3 + $0x498] sm:$0xff] }
 0x2b0   :  { %2554 = vmatpush.msra.mxu0 %v4434_v5  ;;  %2574 = vmatpush.msra.mxu1 %v4435_v14 }
 0x2b1   :  { %2594 = vmatpush.msra.mxu2 %v4440_v1  ;;  %2614 = vmatpush.msra.mxu3 %v4441_v35  ;;  %v4512_v1 = vld [vmem:[%s8845_s3 + $0x480] sm:$0xff]  ;;  %v4513_v35 = vld [vmem:[%s8845_s3 + $0x488] sm:$0xff] }
 0x2b2   :  { %2555 = vmatpush.msra.mxu0 %v4432_v59  ;;  %2575 = vmatpush.msra.mxu1 %v4433_v10 }
 0x2b3   :  { %2595 = vmatpush.msra.mxu2 %v4438_v63  ;;  %2615 = vmatpush.msra.mxu3 %v4439_v36  ;;  %v4510_v63 = vld [vmem:[%s8845_s3 + $0x470] sm:$0xff]  ;;  %v4511_v36 = vld [vmem:[%s8845_s3 + $0x478] sm:$0xff] }
 0x2b4   :  { %2556 = vmatmul.f32.vlgmr.msra.gmra.mxu0 %v7717_v54  ;;  %2576 = vmatmul.f32.vlgmr.msra.gmra.mxu1 %v7717_v54 }
 0x2b5   :  { %2663 = vmatpush.msrb.mxu0 %v4494_v17  ;;  %2683 = vmatpush.msrb.mxu1 %v4495_v29 }
 0x2b6   :  { %2596 = vmatpush.msra.mxu2 %v4436_v11  ;;  %2616 = vmatpush.msra.mxu3 %v4437_v13  ;;  %v4508_v11 = vld [vmem:[%s8845_s3 + $0x460] sm:$0xff]  ;;  %v4509_v13 = vld [vmem:[%s8845_s3 + $0x468] sm:$0xff] }
 0x2b7   :  { %2664 = vmatpush.msrb.mxu0 %v4492_v41  ;;  %2684 = vmatpush.msrb.mxu1 %v4493_v42 }
 0x2b8   :  { %2597 = vmatpush.msra.mxu2 %v4434_v5  ;;  %2617 = vmatpush.msra.mxu3 %v4435_v14  ;;  %v4506_v5 = vld [vmem:[%s8845_s3 + $0x450] sm:$0xff]  ;;  %v4507_v14 = vld [vmem:[%s8845_s3 + $0x458] sm:$0xff] }
 0x2b9   :  { %2665 = vmatpush.msrb.mxu0 %v4490_v31  ;;  %2685 = vmatpush.msrb.mxu1 %v4491_v55 }
 0x2ba   :  { %2598 = vmatpush.msra.mxu2 %v4432_v59  ;;  %2618 = vmatpush.msra.mxu3 %v4433_v10  ;;  %v4504_v59 = vld [vmem:[%s8845_s3 + $0x440] sm:$0xff]  ;;  %v4505_v10 = vld [vmem:[%s8845_s3 + $0x448] sm:$0xff] }
 0x2bb   :  { %2599 = vmatmul.f32.vlgmr.msra.gmra.mxu2 %v7740_v49  ;;  %2619 = vmatmul.f32.vlgmr.msra.gmra.mxu3 %v7740_v49 }
 0x2bc   :  { %2666 = vmatpush.msrb.mxu0 %v4488_v56  ;;  %2686 = vmatpush.msrb.mxu1 %v4489_v30 }
 0x2bd   :  { %2706 = vmatpush.msrb.mxu2 %v4494_v17  ;;  %2726 = vmatpush.msrb.mxu3 %v4495_v29  ;;  %v4502_v17 = vld [vmem:[%s8845_s3 + $0x430] sm:$0xff]  ;;  %v4503_v29 = vld [vmem:[%s8845_s3 + $0x438] sm:$0xff] }
 0x2be   :  { %2667 = vmatpush.msrb.mxu0 %v4486_v0  ;;  %2687 = vmatpush.msrb.mxu1 %v4487_v47 }
 0x2bf   :  { %2707 = vmatpush.msrb.mxu2 %v4492_v41  ;;  %2727 = vmatpush.msrb.mxu3 %v4493_v42  ;;  %v4500_v41 = vld [vmem:[%s8845_s3 + $0x420] sm:$0xff]  ;;  %v4501_v42 = vld [vmem:[%s8845_s3 + $0x428] sm:$0xff] }
 0x2c0   :  { %2668 = vmatpush.msrb.mxu0 %v4484_v57  ;;  %2688 = vmatpush.msrb.mxu1 %v4485_v62 }
 0x2c1   :  { %2708 = vmatpush.msrb.mxu2 %v4490_v31  ;;  %2728 = vmatpush.msrb.mxu3 %v4491_v55  ;;  %v4498_v31 = vld [vmem:[%s8845_s3 + $0x410] sm:$0xff]  ;;  %v4499_v55 = vld [vmem:[%s8845_s3 + $0x418] sm:$0xff] }
 0x2c2   :  { %2669 = vmatpush.msrb.mxu0 %v4482_v53  ;;  %2689 = vmatpush.msrb.mxu1 %v4483_v8 }
 0x2c3   :  { %2709 = vmatpush.msrb.mxu2 %v4488_v56  ;;  %2729 = vmatpush.msrb.mxu3 %v4489_v30  ;;  %v4496_v56 = vld [vmem:[%s8845_s3 + $0x400] sm:$0xff]  ;;  %v4497_v30 = vld [vmem:[%s8845_s3 + $0x408] sm:$0xff] }
 0x2c4   :  { %2670 = vmatpush.msrb.mxu0 %v4480_v39  ;;  %2690 = vmatpush.msrb.mxu1 %v4481_v40 }
 0x2c5   :  { %2710 = vmatpush.msrb.mxu2 %v4486_v0  ;;  %2730 = vmatpush.msrb.mxu3 %v4487_v47  ;;  %v7929_v0 = vrot.slane %v9426_v16, 2  ;;  %v4558_v47 = vld [vmem:[%s8845_s3 + $0x1f0] sm:$0xff]  ;;  %v4557_v16 = vld [vmem:[%s8845_s3 + $0x1e8] sm:$0xff] }
 0x2c6   :  { %2671 = vmatpush.msrb.mxu0 %v4478_v12  ;;  %2691 = vmatpush.msrb.mxu1 %v4479_v3 }
 0x2c7   :  { %2711 = vmatpush.msrb.mxu2 %v4484_v57  ;;  %2731 = vmatpush.msrb.mxu3 %v4485_v62  ;;  %v4559_v57 = vld [vmem:[%s8845_s3 + $0x1f8] sm:$0xff]  ;;  %v4556_v62 = vld [vmem:[%s8845_s3 + $0x1e0] sm:$0xff] }
 0x2c8   :  { %2672 = vmatpush.msrb.mxu0 %v4476_v22  ;;  %2692 = vmatpush.msrb.mxu1 %v4477_v4 }
 0x2c9   :  { %2712 = vmatpush.msrb.mxu2 %v4482_v53  ;;  %2732 = vmatpush.msrb.mxu3 %v4483_v8  ;;  %v4554_v53 = vld [vmem:[%s8845_s3 + $0x1d0] sm:$0xff]  ;;  %v4555_v8 = vld [vmem:[%s8845_s3 + $0x1d8] sm:$0xff] }
 0x2ca   :  { %2673 = vmatpush.msrb.mxu0 %v4474_v43  ;;  %2693 = vmatpush.msrb.mxu1 %v4475_v25 }
 0x2cb   :  { %2713 = vmatpush.msrb.mxu2 %v4480_v39  ;;  %2733 = vmatpush.msrb.mxu3 %v4481_v40  ;;  %v7952_v39 = vrot.slane %v7658_v21, 2  ;;  %v4552_v40 = vld [vmem:[%s8845_s3 + $0x1c0] sm:$0xff]  ;;  %v4551_v21 = vld [vmem:[%s8845_s3 + $0x1b8] sm:$0xff] }
 0x2cc   :  { %2674 = vmatpush.msrb.mxu0 %v4472_v28  ;;  %2694 = vmatpush.msrb.mxu1 %v4473_v61 }
 0x2cd   :  { %2714 = vmatpush.msrb.mxu2 %v4478_v12  ;;  %2734 = vmatpush.msrb.mxu3 %v4479_v3  ;;  %v4553_v12 = vld [vmem:[%s8845_s3 + $0x1c8] sm:$0xff]  ;;  %v4550_v3 = vld [vmem:[%s8845_s3 + $0x1b0] sm:$0xff] }
 0x2ce   :  { %2675 = vmatpush.msrb.mxu0 %v4470_v26  ;;  %2695 = vmatpush.msrb.mxu1 %v4471_v27 }
 0x2cf   :  { %2715 = vmatpush.msrb.mxu2 %v4476_v22  ;;  %2735 = vmatpush.msrb.mxu3 %v4477_v4  ;;  %v4548_v22 = vld [vmem:[%s8845_s3 + $0x1a0] sm:$0xff]  ;;  %v4549_v4 = vld [vmem:[%s8845_s3 + $0x1a8] sm:$0xff] }
 0x2d0   :  { %2676 = vmatpush.msrb.mxu0 %v4468_v38  ;;  %2696 = vmatpush.msrb.mxu1 %v4469_v23 }
 0x2d1   :  { %2716 = vmatpush.msrb.mxu2 %v4474_v43  ;;  %2736 = vmatpush.msrb.mxu3 %v4475_v25  ;;  %v4546_v43 = vld [vmem:[%s8845_s3 + $0x190] sm:$0xff]  ;;  %v4547_v25 = vld [vmem:[%s8845_s3 + $0x198] sm:$0xff] }
 0x2d2   :  { %2677 = vmatpush.msrb.mxu0 %v4466_v24  ;;  %2697 = vmatpush.msrb.mxu1 %v4467_v51 }
 0x2d3   :  { %2717 = vmatpush.msrb.mxu2 %v4472_v28  ;;  %2737 = vmatpush.msrb.mxu3 %v4473_v61  ;;  %v4544_v28 = vld [vmem:[%s8845_s3 + $0x180] sm:$0xff]  ;;  %v4545_v61 = vld [vmem:[%s8845_s3 + $0x188] sm:$0xff] }
 0x2d4   :  { %2678 = vmatpush.msrb.mxu0 %v4464_v7  ;;  %2698 = vmatpush.msrb.mxu1 %v4465_v50 }
 0x2d5   :  { %2718 = vmatpush.msrb.mxu2 %v4470_v26  ;;  %2738 = vmatpush.msrb.mxu3 %v4471_v27  ;;  %v4542_v26 = vld [vmem:[%s8845_s3 + $0x170] sm:$0xff]  ;;  %v4543_v27 = vld [vmem:[%s8845_s3 + $0x178] sm:$0xff] }
 0x2d6   :  { %2679 = vmatmul.f32.vlgmr.msrb.gmra.mxu0 %v7823_v32  ;;  %2699 = vmatmul.f32.vlgmr.msrb.gmra.mxu1 %v7823_v32 }
 0x2d7   :  { %2785 = vmatpush.msra.mxu0 %v4526_v15  ;;  %2805 = vmatpush.msra.mxu1 %v4527_v52 }
 0x2d8   :  { %2719 = vmatpush.msrb.mxu2 %v4468_v38  ;;  %2739 = vmatpush.msrb.mxu3 %v4469_v23  ;;  %v4540_v38 = vld [vmem:[%s8845_s3 + $0x160] sm:$0xff]  ;;  %v4541_v23 = vld [vmem:[%s8845_s3 + $0x168] sm:$0xff] }
 0x2d9   :  { %2786 = vmatpush.msra.mxu0 %v4524_v19  ;;  %2806 = vmatpush.msra.mxu1 %v4525_v34 }
 0x2da   :  { %2720 = vmatpush.msrb.mxu2 %v4466_v24  ;;  %2740 = vmatpush.msrb.mxu3 %v4467_v51  ;;  %v4538_v24 = vld [vmem:[%s8845_s3 + $0x150] sm:$0xff]  ;;  %v4539_v51 = vld [vmem:[%s8845_s3 + $0x158] sm:$0xff] }
 0x2db   :  { %2787 = vmatpush.msra.mxu0 %v4522_v48  ;;  %2807 = vmatpush.msra.mxu1 %v4523_v6 }
 0x2dc   :  { %2721 = vmatpush.msrb.mxu2 %v4464_v7  ;;  %2741 = vmatpush.msrb.mxu3 %v4465_v50  ;;  %v4536_v7 = vld [vmem:[%s8845_s3 + $0x140] sm:$0xff]  ;;  %v4537_v50 = vld [vmem:[%s8845_s3 + $0x148] sm:$0xff] }
 0x2dd   :  { %2722 = vmatmul.f32.vlgmr.msrb.gmra.mxu2 %v7846_v2  ;;  %2742 = vmatmul.f32.vlgmr.msrb.gmra.mxu3 %v7846_v2 }
 0x2de   :  { %2788 = vmatpush.msra.mxu0 %v4520_v9  ;;  %2808 = vmatpush.msra.mxu1 %v4521_v44 }
 0x2df   :  { %2827 = vmatpush.msra.mxu2 %v4526_v15  ;;  %2847 = vmatpush.msra.mxu3 %v4527_v52  ;;  %v4534_v15 = vld [vmem:[%s8845_s3 + $0x130] sm:$0xff]  ;;  %v4535_v52 = vld [vmem:[%s8845_s3 + $0x138] sm:$0xff] }
 0x2e0   :  { %2789 = vmatpush.msra.mxu0 %v4518_v18  ;;  %2809 = vmatpush.msra.mxu1 %v4519_v45 }
 0x2e1   :  { %2828 = vmatpush.msra.mxu2 %v4524_v19  ;;  %2848 = vmatpush.msra.mxu3 %v4525_v34  ;;  %v4532_v19 = vld [vmem:[%s8845_s3 + $0x120] sm:$0xff]  ;;  %v4533_v34 = vld [vmem:[%s8845_s3 + $0x128] sm:$0xff] }
 0x2e2   :  { %2790 = vmatpush.msra.mxu0 %v4516_v20  ;;  %2810 = vmatpush.msra.mxu1 %v4517_v46 }
 0x2e3   :  { %2829 = vmatpush.msra.mxu2 %v4522_v48  ;;  %2849 = vmatpush.msra.mxu3 %v4523_v6  ;;  %v4530_v48 = vld [vmem:[%s8845_s3 + $0x110] sm:$0xff]  ;;  %v4531_v6 = vld [vmem:[%s8845_s3 + $0x118] sm:$0xff] }
 0x2e4   :  { %2791 = vmatpush.msra.mxu0 %v4514_v58  ;;  %2811 = vmatpush.msra.mxu1 %v4515_v60 }
 0x2e5   :  { %2830 = vmatpush.msra.mxu2 %v4520_v9  ;;  %2850 = vmatpush.msra.mxu3 %v4521_v44  ;;  %v4528_v9 = vld [vmem:[%s8845_s3 + $0x100] sm:$0xff]  ;;  %v4529_v44 = vld [vmem:[%s8845_s3 + $0x108] sm:$0xff] }
 0x2e6   :  { %2792 = vmatpush.msra.mxu0 %v4512_v1  ;;  %2812 = vmatpush.msra.mxu1 %v4513_v35 }
 0x2e7   :  { %2831 = vmatpush.msra.mxu2 %v4518_v18  ;;  %2851 = vmatpush.msra.mxu3 %v4519_v45  ;;  %v2914_v18 = vld [vmem:[%s8845_s3 + $0xf0] sm:$0xff]  ;;  %v2915_v45 = vld [vmem:[%s8845_s3 + $0xf8] sm:$0xff] }
 0x2e8   :  { %2793 = vmatpush.msra.mxu0 %v4510_v63  ;;  %2813 = vmatpush.msra.mxu1 %v4511_v36 }
 0x2e9   :  { %2832 = vmatpush.msra.mxu2 %v4516_v20  ;;  %2852 = vmatpush.msra.mxu3 %v4517_v46  ;;  %v2912_v20 = vld [vmem:[%s8845_s3 + $0xe0] sm:$0xff]  ;;  %v2913_v46 = vld [vmem:[%s8845_s3 + $0xe8] sm:$0xff] }
 0x2ea   :  { %2794 = vmatpush.msra.mxu0 %v4508_v11  ;;  %2814 = vmatpush.msra.mxu1 %v4509_v13 }
 0x2eb   :  { %2833 = vmatpush.msra.mxu2 %v4514_v58  ;;  %2853 = vmatpush.msra.mxu3 %v4515_v60  ;;  %v2910_v58 = vld [vmem:[%s8845_s3 + $0xd0] sm:$0xff]  ;;  %v2908_v60 = vld [vmem:[%s8845_s3 + $0xc0] sm:$0xff] }
 0x2ec   :  { %2795 = vmatpush.msra.mxu0 %v4506_v5  ;;  %2815 = vmatpush.msra.mxu1 %v4507_v14 }
 0x2ed   :  { %2834 = vmatpush.msra.mxu2 %v4512_v1  ;;  %2854 = vmatpush.msra.mxu3 %v4513_v35  ;;  %v2909_v1 = vld [vmem:[%s8845_s3 + $0xc8] sm:$0xff]  ;;  %v2906_v35 = vld [vmem:[%s8845_s3 + $0xb0] sm:$0xff] }
 0x2ee   :  { %2796 = vmatpush.msra.mxu0 %v4504_v59  ;;  %2816 = vmatpush.msra.mxu1 %v4505_v10 }
 0x2ef   :  { %2835 = vmatpush.msra.mxu2 %v4510_v63  ;;  %2855 = vmatpush.msra.mxu3 %v4511_v36  ;;  %v2907_v63 = vld [vmem:[%s8845_s3 + $0xb8] sm:$0xff]  ;;  %v2904_v36 = vld [vmem:[%s8845_s3 + $0xa0] sm:$0xff] }
 0x2f0   :  { %2797 = vmatpush.msra.mxu0 %v4502_v17  ;;  %2817 = vmatpush.msra.mxu1 %v4503_v29 }
 0x2f1   :  { %2836 = vmatpush.msra.mxu2 %v4508_v11  ;;  %2856 = vmatpush.msra.mxu3 %v4509_v13  ;;  %v2902_v11 = vld [vmem:[%s8845_s3 + $0x90] sm:$0xff]  ;;  %v2903_v13 = vld [vmem:[%s8845_s3 + $0x98] sm:$0xff] }
 0x2f2   :  { %2798 = vmatpush.msra.mxu0 %v4500_v41  ;;  %2818 = vmatpush.msra.mxu1 %v4501_v42 }
 0x2f3   :  { %2837 = vmatpush.msra.mxu2 %v4506_v5  ;;  %2857 = vmatpush.msra.mxu3 %v4507_v14  ;;  %v2900_v5 = vld [vmem:[%s8845_s3 + $0x80] sm:$0xff]  ;;  %v2901_v14 = vld [vmem:[%s8845_s3 + $0x88] sm:$0xff] }
 0x2f4   :  { %2799 = vmatpush.msra.mxu0 %v4498_v31  ;;  %2819 = vmatpush.msra.mxu1 %v4499_v55 }
 0x2f5   :  { %2838 = vmatpush.msra.mxu2 %v4504_v59  ;;  %2858 = vmatpush.msra.mxu3 %v4505_v10  ;;  %v2898_v59 = vld [vmem:[%s8845_s3 + $0x70] sm:$0xff]  ;;  %v2899_v10 = vld [vmem:[%s8845_s3 + $0x78] sm:$0xff] }
 0x2f6   :  { %2800 = vmatpush.msra.mxu0 %v4496_v56  ;;  %2820 = vmatpush.msra.mxu1 %v4497_v30 }
 0x2f7   :  { %2839 = vmatpush.msra.mxu2 %v4502_v17  ;;  %2859 = vmatpush.msra.mxu3 %v4503_v29  ;;  %v2896_v17 = vld [vmem:[%s8845_s3 + $0x60] sm:$0xff]  ;;  %v2897_v29 = vld [vmem:[%s8845_s3 + $0x68] sm:$0xff] }
 0x2f8   :  { %2801 = vmatmul.f32.vlgmr.msra.gmra.mxu0 %v7929_v0  ;;  %2821 = vmatmul.f32.vlgmr.msra.gmra.mxu1 %v7929_v0 }
 0x2f9   :  { %2948 = vmatpush.msrb.mxu0 %v4558_v47  ;;  %2968 = vmatpush.msrb.mxu1 %v4559_v57 }
 0x2fa   :  { %2840 = vmatpush.msra.mxu2 %v4500_v41  ;;  %2860 = vmatpush.msra.mxu3 %v4501_v42  ;;  %v2894_v41 = vld [vmem:[%s8845_s3 + $0x50] sm:$0xff]  ;;  %v2895_v42 = vld [vmem:[%s8845_s3 + $0x58] sm:$0xff] }
 0x2fb   :  { %2949 = vmatpush.msrb.mxu0 %v4556_v62  ;;  %2969 = vmatpush.msrb.mxu1 %v4557_v16 }
 0x2fc   :  { %2841 = vmatpush.msra.mxu2 %v4498_v31  ;;  %2861 = vmatpush.msra.mxu3 %v4499_v55  ;;  %v2892_v31 = vld [vmem:[%s8845_s3 + $0x40] sm:$0xff]  ;;  %v2893_v55 = vld [vmem:[%s8845_s3 + $0x48] sm:$0xff] }
 0x2fd   :  { %2950 = vmatpush.msrb.mxu0 %v4554_v53  ;;  %2970 = vmatpush.msrb.mxu1 %v4555_v8 }
 0x2fe   :  { %2842 = vmatpush.msra.mxu2 %v4496_v56  ;;  %2862 = vmatpush.msra.mxu3 %v4497_v30  ;;  %v2890_v56 = vld [vmem:[%s8845_s3 + $0x30] sm:$0xff]  ;;  %v2891_v30 = vld [vmem:[%s8845_s3 + $0x38] sm:$0xff] }
 0x2ff   :  { %2843 = vmatmul.f32.vlgmr.msra.gmra.mxu2 %v7952_v39  ;;  %2863 = vmatmul.f32.vlgmr.msra.gmra.mxu3 %v7952_v39 }
 0x300   :  { %2951 = vmatpush.msrb.mxu0 %v4552_v40  ;;  %2971 = vmatpush.msrb.mxu1 %v4553_v12 }
 0x301   :  { %2988 = vmatpush.msrb.mxu2 %v4558_v47  ;;  %3008 = vmatpush.msrb.mxu3 %v4559_v57  ;;  %v2888_v47 = vld [vmem:[%s8845_s3 + $0x20] sm:$0xff]  ;;  %v2889_v57 = vld [vmem:[%s8845_s3 + $0x28] sm:$0xff] }
 0x302   :  { %2952 = vmatpush.msrb.mxu0 %v4550_v3  ;;  %2972 = vmatpush.msrb.mxu1 %v4551_v21 }
 0x303   :  { %2989 = vmatpush.msrb.mxu2 %v4556_v62  ;;  %3009 = vmatpush.msrb.mxu3 %v4557_v16  ;;  %v2886_v62 = vld [vmem:[%s8845_s3 + $0x10] sm:$0xff]  ;;  %v2887_v16 = vld [vmem:[%s8845_s3 + $0x18] sm:$0xff] }
 0x304   :  { %2953 = vmatpush.msrb.mxu0 %v4548_v22  ;;  %2973 = vmatpush.msrb.mxu1 %v4549_v4 }
 0x305   :  { %2990 = vmatpush.msrb.mxu2 %v4554_v53  ;;  %3010 = vmatpush.msrb.mxu3 %v4555_v8  ;;  %v2884_v53 = vld [vmem:[%s8845_s3] sm:$0xff]  ;;  %v2885_v8 = vld [vmem:[%s8845_s3 + $0x8] sm:$0xff] }
 0x306   :  { %2954 = vmatpush.msrb.mxu0 %v4546_v43  ;;  %2974 = vmatpush.msrb.mxu1 %v4547_v25 }
 0x307   :  { %2991 = vmatpush.msrb.mxu2 %v4552_v40  ;;  %3011 = vmatpush.msrb.mxu3 %v4553_v12  ;;  %v4590_v40 = vld [vmem:[%s8845_s3 + $0x2f0] sm:$0xff]  ;;  %v4591_v12 = vld [vmem:[%s8845_s3 + $0x2f8] sm:$0xff] }
 0x308   :  { %2955 = vmatpush.msrb.mxu0 %v4544_v28  ;;  %2975 = vmatpush.msrb.mxu1 %v4545_v61 }
 0x309   :  { %2992 = vmatpush.msrb.mxu2 %v4550_v3  ;;  %3012 = vmatpush.msrb.mxu3 %v4551_v21  ;;  %v4588_v3 = vld [vmem:[%s8845_s3 + $0x2e0] sm:$0xff]  ;;  %v4589_v21 = vld [vmem:[%s8845_s3 + $0x2e8] sm:$0xff] }
 0x30a   :  { %2956 = vmatpush.msrb.mxu0 %v4542_v26  ;;  %2976 = vmatpush.msrb.mxu1 %v4543_v27 }
 0x30b   :  { %2993 = vmatpush.msrb.mxu2 %v4548_v22  ;;  %3013 = vmatpush.msrb.mxu3 %v4549_v4  ;;  %v4586_v22 = vld [vmem:[%s8845_s3 + $0x2d0] sm:$0xff]  ;;  %v4587_v4 = vld [vmem:[%s8845_s3 + $0x2d8] sm:$0xff] }
 0x30c   :  { %2957 = vmatpush.msrb.mxu0 %v4540_v38  ;;  %2977 = vmatpush.msrb.mxu1 %v4541_v23 }
 0x30d   :  { %2994 = vmatpush.msrb.mxu2 %v4546_v43  ;;  %3014 = vmatpush.msrb.mxu3 %v4547_v25  ;;  %v4584_v43 = vld [vmem:[%s8845_s3 + $0x2c0] sm:$0xff]  ;;  %v4585_v25 = vld [vmem:[%s8845_s3 + $0x2c8] sm:$0xff] }
 0x30e   :  { %2958 = vmatpush.msrb.mxu0 %v4538_v24  ;;  %2978 = vmatpush.msrb.mxu1 %v4539_v51 }
 0x30f   :  { %2995 = vmatpush.msrb.mxu2 %v4544_v28  ;;  %3015 = vmatpush.msrb.mxu3 %v4545_v61  ;;  %v4582_v28 = vld [vmem:[%s8845_s3 + $0x2b0] sm:$0xff]  ;;  %v4583_v61 = vld [vmem:[%s8845_s3 + $0x2b8] sm:$0xff] }
 0x310   :  { %2959 = vmatpush.msrb.mxu0 %v4536_v7  ;;  %2979 = vmatpush.msrb.mxu1 %v4537_v50 }
 0x311   :  { %2996 = vmatpush.msrb.mxu2 %v4542_v26  ;;  %3016 = vmatpush.msrb.mxu3 %v4543_v27  ;;  %v4580_v26 = vld [vmem:[%s8845_s3 + $0x2a0] sm:$0xff]  ;;  %v4581_v27 = vld [vmem:[%s8845_s3 + $0x2a8] sm:$0xff] }
 0x312   :  { %2960 = vmatpush.msrb.mxu0 %v4534_v15  ;;  %2980 = vmatpush.msrb.mxu1 %v4535_v52 }
 0x313   :  { %2997 = vmatpush.msrb.mxu2 %v4540_v38  ;;  %3017 = vmatpush.msrb.mxu3 %v4541_v23  ;;  %v4578_v38 = vld [vmem:[%s8845_s3 + $0x290] sm:$0xff]  ;;  %v4579_v23 = vld [vmem:[%s8845_s3 + $0x298] sm:$0xff] }
 0x314   :  { %2961 = vmatpush.msrb.mxu0 %v4532_v19  ;;  %2981 = vmatpush.msrb.mxu1 %v4533_v34 }
 0x315   :  { %2998 = vmatpush.msrb.mxu2 %v4538_v24  ;;  %3018 = vmatpush.msrb.mxu3 %v4539_v51  ;;  %v4576_v24 = vld [vmem:[%s8845_s3 + $0x280] sm:$0xff]  ;;  %v4577_v51 = vld [vmem:[%s8845_s3 + $0x288] sm:$0xff] }
 0x316   :  { %2962 = vmatpush.msrb.mxu0 %v4530_v48  ;;  %2982 = vmatpush.msrb.mxu1 %v4531_v6 }
 0x317   :  { %2999 = vmatpush.msrb.mxu2 %v4536_v7  ;;  %3019 = vmatpush.msrb.mxu3 %v4537_v50  ;;  %v4574_v7 = vld [vmem:[%s8845_s3 + $0x270] sm:$0xff]  ;;  %v4575_v50 = vld [vmem:[%s8845_s3 + $0x278] sm:$0xff] }
 0x318   :  { %2963 = vmatpush.msrb.mxu0 %v4528_v9  ;;  %2983 = vmatpush.msrb.mxu1 %v4529_v44 }
 0x319   :  { %3000 = vmatpush.msrb.mxu2 %v4534_v15  ;;  %3020 = vmatpush.msrb.mxu3 %v4535_v52  ;;  %v4572_v15 = vld [vmem:[%s8845_s3 + $0x260] sm:$0xff]  ;;  %v4573_v52 = vld [vmem:[%s8845_s3 + $0x268] sm:$0xff] }
 0x31a   :  { %2964 = vmatmul.f32.vlgmr.msrb.gmra.mxu0 %v7717_v54  ;;  %2984 = vmatmul.f32.vlgmr.msrb.gmra.mxu1 %v7717_v54  ;;  %v2911_v54 = vld [vmem:[%s8845_s3 + $0xd8] sm:$0xff] }
 0x31b   :  { %3028 = vmatpush.msra.mxu0 %v2914_v18  ;;  %3048 = vmatpush.msra.mxu1 %v2915_v45 }
 0x31c   :  { %3001 = vmatpush.msrb.mxu2 %v4532_v19  ;;  %3021 = vmatpush.msrb.mxu3 %v4533_v34  ;;  %v4570_v19 = vld [vmem:[%s8845_s3 + $0x250] sm:$0xff]  ;;  %v4571_v34 = vld [vmem:[%s8845_s3 + $0x258] sm:$0xff] }
 0x31d   :  { %3029 = vmatpush.msra.mxu0 %v2912_v20  ;;  %3049 = vmatpush.msra.mxu1 %v2913_v46 }
 0x31e   :  { %3002 = vmatpush.msrb.mxu2 %v4530_v48  ;;  %3022 = vmatpush.msrb.mxu3 %v4531_v6  ;;  %v4568_v48 = vld [vmem:[%s8845_s3 + $0x240] sm:$0xff]  ;;  %v4569_v6 = vld [vmem:[%s8845_s3 + $0x248] sm:$0xff] }
 0x31f   :  { %3030 = vmatpush.msra.mxu0 %v2910_v58  ;;  %3050 = vmatpush.msra.mxu1 %v2911_v54 }
 0x320   :  { %3003 = vmatpush.msrb.mxu2 %v4528_v9  ;;  %3023 = vmatpush.msrb.mxu3 %v4529_v44  ;;  %v4566_v9 = vld [vmem:[%s8845_s3 + $0x230] sm:$0xff]  ;;  %v4567_v44 = vld [vmem:[%s8845_s3 + $0x238] sm:$0xff] }
 0x321   :  { %3004 = vmatmul.f32.vlgmr.msrb.gmra.mxu2 %v7740_v49  ;;  %3024 = vmatmul.f32.vlgmr.msrb.gmra.mxu3 %v7740_v49  ;;  %v2905_v49 = vld [vmem:[%s8845_s3 + $0xa8] sm:$0xff] }
 0x322   :  { %3031 = vmatpush.msra.mxu0 %v2908_v60  ;;  %3051 = vmatpush.msra.mxu1 %v2909_v1 }
 0x323   :  { %3068 = vmatpush.msra.mxu2 %v2914_v18  ;;  %3088 = vmatpush.msra.mxu3 %v2915_v45  ;;  %v4564_v18 = vld [vmem:[%s8845_s3 + $0x220] sm:$0xff]  ;;  %v4565_v45 = vld [vmem:[%s8845_s3 + $0x228] sm:$0xff] }
 0x324   :  { %3032 = vmatpush.msra.mxu0 %v2906_v35  ;;  %3052 = vmatpush.msra.mxu1 %v2907_v63 }
 0x325   :  { %3069 = vmatpush.msra.mxu2 %v2912_v20  ;;  %3089 = vmatpush.msra.mxu3 %v2913_v46  ;;  %v4562_v20 = vld [vmem:[%s8845_s3 + $0x210] sm:$0xff]  ;;  %v4563_v46 = vld [vmem:[%s8845_s3 + $0x218] sm:$0xff] }
 0x326   :  { %3033 = vmatpush.msra.mxu0 %v2904_v36  ;;  %3053 = vmatpush.msra.mxu1 %v2905_v49 }
 0x327   :  { %3070 = vmatpush.msra.mxu2 %v2910_v58  ;;  %3090 = vmatpush.msra.mxu3 %v2911_v54  ;;  %v4560_v58 = vld [vmem:[%s8845_s3 + $0x200] sm:$0xff]  ;;  %v4561_v54 = vld [vmem:[%s8845_s3 + $0x208] sm:$0xff] }
 0x328   :  { %3034 = vmatpush.msra.mxu0 %v2902_v11  ;;  %3054 = vmatpush.msra.mxu1 %v2903_v13 }
 0x329   :  { %3071 = vmatpush.msra.mxu2 %v2908_v60  ;;  %3091 = vmatpush.msra.mxu3 %v2909_v1  ;;  %v4622_v60 = vld [vmem:[%s8845_s3 + $0x3f0] sm:$0xff]  ;;  %v4623_v1 = vld [vmem:[%s8845_s3 + $0x3f8] sm:$0xff] }
 0x32a   :  { %3035 = vmatpush.msra.mxu0 %v2900_v5  ;;  %3055 = vmatpush.msra.mxu1 %v2901_v14 }
 0x32b   :  { %3072 = vmatpush.msra.mxu2 %v2906_v35  ;;  %3092 = vmatpush.msra.mxu3 %v2907_v63  ;;  %v4620_v35 = vld [vmem:[%s8845_s3 + $0x3e0] sm:$0xff]  ;;  %v4621_v63 = vld [vmem:[%s8845_s3 + $0x3e8] sm:$0xff] }
 0x32c   :  { %3036 = vmatpush.msra.mxu0 %v2898_v59  ;;  %3056 = vmatpush.msra.mxu1 %v2899_v10 }
 0x32d   :  { %3073 = vmatpush.msra.mxu2 %v2904_v36  ;;  %3093 = vmatpush.msra.mxu3 %v2905_v49  ;;  %v4618_v36 = vld [vmem:[%s8845_s3 + $0x3d0] sm:$0xff]  ;;  %v4616_v49 = vld [vmem:[%s8845_s3 + $0x3c0] sm:$0xff] }
 0x32e   :  { %3037 = vmatpush.msra.mxu0 %v2896_v17  ;;  %3057 = vmatpush.msra.mxu1 %v2897_v29 }
 0x32f   :  { %3074 = vmatpush.msra.mxu2 %v2902_v11  ;;  %3094 = vmatpush.msra.mxu3 %v2903_v13  ;;  %v4617_v11 = vld [vmem:[%s8845_s3 + $0x3c8] sm:$0xff]  ;;  %v4614_v13 = vld [vmem:[%s8845_s3 + $0x3b0] sm:$0xff] }
 0x330   :  { %3038 = vmatpush.msra.mxu0 %v2894_v41  ;;  %3058 = vmatpush.msra.mxu1 %v2895_v42 }
 0x331   :  { %3075 = vmatpush.msra.mxu2 %v2900_v5  ;;  %3095 = vmatpush.msra.mxu3 %v2901_v14  ;;  %v4615_v5 = vld [vmem:[%s8845_s3 + $0x3b8] sm:$0xff]  ;;  %v4612_v14 = vld [vmem:[%s8845_s3 + $0x3a0] sm:$0xff] }
 0x332   :  { %3039 = vmatpush.msra.mxu0 %v2892_v31  ;;  %3059 = vmatpush.msra.mxu1 %v2893_v55 }
 0x333   :  { %3076 = vmatpush.msra.mxu2 %v2898_v59  ;;  %3096 = vmatpush.msra.mxu3 %v2899_v10  ;;  %v4610_v59 = vld [vmem:[%s8845_s3 + $0x390] sm:$0xff]  ;;  %v4611_v10 = vld [vmem:[%s8845_s3 + $0x398] sm:$0xff] }
 0x334   :  { %3040 = vmatpush.msra.mxu0 %v2890_v56  ;;  %3060 = vmatpush.msra.mxu1 %v2891_v30 }
 0x335   :  { %3077 = vmatpush.msra.mxu2 %v2896_v17  ;;  %3097 = vmatpush.msra.mxu3 %v2897_v29  ;;  %v4608_v17 = vld [vmem:[%s8845_s3 + $0x380] sm:$0xff]  ;;  %v4609_v29 = vld [vmem:[%s8845_s3 + $0x388] sm:$0xff] }
 0x336   :  { %3041 = vmatpush.msra.mxu0 %v2888_v47  ;;  %3061 = vmatpush.msra.mxu1 %v2889_v57 }
 0x337   :  { %3078 = vmatpush.msra.mxu2 %v2894_v41  ;;  %3098 = vmatpush.msra.mxu3 %v2895_v42  ;;  %v4606_v41 = vld [vmem:[%s8845_s3 + $0x370] sm:$0xff]  ;;  %v4607_v42 = vld [vmem:[%s8845_s3 + $0x378] sm:$0xff] }
 0x338   :  { %3042 = vmatpush.msra.mxu0 %v2886_v62  ;;  %3062 = vmatpush.msra.mxu1 %v2887_v16 }
 0x339   :  { %3079 = vmatpush.msra.mxu2 %v2892_v31  ;;  %3099 = vmatpush.msra.mxu3 %v2893_v55  ;;  %v4604_v31 = vld [vmem:[%s8845_s3 + $0x360] sm:$0xff]  ;;  %v4605_v55 = vld [vmem:[%s8845_s3 + $0x368] sm:$0xff] }
 0x33a   :  { %3043 = vmatpush.msra.mxu0 %v2884_v53  ;;  %3063 = vmatpush.msra.mxu1 %v2885_v8 }
 0x33b   :  { %3080 = vmatpush.msra.mxu2 %v2890_v56  ;;  %3100 = vmatpush.msra.mxu3 %v2891_v30  ;;  %v4602_v56 = vld [vmem:[%s8845_s3 + $0x350] sm:$0xff]  ;;  %v4603_v30 = vld [vmem:[%s8845_s3 + $0x358] sm:$0xff] }
 0x33c   :  { %3044 = vmatmul.f32.vlgmr.msra.gmra.mxu0 %v7597_v33  ;;  %3064 = vmatmul.f32.vlgmr.msra.gmra.mxu1 %v7597_v33 }
 0x33d   :  { %3140 = vmatpush.msrb.mxu0 %v4590_v40  ;;  %3160 = vmatpush.msrb.mxu1 %v4591_v12 }
 0x33e   :  { %3081 = vmatpush.msra.mxu2 %v2888_v47  ;;  %3101 = vmatpush.msra.mxu3 %v2889_v57  ;;  %v4600_v47 = vld [vmem:[%s8845_s3 + $0x340] sm:$0xff]  ;;  %v4601_v57 = vld [vmem:[%s8845_s3 + $0x348] sm:$0xff] }
 0x33f   :  { %3141 = vmatpush.msrb.mxu0 %v4588_v3  ;;  %3161 = vmatpush.msrb.mxu1 %v4589_v21 }
 0x340   :  { %3082 = vmatpush.msra.mxu2 %v2886_v62  ;;  %3102 = vmatpush.msra.mxu3 %v2887_v16  ;;  %v4598_v62 = vld [vmem:[%s8845_s3 + $0x330] sm:$0xff]  ;;  %v4599_v16 = vld [vmem:[%s8845_s3 + $0x338] sm:$0xff] }
 0x341   :  { %3142 = vmatpush.msrb.mxu0 %v4586_v22  ;;  %3162 = vmatpush.msrb.mxu1 %v4587_v4 }
 0x342   :  { %3083 = vmatpush.msra.mxu2 %v2884_v53  ;;  %3103 = vmatpush.msra.mxu3 %v2885_v8  ;;  %v4596_v53 = vld [vmem:[%s8845_s3 + $0x320] sm:$0xff]  ;;  %v4597_v8 = vld [vmem:[%s8845_s3 + $0x328] sm:$0xff] }
 0x343   :  { %3084 = vmatmul.f32.vlgmr.msra.gmra.mxu2 %v7628_v37  ;;  %3104 = vmatmul.f32.vlgmr.msra.gmra.mxu3 %v7628_v37 }
 0x344   :  { %3143 = vmatpush.msrb.mxu0 %v4584_v43  ;;  %3163 = vmatpush.msrb.mxu1 %v4585_v25 }
 0x345   :  { %3180 = vmatpush.msrb.mxu2 %v4590_v40  ;;  %3200 = vmatpush.msrb.mxu3 %v4591_v12  ;;  %v4594_v40 = vld [vmem:[%s8845_s3 + $0x310] sm:$0xff]  ;;  %v4595_v12 = vld [vmem:[%s8845_s3 + $0x318] sm:$0xff] }
 0x346   :  { %3144 = vmatpush.msrb.mxu0 %v4582_v28  ;;  %3164 = vmatpush.msrb.mxu1 %v4583_v61 }
 0x347   :  { %3181 = vmatpush.msrb.mxu2 %v4588_v3  ;;  %3201 = vmatpush.msrb.mxu3 %v4589_v21  ;;  %v4592_v3 = vld [vmem:[%s8845_s3 + $0x300] sm:$0xff]  ;;  %v4593_v21 = vld [vmem:[%s8845_s3 + $0x308] sm:$0xff] }
 0x348   :  { %3145 = vmatpush.msrb.mxu0 %v4580_v26  ;;  %3165 = vmatpush.msrb.mxu1 %v4581_v27 }
 0x349   :  { %3182 = vmatpush.msrb.mxu2 %v4586_v22  ;;  %3202 = vmatpush.msrb.mxu3 %v4587_v4  ;;  %v4654_v22 = vld [vmem:[%s8845_s3 + $0x4f0] sm:$0xff]  ;;  %v4655_v4 = vld [vmem:[%s8845_s3 + $0x4f8] sm:$0xff] }
 0x34a   :  { %3146 = vmatpush.msrb.mxu0 %v4578_v38  ;;  %3166 = vmatpush.msrb.mxu1 %v4579_v23 }
 0x34b   :  { %3183 = vmatpush.msrb.mxu2 %v4584_v43  ;;  %3203 = vmatpush.msrb.mxu3 %v4585_v25  ;;  %v4652_v43 = vld [vmem:[%s8845_s3 + $0x4e0] sm:$0xff]  ;;  %v4653_v25 = vld [vmem:[%s8845_s3 + $0x4e8] sm:$0xff] }
 0x34c   :  { %3147 = vmatpush.msrb.mxu0 %v4576_v24  ;;  %3167 = vmatpush.msrb.mxu1 %v4577_v51 }
 0x34d   :  { %3184 = vmatpush.msrb.mxu2 %v4582_v28  ;;  %3204 = vmatpush.msrb.mxu3 %v4583_v61  ;;  %v4650_v28 = vld [vmem:[%s8845_s3 + $0x4d0] sm:$0xff]  ;;  %v4648_v61 = vld [vmem:[%s8845_s3 + $0x4c0] sm:$0xff] }
 0x34e   :  { %3148 = vmatpush.msrb.mxu0 %v4574_v7  ;;  %3168 = vmatpush.msrb.mxu1 %v4575_v50 }
 0x34f   :  { %3185 = vmatpush.msrb.mxu2 %v4580_v26  ;;  %3205 = vmatpush.msrb.mxu3 %v4581_v27  ;;  %v4649_v26 = vld [vmem:[%s8845_s3 + $0x4c8] sm:$0xff]  ;;  %v4646_v27 = vld [vmem:[%s8845_s3 + $0x4b0] sm:$0xff] }
 0x350   :  { %3149 = vmatpush.msrb.mxu0 %v4572_v15  ;;  %3169 = vmatpush.msrb.mxu1 %v4573_v52 }
 0x351   :  { %3186 = vmatpush.msrb.mxu2 %v4578_v38  ;;  %3206 = vmatpush.msrb.mxu3 %v4579_v23  ;;  %v4647_v38 = vld [vmem:[%s8845_s3 + $0x4b8] sm:$0xff]  ;;  %v4644_v23 = vld [vmem:[%s8845_s3 + $0x4a0] sm:$0xff] }
 0x352   :  { %3150 = vmatpush.msrb.mxu0 %v4570_v19  ;;  %3170 = vmatpush.msrb.mxu1 %v4571_v34 }
 0x353   :  { %3187 = vmatpush.msrb.mxu2 %v4576_v24  ;;  %3207 = vmatpush.msrb.mxu3 %v4577_v51  ;;  %v4642_v24 = vld [vmem:[%s8845_s3 + $0x490] sm:$0xff]  ;;  %v4643_v51 = vld [vmem:[%s8845_s3 + $0x498] sm:$0xff] }
 0x354   :  { %3151 = vmatpush.msrb.mxu0 %v4568_v48  ;;  %3171 = vmatpush.msrb.mxu1 %v4569_v6 }
 0x355   :  { %3188 = vmatpush.msrb.mxu2 %v4574_v7  ;;  %3208 = vmatpush.msrb.mxu3 %v4575_v50  ;;  %v4640_v7 = vld [vmem:[%s8845_s3 + $0x480] sm:$0xff]  ;;  %v4641_v50 = vld [vmem:[%s8845_s3 + $0x488] sm:$0xff] }
 0x356   :  { %3152 = vmatpush.msrb.mxu0 %v4566_v9  ;;  %3172 = vmatpush.msrb.mxu1 %v4567_v44 }
 0x357   :  { %3189 = vmatpush.msrb.mxu2 %v4572_v15  ;;  %3209 = vmatpush.msrb.mxu3 %v4573_v52  ;;  %v4638_v15 = vld [vmem:[%s8845_s3 + $0x470] sm:$0xff]  ;;  %v4639_v52 = vld [vmem:[%s8845_s3 + $0x478] sm:$0xff] }
 0x358   :  { %3153 = vmatpush.msrb.mxu0 %v4564_v18  ;;  %3173 = vmatpush.msrb.mxu1 %v4565_v45 }
 0x359   :  { %3190 = vmatpush.msrb.mxu2 %v4570_v19  ;;  %3210 = vmatpush.msrb.mxu3 %v4571_v34  ;;  %v4636_v19 = vld [vmem:[%s8845_s3 + $0x460] sm:$0xff]  ;;  %v4637_v34 = vld [vmem:[%s8845_s3 + $0x468] sm:$0xff] }
 0x35a   :  { %3154 = vmatpush.msrb.mxu0 %v4562_v20  ;;  %3174 = vmatpush.msrb.mxu1 %v4563_v46 }
 0x35b   :  { %3191 = vmatpush.msrb.mxu2 %v4568_v48  ;;  %3211 = vmatpush.msrb.mxu3 %v4569_v6  ;;  %v4634_v48 = vld [vmem:[%s8845_s3 + $0x450] sm:$0xff]  ;;  %v4635_v6 = vld [vmem:[%s8845_s3 + $0x458] sm:$0xff] }
 0x35c   :  { %3155 = vmatpush.msrb.mxu0 %v4560_v58  ;;  %3175 = vmatpush.msrb.mxu1 %v4561_v54 }
 0x35d   :  { %3192 = vmatpush.msrb.mxu2 %v4566_v9  ;;  %3212 = vmatpush.msrb.mxu3 %v4567_v44  ;;  %v4632_v9 = vld [vmem:[%s8845_s3 + $0x440] sm:$0xff]  ;;  %v4633_v44 = vld [vmem:[%s8845_s3 + $0x448] sm:$0xff] }
 0x35e   :  { %3156 = vmatmul.f32.vlgmr.msrb.gmra.mxu0 %v7823_v32  ;;  %3176 = vmatmul.f32.vlgmr.msrb.gmra.mxu1 %v7823_v32  ;;  %v4619_v32 = vld [vmem:[%s8845_s3 + $0x3d8] sm:$0xff] }
 0x35f   :  { %3256 = vmatpush.msra.mxu0 %v4622_v60  ;;  %3276 = vmatpush.msra.mxu1 %v4623_v1 }
 0x360   :  { %3193 = vmatpush.msrb.mxu2 %v4564_v18  ;;  %3213 = vmatpush.msrb.mxu3 %v4565_v45  ;;  %v4630_v18 = vld [vmem:[%s8845_s3 + $0x430] sm:$0xff]  ;;  %v4631_v45 = vld [vmem:[%s8845_s3 + $0x438] sm:$0xff] }
 0x361   :  { %3257 = vmatpush.msra.mxu0 %v4620_v35  ;;  %3277 = vmatpush.msra.mxu1 %v4621_v63 }
 0x362   :  { %3194 = vmatpush.msrb.mxu2 %v4562_v20  ;;  %3214 = vmatpush.msrb.mxu3 %v4563_v46  ;;  %v4628_v20 = vld [vmem:[%s8845_s3 + $0x420] sm:$0xff]  ;;  %v4629_v46 = vld [vmem:[%s8845_s3 + $0x428] sm:$0xff] }
 0x363   :  { %3258 = vmatpush.msra.mxu0 %v4618_v36  ;;  %3278 = vmatpush.msra.mxu1 %v4619_v32 }
 0x364   :  { %3195 = vmatpush.msrb.mxu2 %v4560_v58  ;;  %3215 = vmatpush.msrb.mxu3 %v4561_v54  ;;  %v4626_v58 = vld [vmem:[%s8845_s3 + $0x410] sm:$0xff]  ;;  %v4627_v54 = vld [vmem:[%s8845_s3 + $0x418] sm:$0xff] }
 0x365   :  { %3196 = vmatmul.f32.vlgmr.msrb.gmra.mxu2 %v7846_v2  ;;  %3216 = vmatmul.f32.vlgmr.msrb.gmra.mxu3 %v7846_v2  ;;  %v4613_v2 = vld [vmem:[%s8845_s3 + $0x3a8] sm:$0xff] }
 0x366   :  { %3259 = vmatpush.msra.mxu0 %v4616_v49  ;;  %3279 = vmatpush.msra.mxu1 %v4617_v11 }
 0x367   :  { %3296 = vmatpush.msra.mxu2 %v4622_v60  ;;  %3316 = vmatpush.msra.mxu3 %v4623_v1  ;;  %v4624_v60 = vld [vmem:[%s8845_s3 + $0x400] sm:$0xff]  ;;  %v4625_v1 = vld [vmem:[%s8845_s3 + $0x408] sm:$0xff] }
 0x368   :  { %3260 = vmatpush.msra.mxu0 %v4614_v13  ;;  %3280 = vmatpush.msra.mxu1 %v4615_v5 }
 0x369   :  { %3297 = vmatpush.msra.mxu2 %v4620_v35  ;;  %3317 = vmatpush.msra.mxu3 %v4621_v63  ;;  %v3372_v35 = vrot.slane %v7597_v33, 2  ;;  %v3414_v63 = vrot.slane %v7628_v37, 2  ;;  %v4670_v33 = vld [vmem:[%s8847_s5 + $0xf0] sm:$0xff]  ;;  %v4669_v37 = vld [vmem:[%s8847_s5 + $0xe8] sm:$0xff] }
 0x36a   :  { %3261 = vmatpush.msra.mxu0 %v4612_v14  ;;  %3281 = vmatpush.msra.mxu1 %v4613_v2 }
 0x36b   :  { %3298 = vmatpush.msra.mxu2 %v4618_v36  ;;  %3318 = vmatpush.msra.mxu3 %v4619_v32  ;;  %v4671_v36 = vld [vmem:[%s8847_s5 + $0xf8] sm:$0xff] }
 0x36c   :  { %3262 = vmatpush.msra.mxu0 %v4610_v59  ;;  %3282 = vmatpush.msra.mxu1 %v4611_v10  ;;  %v3489_v32 = vld [vmem:[%s8847_s5 + $0x78] sm:$0xff] }
 0x36d   :  { %3299 = vmatpush.msra.mxu2 %v4616_v49  ;;  %3319 = vmatpush.msra.mxu3 %v4617_v11  ;;  %v3488_v49 = vld [vmem:[%s8847_s5 + $0x70] sm:$0xff]  ;;  %v3487_v11 = vld [vmem:[%s8847_s5 + $0x68] sm:$0xff] }
 0x36e   :  { %3263 = vmatpush.msra.mxu0 %v4608_v17  ;;  %3283 = vmatpush.msra.mxu1 %v4609_v29 }
 0x36f   :  { %3300 = vmatpush.msra.mxu2 %v4614_v13  ;;  %3320 = vmatpush.msra.mxu3 %v4615_v5  ;;  %v4668_v13 = vld [vmem:[%s8847_s5 + $0xe0] sm:$0xff] }
 0x370   :  { %3264 = vmatpush.msra.mxu0 %v4606_v41  ;;  %3284 = vmatpush.msra.mxu1 %v4607_v42  ;;  %v3486_v5 = vld [vmem:[%s8847_s5 + $0x60] sm:$0xff] }
 0x371   :  { %3301 = vmatpush.msra.mxu2 %v4612_v14  ;;  %3321 = vmatpush.msra.mxu3 %v4613_v2  ;;  %v4667_v14 = vld [vmem:[%s8847_s5 + $0xd8] sm:$0xff] }
 0x372   :  { %3265 = vmatpush.msra.mxu0 %v4604_v31  ;;  %3285 = vmatpush.msra.mxu1 %v4605_v55  ;;  %v3485_v2 = vld [vmem:[%s8847_s5 + $0x58] sm:$0xff] }
 0x373   :  { %3302 = vmatpush.msra.mxu2 %v4610_v59  ;;  %3322 = vmatpush.msra.mxu3 %v4611_v10  ;;  %v4666_v59 = vld [vmem:[%s8847_s5 + $0xd0] sm:$0xff] }
 0x374   :  { %3266 = vmatpush.msra.mxu0 %v4602_v56  ;;  %3286 = vmatpush.msra.mxu1 %v4603_v30  ;;  %v3484_v10 = vld [vmem:[%s8847_s5 + $0x50] sm:$0xff] }
 0x375   :  { %3303 = vmatpush.msra.mxu2 %v4608_v17  ;;  %3323 = vmatpush.msra.mxu3 %v4609_v29  ;;  %v4665_v17 = vld [vmem:[%s8847_s5 + $0xc8] sm:$0xff]  ;;  %v8475_v29 = vpop.f32.mrf.mxu0 }
 0x376   :  { %3267 = vmatpush.msra.mxu0 %v4600_v47  ;;  %3287 = vmatpush.msra.mxu1 %v4601_v57 }
 0x377   :  { %3304 = vmatpush.msra.mxu2 %v4606_v41  ;;  %3324 = vmatpush.msra.mxu3 %v4607_v42  ;;  %v8477_v41 = vpop.f32.mrf.mxu1  ;;  %v4664_v42 = vld [vmem:[%s8847_s5 + $0xc0] sm:$0xff] }
 0x378   :  { %3268 = vmatpush.msra.mxu0 %v4598_v62  ;;  %3288 = vmatpush.msra.mxu1 %v4599_v16 }
 0x379   :  { %3305 = vmatpush.msra.mxu2 %v4604_v31  ;;  %3325 = vmatpush.msra.mxu3 %v4605_v55  ;;  %v4663_v31 = vld [vmem:[%s8847_s5 + $0xb8] sm:$0xff]  ;;  %v4662_v55 = vld [vmem:[%s8847_s5 + $0xb0] sm:$0xff] }
 0x37a   :  { %3269 = vmatpush.msra.mxu0 %v4596_v53  ;;  %3289 = vmatpush.msra.mxu1 %v4597_v8 }
 0x37b   :  { %3306 = vmatpush.msra.mxu2 %v4602_v56  ;;  %3326 = vmatpush.msra.mxu3 %v4603_v30  ;;  %v3483_v56 = vld [vmem:[%s8847_s5 + $0x48] sm:$0xff] }
 0x37c   :  { %3270 = vmatpush.msra.mxu0 %v4594_v40  ;;  %3290 = vmatpush.msra.mxu1 %v4595_v12  ;;  %v4661_v30 = vld [vmem:[%s8847_s5 + $0xa8] sm:$0xff] }
 0x37d   :  { %3307 = vmatpush.msra.mxu2 %v4600_v47  ;;  %3327 = vmatpush.msra.mxu3 %v4601_v57  ;;  %v8494_v47 = vpop.f32.mrf.mxu0 }
 0x37e   :  { %3271 = vmatpush.msra.mxu0 %v4592_v3  ;;  %3291 = vmatpush.msra.mxu1 %v4593_v21 }
 0x37f   :  { %3308 = vmatpush.msra.mxu2 %v4598_v62  ;;  %3328 = vmatpush.msra.mxu3 %v4599_v16  ;;  %v8496_v57 = vpop.f32.mrf.mxu1  ;;  %v3482_v62 = vld [vmem:[%s8847_s5 + $0x40] sm:$0xff] }
 0x380   :  { %3272 = vmatmul.f32.vlgmr.msra.gmra.mxu0 %v7929_v0  ;;  %3292 = vmatmul.f32.vlgmr.msra.gmra.mxu1 %v7929_v0  ;;  %v4651_v0 = vld [vmem:[%s8845_s3 + $0x4d8] sm:$0xff]  ;;  %v4660_v16 = vld [vmem:[%s8847_s5 + $0xa0] sm:$0xff] }
 0x381   :  { %3374 = vmatpush.msrb.mxu0 %v4654_v22  ;;  %3394 = vmatpush.msrb.mxu1 %v4655_v4 }
 0x382   :  { %3309 = vmatpush.msra.mxu2 %v4596_v53  ;;  %3329 = vmatpush.msra.mxu3 %v4597_v8  ;;  %v3481_v53 = vld [vmem:[%s8847_s5 + $0x38] sm:$0xff]  ;;  %v8507_v8 = vpop.f32.mrf.mxu2 }
 0x383   :  { %3375 = vmatpush.msrb.mxu0 %v4652_v43  ;;  %3395 = vmatpush.msrb.mxu1 %v4653_v25 }
 0x384   :  { %3310 = vmatpush.msra.mxu2 %v4594_v40  ;;  %3330 = vmatpush.msra.mxu3 %v4595_v12  ;;  %v8509_v40 = vpop.f32.mrf.mxu3  ;;  %v4659_v12 = vld [vmem:[%s8847_s5 + $0x98] sm:$0xff] }
 0x385   :  { %3376 = vmatpush.msrb.mxu0 %v4650_v28  ;;  %3396 = vmatpush.msrb.mxu1 %v4651_v0 }
 0x386   :  { %3311 = vmatpush.msra.mxu2 %v4592_v3  ;;  %3331 = vmatpush.msra.mxu3 %v4593_v21  ;;  %v3480_v3 = vld [vmem:[%s8847_s5 + $0x30] sm:$0xff] }
 0x387   :  { %3312 = vmatmul.f32.vlgmr.msra.gmra.mxu2 %v7952_v39  ;;  %3332 = vmatmul.f32.vlgmr.msra.gmra.mxu3 %v7952_v39  ;;  %v4645_v39 = vld [vmem:[%s8845_s3 + $0x4a8] sm:$0xff]  ;;  %v4658_v21 = vld [vmem:[%s8847_s5 + $0x90] sm:$0xff] }
 0x388   :  { %3377 = vmatpush.msrb.mxu0 %v4648_v61  ;;  %3397 = vmatpush.msrb.mxu1 %v4649_v26 }
 0x389   :  { %3416 = vmatpush.msrb.mxu2 %v4654_v22  ;;  %3436 = vmatpush.msrb.mxu3 %v4655_v4  ;;  %v3479_v22 = vld [vmem:[%s8847_s5 + $0x28] sm:$0xff] }
 0x38a   :  { %3378 = vmatpush.msrb.mxu0 %v4646_v27  ;;  %3398 = vmatpush.msrb.mxu1 %v4647_v38  ;;  %v4657_v4 = vld [vmem:[%s8847_s5 + $0x88] sm:$0xff] }
 0x38b   :  { %3417 = vmatpush.msrb.mxu2 %v4652_v43  ;;  %3437 = vmatpush.msrb.mxu3 %v4653_v25  ;;  %v3478_v43 = vld [vmem:[%s8847_s5 + $0x20] sm:$0xff]  ;;  %v8529_v25 = vpop.f32.mrf.mxu0 }
 0x38c   :  { %3379 = vmatpush.msrb.mxu0 %v4644_v23  ;;  %3399 = vmatpush.msrb.mxu1 %v4645_v39 }
 0x38d   :  { %3418 = vmatpush.msrb.mxu2 %v4650_v28  ;;  %3438 = vmatpush.msrb.mxu3 %v4651_v0  ;;  %v8531_v28 = vpop.f32.mrf.mxu1  ;;  %v8533_v0 = vpop.f32.mrf.mxu2 }
 0x38e   :  { %3380 = vmatpush.msrb.mxu0 %v4642_v24  ;;  %3400 = vmatpush.msrb.mxu1 %v4643_v51 }
 0x38f   :  { %3419 = vmatpush.msrb.mxu2 %v4648_v61  ;;  %3439 = vmatpush.msrb.mxu3 %v4649_v26  ;;  %v8535_v61 = vpop.f32.mrf.mxu3  ;;  %v4656_v26 = vld [vmem:[%s8847_s5 + $0x80] sm:$0xff] }
 0x390   :  { %3381 = vmatpush.msrb.mxu0 %v4640_v7  ;;  %3401 = vmatpush.msrb.mxu1 %v4641_v50 }
 0x391   :  { %3420 = vmatpush.msrb.mxu2 %v4646_v27  ;;  %3440 = vmatpush.msrb.mxu3 %v4647_v38  ;;  %v3477_v27 = vld [vmem:[%s8847_s5 + $0x18] sm:$0xff] }
 0x392   :  { %3382 = vmatpush.msrb.mxu0 %v4638_v15  ;;  %3402 = vmatpush.msrb.mxu1 %v4639_v52  ;;  %v4687_v38 = vld [vmem:[%s8847_s5 + $0x178] sm:$0xff] }
 0x393   :  { %3421 = vmatpush.msrb.mxu2 %v4644_v23  ;;  %3441 = vmatpush.msrb.mxu3 %v4645_v39  ;;  %v3476_v23 = vld [vmem:[%s8847_s5 + $0x10] sm:$0xff] }
 0x394   :  { %3383 = vmatpush.msrb.mxu0 %v4636_v19  ;;  %3403 = vmatpush.msrb.mxu1 %v4637_v34  ;;  %v4686_v39 = vld [vmem:[%s8847_s5 + $0x170] sm:$0xff] }
 0x395   :  { %3422 = vmatpush.msrb.mxu2 %v4642_v24  ;;  %3442 = vmatpush.msrb.mxu3 %v4643_v51  ;;  %v3475_v24 = vld [vmem:[%s8847_s5 + $0x8] sm:$0xff] }
 0x396   :  { %3384 = vmatpush.msrb.mxu0 %v4634_v48  ;;  %3404 = vmatpush.msrb.mxu1 %v4635_v6  ;;  %v4685_v51 = vld [vmem:[%s8847_s5 + $0x168] sm:$0xff] }
 0x397   :  { %3423 = vmatpush.msrb.mxu2 %v4640_v7  ;;  %3443 = vmatpush.msrb.mxu3 %v4641_v50  ;;  %v8558_v7 = vpop.f32.mrf.mxu0  ;;  %v8560_v50 = vpop.f32.mrf.mxu1 }
 0x398   :  { %3385 = vmatpush.msrb.mxu0 %v4632_v9  ;;  %3405 = vmatpush.msrb.mxu1 %v4633_v44 }
 0x399   :  { %3424 = vmatpush.msrb.mxu2 %v4638_v15  ;;  %3444 = vmatpush.msrb.mxu3 %v4639_v52  ;;  %v3474_v15 = vld [vmem:[%s8847_s5] sm:$0xff] }
 0x39a   :  { %3386 = vmatpush.msrb.mxu0 %v4630_v18  ;;  %3406 = vmatpush.msrb.mxu1 %v4631_v45  ;;  %v4684_v52 = vld [vmem:[%s8847_s5 + $0x160] sm:$0xff] }
 0x39b   :  { %3425 = vmatpush.msrb.mxu2 %v4636_v19  ;;  %3445 = vmatpush.msrb.mxu3 %v4637_v34  ;;  %v4703_v19 = vld [vmem:[%s8847_s5 + $0x1f8] sm:$0xff] }
 0x39c   :  { %3387 = vmatpush.msrb.mxu0 %v4628_v20  ;;  %3407 = vmatpush.msrb.mxu1 %v4629_v46  ;;  %v4683_v34 = vld [vmem:[%s8847_s5 + $0x158] sm:$0xff] }
 0x39d   :  { %3426 = vmatpush.msrb.mxu2 %v4634_v48  ;;  %3446 = vmatpush.msrb.mxu3 %v4635_v6  ;;  %v4702_v48 = vld [vmem:[%s8847_s5 + $0x1f0] sm:$0xff]  ;;  %v8577_v6 = vpop.f32.mrf.mxu2 }
 0x39e   :  { %3388 = vmatpush.msrb.mxu0 %v4626_v58  ;;  %3408 = vmatpush.msrb.mxu1 %v4627_v54 }
 0x39f   :  { %3427 = vmatpush.msrb.mxu2 %v4632_v9  ;;  %3447 = vmatpush.msrb.mxu3 %v4633_v44  ;;  %v8579_v9 = vpop.f32.mrf.mxu3  ;;  %v4682_v44 = vld [vmem:[%s8847_s5 + $0x150] sm:$0xff] }
 0x3a0   :  { %3389 = vmatpush.msrb.mxu0 %v4624_v60  ;;  %3409 = vmatpush.msrb.mxu1 %v4625_v1 }
 0x3a1   :  { %3428 = vmatpush.msrb.mxu2 %v4630_v18  ;;  %3448 = vmatpush.msrb.mxu3 %v4631_v45  ;;  %v4701_v18 = vld [vmem:[%s8847_s5 + $0x1e8] sm:$0xff] }
 0x3a2   :  { %3390 = vmatmul.f32.vlgmr.msrb.gmra.mxu0 %v3372_v35  ;;  %3410 = vmatmul.f32.vlgmr.msrb.gmra.mxu1 %v3372_v35  ;;  %v4681_v45 = vld [vmem:[%s8847_s5 + $0x148] sm:$0xff]  ;;  %v4698_v35 = vld [vmem:[%s8847_s5 + $0x1d0] sm:$0xff] }
 0x3a3   :  { %3429 = vmatpush.msrb.mxu2 %v4628_v20  ;;  %3449 = vmatpush.msrb.mxu3 %v4629_v46  ;;  %v4700_v20 = vld [vmem:[%s8847_s5 + $0x1e0] sm:$0xff]  ;;  %v8593_v46 = vpop.f32.mrf.mxu0 }
 0x3a4   :  { %3510 = vmatpush.msra.mxu0 %v4671_v36  ;;  %3533 = vmatpush.msra.mxu1 %v4671_v36 }
 0x3a5   :  { %3430 = vmatpush.msrb.mxu2 %v4626_v58  ;;  %3450 = vmatpush.msrb.mxu3 %v4627_v54  ;;  %v8595_v58 = vpop.f32.mrf.mxu1  ;;  %v4680_v54 = vld [vmem:[%s8847_s5 + $0x140] sm:$0xff] }
 0x3a6   :  { %3511 = vmatpush.msra.mxu0 %v4670_v33  ;;  %3534 = vmatpush.msra.mxu1 %v4670_v33  ;;  %v4678_v33 = vld [vmem:[%s8847_s5 + $0x130] sm:$0xff] }
 0x3a7   :  { %3431 = vmatpush.msrb.mxu2 %v4624_v60  ;;  %3451 = vmatpush.msrb.mxu3 %v4625_v1  ;;  %v4699_v60 = vld [vmem:[%s8847_s5 + $0x1d8] sm:$0xff]  ;;  %v8611_v36 = vpop.f32.mrf.mxu3 }
 0x3a8   :  { %3432 = vmatmul.f32.vlgmr.msrb.gmra.mxu2 %v3414_v63  ;;  %3452 = vmatmul.f32.vlgmr.msrb.gmra.mxu3 %v3414_v63  ;;  %v4679_v1 = vld [vmem:[%s8847_s5 + $0x138] sm:$0xff]  ;;  %v8609_v63 = vpop.f32.mrf.mxu2 }
 0x3a9   :  { %3553 = vmatpush.msra.mxu2 %v3489_v32  ;;  %3573 = vmatpush.msra.mxu3 %v3489_v32  ;;  %v4697_v32 = vld [vmem:[%s8847_s5 + $0x1c8] sm:$0xff] }
 0x3aa   :  { %3512 = vmatpush.msra.mxu0 %v4669_v37  ;;  %3535 = vmatpush.msra.mxu1 %v4669_v37 }
 0x3ab   :  { %3554 = vmatpush.msra.mxu2 %v3488_v49  ;;  %3574 = vmatpush.msra.mxu3 %v3488_v49  ;;  %v8619_v37 = vpop.f32.mrf.mxu0 }
 0x3ac   :  { %3513 = vmatpush.msra.mxu0 %v4668_v13  ;;  %3536 = vmatpush.msra.mxu1 %v4668_v13  ;;  %v4696_v13 = vld [vmem:[%s8847_s5 + $0x1c0] sm:$0xff] }
 0x3ad   :  { %3555 = vmatpush.msra.mxu2 %v3487_v11  ;;  %3575 = vmatpush.msra.mxu3 %v3487_v11  ;;  %v8621_v49 = vpop.f32.mrf.mxu1  ;;  %v4677_v11 = vld [vmem:[%s8847_s5 + $0x128] sm:$0xff] }
 0x3ae   :  { %3514 = vmatpush.msra.mxu0 %v4667_v14  ;;  %3537 = vmatpush.msra.mxu1 %v4667_v14  ;;  %v4695_v14 = vld [vmem:[%s8847_s5 + $0x1b8] sm:$0xff] }
 0x3af   :  { %3556 = vmatpush.msra.mxu2 %v3486_v5  ;;  %3576 = vmatpush.msra.mxu3 %v3486_v5  ;;  %v4676_v5 = vld [vmem:[%s8847_s5 + $0x120] sm:$0xff] }
 0x3b0   :  { %3515 = vmatpush.msra.mxu0 %v4666_v59  ;;  %3538 = vmatpush.msra.mxu1 %v4666_v59  ;;  %v8637_v59 = vpop.f32.mrf.mxu3 }
 0x3b1   :  { %3557 = vmatpush.msra.mxu2 %v3485_v2  ;;  %3577 = vmatpush.msra.mxu3 %v3485_v2  ;;  %v8635_v2 = vpop.f32.mrf.mxu2 }
 0x3b2   :  { %3516 = vmatpush.msra.mxu0 %v4665_v17  ;;  %3539 = vmatpush.msra.mxu1 %v4665_v17  ;;  %v4694_v17 = vld [vmem:[%s8847_s5 + $0x1b0] sm:$0xff] }
 0x3b3   :  { %3558 = vmatpush.msra.mxu2 %v3484_v10  ;;  %3578 = vmatpush.msra.mxu3 %v3484_v10  ;;  %v4675_v10 = vld [vmem:[%s8847_s5 + $0x118] sm:$0xff] }
 0x3b4   :  { %3517 = vmatpush.msra.mxu0 %v4664_v42  ;;  %3540 = vmatpush.msra.mxu1 %v4664_v42  ;;  %v4674_v42 = vld [vmem:[%s8847_s5 + $0x110] sm:$0xff] }
 0x3b5   :  { %3559 = vmatpush.msra.mxu2 %v3483_v56  ;;  %3579 = vmatpush.msra.mxu3 %v3483_v56 }
 0x3b6   :  { %3518 = vmatpush.msra.mxu0 %v4663_v31  ;;  %3541 = vmatpush.msra.mxu1 %v4663_v31  ;;  %v4693_v31 = vld [vmem:[%s8847_s5 + $0x1a8] sm:$0xff] }
 0x3b7   :  { %3560 = vmatpush.msra.mxu2 %v3482_v62  ;;  %3580 = vmatpush.msra.mxu3 %v3482_v62  ;;  %v4692_v62 = vld [vmem:[%s8847_s5 + $0x1a0] sm:$0xff] }
 0x3b8   :  { %3519 = vmatpush.msra.mxu0 %v4662_v55  ;;  %3542 = vmatpush.msra.mxu1 %v4662_v55 }
 0x3b9   :  { %3561 = vmatpush.msra.mxu2 %v3481_v53  ;;  %3581 = vmatpush.msra.mxu3 %v3481_v53  ;;  %v3045_v55 = vpop.f32.mrf.mxu0  ;;  %v3065_v56 = vpop.f32.mrf.mxu1  ;;  %v4691_v53 = vld [vmem:[%s8847_s5 + $0x198] sm:$0xff] }
 0x3ba   :  { %3520 = vmatpush.msra.mxu0 %v4661_v30  ;;  %3543 = vmatpush.msra.mxu1 %v4661_v30  ;;  %v4673_v30 = vld [vmem:[%s8847_s5 + $0x108] sm:$0xff] }
 0x3bb   :  { %3562 = vmatpush.msra.mxu2 %v3480_v3  ;;  %3582 = vmatpush.msra.mxu3 %v3480_v3  ;;  %v3025_v3 = vpop.f32.mrf.mxu3 }
 0x3bc   :  { %3521 = vmatpush.msra.mxu0 %v4660_v16  ;;  %3544 = vmatpush.msra.mxu1 %v4660_v16  ;;  %v4672_v16 = vld [vmem:[%s8847_s5 + $0x100] sm:$0xff] }
 0x3bd   :  { %3563 = vmatpush.msra.mxu2 %v3479_v22  ;;  %3583 = vmatpush.msra.mxu3 %v3479_v22 }
 0x3be   :  { %3522 = vmatpush.msra.mxu0 %v4659_v12  ;;  %3545 = vmatpush.msra.mxu1 %v4659_v12  ;;  %v3005_v12 = vpop.f32.mrf.mxu2 }
 0x3bf   :  { %3564 = vmatpush.msra.mxu2 %v3478_v43  ;;  %3584 = vmatpush.msra.mxu3 %v3478_v43  ;;  %v4689_v43 = vld [vmem:[%s8847_s5 + $0x188] sm:$0xff] }
 0x3c0   :  { %3523 = vmatpush.msra.mxu0 %v4658_v21  ;;  %3546 = vmatpush.msra.mxu1 %v4658_v21  ;;  %v4690_v21 = vld [vmem:[%s8847_s5 + $0x190] sm:$0xff] }
 0x3c1   :  { %3565 = vmatpush.msra.mxu2 %v3477_v27  ;;  %3585 = vmatpush.msra.mxu3 %v3477_v27 }
 0x3c2   :  { %3524 = vmatpush.msra.mxu0 %v4657_v4  ;;  %3547 = vmatpush.msra.mxu1 %v4657_v4 }
 0x3c3   :  { %3566 = vmatpush.msra.mxu2 %v3476_v23  ;;  %3586 = vmatpush.msra.mxu3 %v3476_v23  ;;  %v2442_v23 = vadd.f32 %v8494_v47, %v8475_v29  ;;  %v3066_v29 = vadd.f32 %v3065_v56, %v8621_v49  ;;  %v2502_v49 = vadd.f32 %v8535_v61, %v8509_v40 }
 0x3c4   :  { %3525 = vmatpush.msra.mxu0 %v4656_v26  ;;  %3548 = vmatpush.msra.mxu1 %v4656_v26  ;;  %v4688_v26 = vld [vmem:[%s8847_s5 + $0x180] sm:$0xff] }
 0x3c5   :  { %3567 = vmatpush.msra.mxu2 %v3475_v24  ;;  %3587 = vmatpush.msra.mxu3 %v3475_v24 }
 0x3c6   :  { %3612 = vmatpush.msrb.mxu0 %v4687_v38  ;;  %3634 = vmatpush.msrb.mxu1 %v4687_v38  ;;  %v3085_v27 = vpop.f32.mrf.mxu2  ;;  %v3105_v38 = vpop.f32.mrf.mxu3 }
 0x3c7   :  { %3568 = vmatpush.msra.mxu2 %v3474_v15  ;;  %3588 = vmatpush.msra.mxu3 %v3474_v15  ;;  %v2623_v15 = vadd.f32 %v8529_v25, %v2442_v23 }
 0x3c8   :  { %3613 = vmatpush.msrb.mxu0 %v4686_v39  ;;  %3635 = vmatpush.msrb.mxu1 %v4686_v39  ;;  %v2462_v39 = vadd.f32 %v8496_v57, %v8477_v41 }
 0x3c9   :  { %3675 = vmatpush.msrb.mxu2 %v4703_v19  ;;  %3697 = vmatpush.msrb.mxu3 %v4703_v19  ;;  %v48_v19 = vld [vmem:[%s8846_s4] sm:$0x3] }
 0x3ca   :  { %3614 = vmatpush.msrb.mxu0 %v4685_v51  ;;  %3636 = vmatpush.msrb.mxu1 %v4685_v51  ;;  %v2872_v47 = vperm.slane %v48_v19, 0  ;;  %v2873_v41 = vperm.slane %v48_v19, 1 }
 0x3cb   :  { %3676 = vmatpush.msrb.mxu2 %v4702_v48  ;;  %3698 = vmatpush.msrb.mxu3 %v4702_v48 }
 0x3cc   :  { %3615 = vmatpush.msrb.mxu0 %v4684_v52  ;;  %3637 = vmatpush.msrb.mxu1 %v4684_v52  ;;  %v2624_v52 = vadd.f32 %v8531_v28, %v2462_v39 }
 0x3cd   :  { %3677 = vmatpush.msrb.mxu2 %v4701_v18  ;;  %3699 = vmatpush.msrb.mxu3 %v4701_v18 }
 0x3ce   :  { %3616 = vmatpush.msrb.mxu0 %v4683_v34  ;;  %3638 = vmatpush.msrb.mxu1 %v4683_v34  ;;  %v2746_v34 = vadd.f32 %v8558_v7, %v2623_v15  ;;  %v2747_v48 = vadd.f32 %v8560_v50, %v2624_v52  ;;  %v4716_v52 = vld [vmem:[%s8847_s5 + $0x260] sm:$0xff] }
 0x3cf   :  { %3678 = vmatpush.msrb.mxu2 %v4700_v20  ;;  %3700 = vmatpush.msrb.mxu3 %v4700_v20 }
 0x3d0   :  { %3617 = vmatpush.msrb.mxu0 %v4682_v44  ;;  %3639 = vmatpush.msrb.mxu1 %v4682_v44  ;;  %v3046_v44 = vadd.f32 %v3045_v55, %v8619_v37  ;;  %v2867_v25 = vadd.f32 %v8593_v46, %v2746_v34  ;;  %v2868_v28 = vadd.f32 %v8595_v58, %v2747_v48 }
 0x3d1   :  { %3679 = vmatpush.msrb.mxu2 %v4699_v60  ;;  %3701 = vmatpush.msrb.mxu3 %v4699_v60  ;;  %v2482_v37 = vadd.f32 %v8533_v0, %v8507_v8  ;;  %v3086_v8 = vadd.f32 %v3085_v27, %v3005_v12  ;;  %v3106_v0 = vadd.f32 %v3105_v38, %v3025_v3  ;;  %v4717_v38 = vld [vmem:[%s8847_s5 + $0x268] sm:$0xff] }
 0x3d2   :  { %3618 = vmatpush.msrb.mxu0 %v4681_v45  ;;  %3640 = vmatpush.msrb.mxu1 %v4681_v45  ;;  %v2877_v50 = vadd.f32 %v2873_v41, %v2868_v28 }
 0x3d3   :  { %3680 = vmatpush.msrb.mxu2 %v4698_v35  ;;  %3702 = vmatpush.msrb.mxu3 %v4698_v35  ;;  %v2876_v35 = vadd.f32 %v2872_v47, %v2867_v25  ;;  %v2625_v58 = vadd.f32 %v8577_v6, %v2482_v37  ;;  %v4711_v25 = vld [vmem:[%s8847_s5 + $0x238] sm:$0xff]  ;;  %v3801_v37 = vld [vmem:[%s8849_s7 + $0x70] sm:$0xff] }
 0x3d4   :  { %3619 = vmatpush.msrb.mxu0 %v4680_v54  ;;  %3641 = vmatpush.msrb.mxu1 %v4680_v54 }
 0x3d5   :  { %3681 = vmatpush.msrb.mxu2 %v4697_v32  ;;  %3703 = vmatpush.msrb.mxu3 %v4697_v32  ;;  %v2748_v55 = vadd.f32 %v8609_v63, %v2625_v58  ;;  %v3797_v58 = vld [vmem:[%s8849_s7 + $0x50] sm:$0xff] }
 0x3d6   :  { %3620 = vmatpush.msrb.mxu0 %v4679_v1  ;;  %3642 = vmatpush.msrb.mxu1 %v4679_v1 }
 0x3d7   :  { %3682 = vmatpush.msrb.mxu2 %v4696_v13  ;;  %3704 = vmatpush.msrb.mxu3 %v4696_v13  ;;  %v2626_v13 = vadd.f32 %v8579_v9, %v2502_v49  ;;  %v2869_v61 = vadd.f32 %v8635_v2, %v2748_v55  ;;  %v3800_v49 = vld [vmem:[%s8849_s7 + $0x68] sm:$0xff]  ;;  %v3789_v55 = vld [vmem:[%s8849_s7 + $0x10] sm:$0xff] }
 0x3d8   :  { %3621 = vmatpush.msrb.mxu0 %v4678_v33  ;;  %3643 = vmatpush.msrb.mxu1 %v4678_v33 }
 0x3d9   :  { %3683 = vmatpush.msrb.mxu2 %v4695_v14  ;;  %3705 = vmatpush.msrb.mxu3 %v4695_v14  ;;  %v2749_v56 = vadd.f32 %v8611_v36, %v2626_v13  ;;  %v4719_v36 = vld [vmem:[%s8847_s5 + $0x278] sm:$0xff]  ;;  %v2878_v12 = vadd.f32 %v2872_v47, %v2869_v61  ;;  %v3796_v13 = vld [vmem:[%s8849_s7 + $0x48] sm:$0xff] }
 0x3da   :  { %3622 = vmatpush.msrb.mxu0 %v4677_v11  ;;  %3644 = vmatpush.msrb.mxu1 %v4677_v11  ;;  %v3861_v61 = vld [vmem:[%s8851_s9 + $0x48] sm:$0xff] }
 0x3db   :  { %3684 = vmatpush.msrb.mxu2 %v4694_v17  ;;  %3706 = vmatpush.msrb.mxu3 %v4694_v17  ;;  %v3157_v22 = vpop.f32.mrf.mxu0  ;;  %v3177_v4 = vpop.f32.mrf.mxu1  ;;  %v2881_v17 = vmax.f32 %v2877_v50, 0.0  ;;  %v2870_v6 = vadd.f32 %v8637_v59, %v2749_v56  ;;  %v2882_v23 = vmax.f32 %v2878_v12, 0.0  ;;  %v4704_v50 = vld [vmem:[%s8847_s5 + $0x200] sm:$0xff]  ;;  %v3788_v56 = vld [vmem:[%s8849_s7 + $0x8] sm:$0xff] }
 0x3dc   :  { %3623 = vmatpush.msrb.mxu0 %v4676_v5  ;;  %3645 = vmatpush.msrb.mxu1 %v4676_v5  ;;  %v3220_v45 = vadd.f32 %v3157_v22, %v3046_v44  ;;  %v3221_v20 = vadd.f32 %v3177_v4, %v3066_v29  ;;  %v4715_v44 = vld [vmem:[%s8847_s5 + $0x258] sm:$0xff] }
 0x3dd   :  { %3685 = vmatpush.msrb.mxu2 %v4693_v31  ;;  %3707 = vmatpush.msrb.mxu3 %v4693_v31  ;;  %v2879_v2 = vadd.f32 %v2873_v41, %v2870_v6  ;;  %v3860_v6 = vld [vmem:[%s8851_s9 + $0x40] sm:$0xff] }
 0x3de   :  { %3624 = vmatpush.msrb.mxu0 %v4675_v10  ;;  %3646 = vmatpush.msrb.mxu1 %v4675_v10  ;;  %v2880_v10 = vmax.f32 %v2876_v35, 0.0  ;;  %v4705_v35 = vld [vmem:[%s8847_s5 + $0x208] sm:$0xff] }
 0x3df   :  { %3686 = vmatpush.msrb.mxu2 %v4692_v62  ;;  %3708 = vmatpush.msrb.mxu3 %v4692_v62  ;;  %v2883_v39 = vmax.f32 %v2879_v2, 0.0 }
 0x3e0   :  { %3625 = vmatpush.msrb.mxu0 %v4674_v42  ;;  %3647 = vmatpush.msrb.mxu1 %v4674_v42 }
 0x3e1   :  { %3687 = vmatpush.msrb.mxu2 %v4691_v53  ;;  %3709 = vmatpush.msrb.mxu3 %v4691_v53 }
 0x3e2   :  { %3626 = vmatpush.msrb.mxu0 %v4673_v30  ;;  %3648 = vmatpush.msrb.mxu1 %v4673_v30 }
 0x3e3   :  { %3688 = vmatpush.msrb.mxu2 %v4690_v21  ;;  %3710 = vmatpush.msrb.mxu3 %v4690_v21 }
 0x3e4   :  { %3627 = vmatpush.msrb.mxu0 %v4672_v16  ;;  %3649 = vmatpush.msrb.mxu1 %v4672_v16 }
 0x3e5   :  { %3689 = vmatpush.msrb.mxu2 %v4689_v43  ;;  %3711 = vmatpush.msrb.mxu3 %v4689_v43  ;;  %v4718_v43 = vld [vmem:[%s8847_s5 + $0x270] sm:$0xff] }
 0x3e7   :  { %3690 = vmatpush.msrb.mxu2 %v4688_v26  ;;  %3712 = vmatpush.msrb.mxu3 %v4688_v26 }
 0x3e8   :  { %v3197_v57 = vpop.f32.mrf.mxu2  ;;  %v3217_v18 = vpop.f32.mrf.mxu3 }
 0x3e9   :  { %v3222_v62 = vadd.f32 %v3197_v57, %v3086_v8  ;;  %v3223_v9 = vadd.f32 %v3217_v18, %v3106_v0  ;;  %v4713_v57 = vld [vmem:[%s8847_s5 + $0x248] sm:$0xff]  ;;  %v4712_v18 = vld [vmem:[%s8847_s5 + $0x240] sm:$0xff] }
 0x3ea   :  { %v3787_v8 = vld [vmem:[%s8849_s7] sm:$0xff] }
 0x3fd   :  { %v3273_v24 = vpop.f32.mrf.mxu0  ;;  %v3293_v51 = vpop.f32.mrf.mxu1 }
 0x3fe   :  { %v3336_v54 = vadd.f32 %v3273_v24, %v3220_v45  ;;  %v3337_v60 = vadd.f32 %v3293_v51, %v3221_v20  ;;  %v4710_v45 = vld [vmem:[%s8847_s5 + $0x230] sm:$0xff] }
 0x40a   :  { %v3313_v5 = vpop.f32.mrf.mxu2  ;;  %v3333_v14 = vpop.f32.mrf.mxu3 }
 0x40b   :  { %v3338_v53 = vadd.f32 %v3313_v5, %v3222_v62  ;;  %v3339_v21 = vadd.f32 %v3333_v14, %v3223_v9  ;;  %v3795_v5 = vld [vmem:[%s8849_s7 + $0x40] sm:$0xff]  ;;  %v3794_v14 = vld [vmem:[%s8849_s7 + $0x38] sm:$0xff] }
 0x40c   :  { %v3859_v62 = vld [vmem:[%s8851_s9 + $0x38] sm:$0xff] }
 0x41f   :  { %v3391_v1 = vpop.f32.mrf.mxu0  ;;  %v3411_v7 = vpop.f32.mrf.mxu1 }
 0x420   :  { %v3456_v33 = vadd.f32 %v3391_v1, %v3336_v54  ;;  %v3457_v32 = vadd.f32 %v3411_v7, %v3337_v60  ;;  %v4709_v54 = vld [vmem:[%s8847_s5 + $0x228] sm:$0xff]  ;;  %v4708_v60 = vld [vmem:[%s8847_s5 + $0x220] sm:$0xff]  ;;  %v4707_v1 = vld [vmem:[%s8847_s5 + $0x218] sm:$0xff] }
 0x421   :  { %v4706_v7 = vld [vmem:[%s8847_s5 + $0x210] sm:$0xff] }
 0x422   :  { %v3460_v11 = vadd.f32 %v3456_v33, %v2872_v47  ;;  %v3461_v46 = vadd.f32 %v3457_v32, %v2873_v41 }
 0x424   :  { %v3464_v42 = vmax.f32 %v3460_v11, 0.0  ;;  %v3465_v31 = vmax.f32 %v3461_v46, 0.0  ;;  %v3799_v11 = vld [vmem:[%s8849_s7 + $0x60] sm:$0xff]  ;;  %v3798_v46 = vld [vmem:[%s8849_s7 + $0x58] sm:$0xff] }
 0x426   :  { %v3468_v30 = vmax.f32 %v2880_v10, %v3464_v42  ;;  %v3469_v40 = vmax.f32 %v2881_v17, %v3465_v31  ;;  %v3793_v10 = vld [vmem:[%s8849_s7 + $0x30] sm:$0xff]  ;;  %v3792_v17 = vld [vmem:[%s8849_s7 + $0x28] sm:$0xff]  ;;  %v3791_v42 = vld [vmem:[%s8849_s7 + $0x20] sm:$0xff] }
 0x427   :  { %v3790_v31 = vld [vmem:[%s8849_s7 + $0x18] sm:$0xff] }
 0x428   :  { %v8697_v16 = vmax.f32 %v3468_v30, %v3469_v40  ;;  %v3862_v40 = vld [vmem:[%s8851_s9 + $0x50] sm:$0xf] }
 0x42a   :  { %3569 = vmatmul.f32.vlgmr.msra.gmra.mxu2 %v8697_v16  ;;  %v3508_v63 = vrot.slane %v8697_v16, 1  ;;  %v3673_v15 = vrot.slane %v8697_v16, 3  ;;  %v3610_v48 = vrot.slane %v8697_v16, 2  ;;  %v3736_v33 = vrot.slane %v8697_v16, 4  ;;  %v3858_v16 = vld [vmem:[%s8851_s9 + $0x30] sm:$0xff] }
 0x42b   :  { %v3433_v3 = vpop.f32.mrf.mxu2  ;;  %v3453_v22 = vpop.f32.mrf.mxu3  ;;  %3808 = vmatpush.msra.mxu2 %v3801_v37 }
 0x42c   :  { %v3458_v4 = vadd.f32 %v3433_v3, %v3338_v53  ;;  %v3459_v59 = vadd.f32 %v3453_v22, %v3339_v21  ;;  %3526 = vmatmul.f32.vlgmr.msra.gmra.mxu0 %v3508_v63  ;;  %v3857_v63 = vld [vmem:[%s8851_s9 + $0x28] sm:$0xff]  ;;  %v3856_v3 = vld [vmem:[%s8851_s9 + $0x20] sm:$0xff] }
 0x42d   :  { %3738 = vmatpush.msra.mxu0 %v4719_v36  ;;  %3809 = vmatpush.msra.mxu2 %v3800_v49 }
 0x42e   :  { %v3462_v26 = vadd.f32 %v3458_v4, %v2872_v47  ;;  %v3463_v27 = vadd.f32 %v3459_v59, %v2873_v41  ;;  %v4714_v47 = vld [vmem:[%s8847_s5 + $0x250] sm:$0xff]  ;;  %v3855_v4 = vld [vmem:[%s8851_s9 + $0x18] sm:$0xff] }
 0x42f   :  { %3739 = vmatpush.msra.mxu0 %v4718_v43  ;;  %3810 = vmatpush.msra.mxu2 %v3799_v11 }
 0x430   :  { %v3466_v24 = vmax.f32 %v3462_v26, 0.0  ;;  %v3467_v51 = vmax.f32 %v3463_v27, 0.0 }
 0x431   :  { %3740 = vmatpush.msra.mxu0 %v4717_v38  ;;  %3811 = vmatpush.msra.mxu2 %v3798_v46 }
 0x432   :  { %v3470_v19 = vmax.f32 %v2882_v23, %v3466_v24  ;;  %v3471_v34 = vmax.f32 %v2883_v39, %v3467_v51  ;;  %3691 = vmatmul.f32.vlgmr.msrb.gmra.mxu2 %v3673_v15 }
 0x433   :  { %3741 = vmatpush.msra.mxu0 %v4716_v52  ;;  %3812 = vmatpush.msra.mxu2 %v3797_v58 }
 0x434   :  { %v3473_v29 = vmax.f32 %v3470_v19, %v3471_v34  ;;  %3628 = vmatmul.f32.vlgmr.msrb.gmra.mxu0 %v3610_v48 }
 0x435   :  { %3742 = vmatpush.msra.mxu0 %v4715_v44  ;;  %3813 = vmatpush.msra.mxu2 %v3796_v13 }
 0x436   :  { %3589 = vmatmul.f32.vlgmr.msra.gmra.mxu3 %v3473_v29  ;;  %v3531_v41 = vrot.slane %v3473_v29, 1  ;;  %v3695_v28 = vrot.slane %v3473_v29, 3  ;;  %v3632_v20 = vrot.slane %v3473_v29, 2  ;;  %v3758_v32 = vrot.slane %v3473_v29, 4  ;;  %v3853_v29 = vld [vmem:[%s8851_s9 + $0x8] sm:$0xff] }
 0x437   :  { %3743 = vmatpush.msra.mxu0 %v4714_v47  ;;  %3831 = vmatpush.msra.mxu3 %v3801_v37 }
 0x438   :  { %3549 = vmatmul.f32.vlgmr.msra.gmra.mxu1 %v3531_v41  ;;  %3814 = vmatpush.msra.mxu2 %v3795_v5  ;;  %v3802_v41 = vld [vmem:[%s8850_s8] sm:$0x1] }
 0x439   :  { %3744 = vmatpush.msra.mxu0 %v4713_v57  ;;  %3760 = vmatpush.msra.mxu1 %v4719_v36 }
 0x43a   :  { %3832 = vmatpush.msra.mxu3 %v3800_v49  ;;  %3815 = vmatpush.msra.mxu2 %v3794_v14 }
 0x43b   :  { %3745 = vmatpush.msra.mxu0 %v4712_v18  ;;  %3761 = vmatpush.msra.mxu1 %v4718_v43  ;;  %v3782_v43 = vld [vmem:[%s8848_s6] sm:$0x1] }
 0x43c   :  { %3833 = vmatpush.msra.mxu3 %v3799_v11  ;;  %3816 = vmatpush.msra.mxu2 %v3793_v10 }
 0x43d   :  { %3746 = vmatpush.msra.mxu0 %v4711_v25  ;;  %3762 = vmatpush.msra.mxu1 %v4717_v38 }
 0x43e   :  { %3713 = vmatmul.f32.vlgmr.msrb.gmra.mxu3 %v3695_v28  ;;  %3817 = vmatpush.msra.mxu2 %v3792_v17 }
 0x43f   :  { %3747 = vmatpush.msra.mxu0 %v4710_v45  ;;  %3763 = vmatpush.msra.mxu1 %v4716_v52 }
 0x440   :  { %3650 = vmatmul.f32.vlgmr.msrb.gmra.mxu1 %v3632_v20  ;;  %3834 = vmatpush.msra.mxu3 %v3798_v46 }
 0x441   :  { %3748 = vmatpush.msra.mxu0 %v4709_v54  ;;  %3764 = vmatpush.msra.mxu1 %v4715_v44  ;;  %v3854_v44 = vld [vmem:[%s8851_s9 + $0x10] sm:$0xff] }
 0x442   :  { %3835 = vmatpush.msra.mxu3 %v3797_v58  ;;  %3818 = vmatpush.msra.mxu2 %v3791_v42 }
 0x443   :  { %3749 = vmatpush.msra.mxu0 %v4708_v60  ;;  %3765 = vmatpush.msra.mxu1 %v4714_v47  ;;  %v3852_v47 = vld [vmem:[%s8851_s9] sm:$0xff]  ;;  %s4760_s9 = smov [#allocation2]  }
 0x444   :  { %3836 = vmatpush.msra.mxu3 %v3796_v13  ;;  %3819 = vmatpush.msra.mxu2 %v3790_v31  ;;  %s3922_s14 = sshll.u32 %s4760_s9, 4  ;;  %s3923_s14 = int_to_ptr.vmem [resolvable:$true] %s3922_s14 }
 0x445   :  { %3750 = vmatpush.msra.mxu0 %v4707_v1  ;;  %3766 = vmatpush.msra.mxu1 %v4713_v57 }
 0x446   :  { %3837 = vmatpush.msra.mxu3 %v3795_v5  ;;  %3820 = vmatpush.msra.mxu2 %v3789_v55 }
 0x447   :  { %3751 = vmatpush.msra.mxu0 %v4706_v7  ;;  %3767 = vmatpush.msra.mxu1 %v4712_v18 }
 0x448   :  { %3838 = vmatpush.msra.mxu3 %v3794_v14  ;;  %3821 = vmatpush.msra.mxu2 %v3788_v56 }
 0x449   :  { %3752 = vmatpush.msra.mxu0 %v4705_v35  ;;  %3768 = vmatpush.msra.mxu1 %v4711_v25 }
 0x44a   :  { %3839 = vmatpush.msra.mxu3 %v3793_v10  ;;  %3822 = vmatpush.msra.mxu2 %v3787_v8 }
 0x44b   :  { %3753 = vmatpush.msra.mxu0 %v4704_v50  ;;  %3769 = vmatpush.msra.mxu1 %v4710_v45 }
 0x44c   :  { %3754 = vmatmul.f32.vlgmr.msra.gmra.mxu0 %v3736_v33  ;;  %3840 = vmatpush.msra.mxu3 %v3792_v17 }
 0x44d   :  { %3770 = vmatpush.msra.mxu1 %v4709_v54  ;;  %4722 = vmatpush.msk.msrb.mxu2 %vm3868_vm1, %v3862_v40  ;;  %v3863_v54 = vld [vmem:[%s8852_s10] sm:$0x1] }
 0x44e   :  { %3841 = vmatpush.msra.mxu3 %v3791_v42 }
 0x44f   :  { %3771 = vmatpush.msra.mxu1 %v4708_v60  ;;  %3878 = vmatpush.msrb.mxu2 %v3861_v61 }
 0x450   :  { %3842 = vmatpush.msra.mxu3 %v3790_v31 }
 0x451   :  { %3772 = vmatpush.msra.mxu1 %v4707_v1  ;;  %3879 = vmatpush.msrb.mxu2 %v3860_v6 }
 0x452   :  { %3843 = vmatpush.msra.mxu3 %v3789_v55 }
 0x453   :  { %3773 = vmatpush.msra.mxu1 %v4706_v7  ;;  %3880 = vmatpush.msrb.mxu2 %v3859_v62 }
 0x454   :  { %3844 = vmatpush.msra.mxu3 %v3788_v56 }
 0x455   :  { %3774 = vmatpush.msra.mxu1 %v4705_v35  ;;  %3881 = vmatpush.msrb.mxu2 %v3858_v16 }
 0x456   :  { %3845 = vmatpush.msra.mxu3 %v3787_v8 }
 0x457   :  { %3775 = vmatpush.msra.mxu1 %v4704_v50  ;;  %3882 = vmatpush.msrb.mxu2 %v3857_v63 }
 0x458   :  { %3776 = vmatmul.f32.vlgmr.msra.gmra.mxu1 %v3758_v32  ;;  %4724 = vmatpush.msk.msrb.mxu3 %vm3868_vm1, %v3862_v40 }
 0x459   :  { %3883 = vmatpush.msrb.mxu2 %v3856_v3 }
 0x45a   :  { %3901 = vmatpush.msrb.mxu3 %v3861_v61 }
 0x45b   :  { %3884 = vmatpush.msrb.mxu2 %v3855_v4 }
 0x45c   :  { %3902 = vmatpush.msrb.mxu3 %v3860_v6 }
 0x45d   :  { %3885 = vmatpush.msrb.mxu2 %v3854_v44 }
 0x45e   :  { %3903 = vmatpush.msrb.mxu3 %v3859_v62 }
 0x45f   :  { %3886 = vmatpush.msrb.mxu2 %v3853_v29 }
 0x460   :  { %3904 = vmatpush.msrb.mxu3 %v3858_v16 }
 0x461   :  { %3887 = vmatpush.msrb.mxu2 %v3852_v47 }
 0x462   :  { %3905 = vmatpush.msrb.mxu3 %v3857_v63 }
 0x464   :  { %3906 = vmatpush.msrb.mxu3 %v3856_v3 }
 0x466   :  { %3907 = vmatpush.msrb.mxu3 %v3855_v4 }
 0x468   :  { %3908 = vmatpush.msrb.mxu3 %v3854_v44 }
 0x46a   :  { %3909 = vmatpush.msrb.mxu3 %v3853_v29 }
 0x46c   :  { %3910 = vmatpush.msrb.mxu3 %v3852_v47 }
 0x4a9   :  { %v3527_v0 = vpop.f32.mrf.mxu0 }
 0x4ad   :  { %v3570_v30 = vpop.f32.mrf.mxu2 }
 0x4ae   :  { %v3571_v21 = vadd.f32 %v3570_v30, %v3527_v0 }
 0x4b1   :  { %v3629_v9 = vpop.f32.mrf.mxu0 }
 0x4b2   :  { %v3654_v12 = vadd.f32 %v3629_v9, %v3571_v21 }
 0x4b5   :  { %v3550_v53 = vpop.f32.mrf.mxu1  ;;  %v3692_v36 = vpop.f32.mrf.mxu2 }
 0x4b6   :  { %v3717_v2 = vadd.f32 %v3692_v36, %v3654_v12 }
 0x4b9   :  { %v3590_v22 = vpop.f32.mrf.mxu3 }
 0x4ba   :  { %v3591_v39 = vadd.f32 %v3590_v22, %v3550_v53 }
 0x4bd   :  { %v3651_v38 = vpop.f32.mrf.mxu1 }
 0x4be   :  { %v3655_v51 = vadd.f32 %v3651_v38, %v3591_v39 }
 0x4c1   :  { %v3714_v24 = vpop.f32.mrf.mxu3 }
 0x4c2   :  { %v3718_v15 = vadd.f32 %v3714_v24, %v3655_v51 }
 0x4c9   :  { %v3755_v59 = vpop.f32.mrf.mxu0 }
 0x4ca   :  { %v3780_v26 = vadd.f32 %v3755_v59, %v3717_v2 }
 0x4cc   :  { %v3783_v27 = vadd.f32 %v3782_v43, %v3780_v26 }
 0x4ce   :  { %v3785_v23 = vmax.f32 %v3783_v27, 0.0 }
 0x4d0   :  { %4720 = vmatmul.msk.f32.vlgmr.msra.gmra.mxu2 %vm3803_vm2, %v3785_v23 }
 0x4d5   :  { %v3777_v52 = vpop.f32.mrf.mxu1 }
 0x4d6   :  { %v3781_v19 = vadd.f32 %v3777_v52, %v3718_v15 }
 0x4d8   :  { %v3784_v34 = vadd.f32 %v3782_v43, %v3781_v19 }
 0x4da   :  { %v3786_v48 = vmax.f32 %v3784_v34, 0.0 }
 0x4dc   :  { %4721 = vmatmul.msk.f32.vlgmr.msra.gmra.mxu3 %vm3803_vm2, %v3786_v48 }
 0x553   :  { %v3824_v57 = vpop.f32.mrf.mxu2 }
 0x554   :  { %v3825_v18 = vadd.f32 %v3824_v57, %v3802_v41 }
 0x556   :  { %v3850_v25 = vmax.f32 %v3825_v18, 0.0 }
 0x558   :  { %4723 = vmatmul.msk.f32.vlgmr.msrb.gmra.mxu2 %vm3864_vm3, %v3850_v25 }
 0x55f   :  { %v3847_v28 = vpop.f32.mrf.mxu3 }
 0x560   :  { %v3848_v45 = vadd.f32 %v3847_v28, %v3802_v41 }
 0x562   :  { %v3851_v20 = vmax.f32 %v3848_v45, 0.0 }
 0x564   :  { %4725 = vmatmul.msk.f32.vlgmr.msrb.gmra.mxu3 %vm3864_vm3, %v3851_v20 }
 0x5db   :  { %v3889_v60 = vpop.f32.mrf.mxu2 }
 0x5dc   :  { %v3890_v1 = vadd.f32 %v3889_v60, %v3863_v54 }
 0x5de   :  { %3916 = vst.msk [vmem:[#allocation2] sm:$0x1] %vm3915_vm4, %v3890_v1 }
 0x5e7   :  { %v3912_v7 = vpop.f32.mrf.mxu3 }
 0x5e8   :  { %v3913_v35 = vadd.f32 %v3912_v7, %v3863_v54 }
 0x5ea   :  { %3917 = vst.msk [vmem:[#allocation2 + $0x1] sm:$0x1] %vm3915_vm4, %v3913_v35 }
 0x5eb   :  { %3930 = dma.vmem_to_hbm [thread:$0]  %s3923_s14, 32, %s3925_s15, [#allocation3], %s4761_s16, %s4761_s16, %s4762_s17  }
 0x5ec   :  { %4758 = dma.done.wait [#allocation3], 32  }
 0x5ed   :  { %4759 = vsyncadd [#allocation3], 4294967264 }
 0x5ee   :  { %3935 = vsyncpa [#allocation3], 1 }

</bundles_post_ra>
